<compile_context>
chip_gen: v5e
topology: v5e:2x2
jax: 0.10.0
libtpu: 0.0.40
codegen_flags: <defaults>
</compile_context>

<pallas_src>
import math

import jax
import jax.numpy as jnp
from jax.experimental import pallas as pl
from jax.experimental.pallas import tpu as pltpu

_VMEM_LIMIT = 32 * 1024 * 1024


# ----------------------------- Pallas kernels ------------------------------

def _conv_bias_relu_pool_kernel(a_ref, w_ref, b_ref, o_ref):
    # a_ref: (4, tm, K)  -- im2col patches for the 4 pixels of each 2x2 pool window
    # w_ref: (K, Cout) bf16 (BN scale pre-folded);  b_ref: (1, Cout) f32
    # Computes maxpool2x2(relu(conv + bias)) == max over the 4 planes of
    # relu(A_p @ W + b) -- exact regardless of the sign of the folded BN scale.
    w = w_ref[...]
    b = b_ref[...]

    def plane(p):
        y = jnp.dot(a_ref[p], w, preferred_element_type=jnp.float32)
        return jnp.maximum(y + b, 0.0)

    y = jnp.maximum(jnp.maximum(plane(0), plane(1)),
                    jnp.maximum(plane(2), plane(3)))
    o_ref[...] = y.astype(o_ref.dtype)


def conv_bias_relu_pool(a4, w, b, *, tm=256, out_dtype=jnp.bfloat16):
    """maxpool2(relu(conv)) where a4 is (4, M_pooled, K), w (K, N), b (1, N)."""
    _, M, K = a4.shape
    N = w.shape[1]
    bm = min(tm, M)
    return pl.pallas_call(
        _conv_bias_relu_pool_kernel,
        out_shape=jax.ShapeDtypeStruct((M, N), out_dtype),
        grid=(pl.cdiv(M, bm),),
        in_specs=[
            pl.BlockSpec((4, bm, K), lambda i: (0, i, 0)),  # row tile of patches
            pl.BlockSpec((K, N), lambda i: (0, 0)),         # folded weight, resident
            pl.BlockSpec((1, N), lambda i: (0, 0)),         # folded bias
        ],
        out_specs=pl.BlockSpec((bm, N), lambda i: (i, 0)),
        compiler_params=pltpu.CompilerParams(
            dimension_semantics=("parallel",),
            vmem_limit_bytes=_VMEM_LIMIT,
        ),
    )(a4, w, b)


def _matmul_bias_relu_kernel(a_ref, w_ref, b_ref, o_ref):
    y = jnp.dot(a_ref[...], w_ref[...], preferred_element_type=jnp.float32)
    o_ref[...] = jnp.maximum(y + b_ref[...], 0.0).astype(o_ref.dtype)


def matmul_bias_relu(a, w, b, *, tm=256, out_dtype=jnp.bfloat16):
    """relu(a @ w + b) (conv-as-matmul with folded BN), tiled over rows of a."""
    M, K = a.shape
    N = w.shape[1]
    bm = min(tm, M)
    return pl.pallas_call(
        _matmul_bias_relu_kernel,
        out_shape=jax.ShapeDtypeStruct((M, N), out_dtype),
        grid=(pl.cdiv(M, bm),),
        in_specs=[
            pl.BlockSpec((bm, K), lambda i: (i, 0)),
            pl.BlockSpec((K, N), lambda i: (0, 0)),
            pl.BlockSpec((1, N), lambda i: (0, 0)),
        ],
        out_specs=pl.BlockSpec((bm, N), lambda i: (i, 0)),
        compiler_params=pltpu.CompilerParams(
            dimension_semantics=("parallel",),
            vmem_limit_bytes=_VMEM_LIMIT,
        ),
    )(a, w, b)


def _tail_kernel(a_ref, w3_ref, b3_ref, w1_ref, b1_ref, wf_ref, bf_ref, o_ref):
    # Fused: conv3+BN+ReLU -> 2x2 maxpool -> flatten -> fc1+ReLU -> fc3+ReLU
    #        -> log_softmax(dim=1)        (matches the reference forward)
    w3 = w3_ref[...]
    b3 = b3_ref[...]

    def plane(p):
        y = jnp.dot(a_ref[p], w3, preferred_element_type=jnp.float32)
        return jnp.maximum(y + b3, 0.0)

    x = jnp.maximum(jnp.maximum(plane(0), plane(1)),
                    jnp.maximum(plane(2), plane(3)))          # (Nb, 256) == view(-1, 256)
    h = jnp.dot(x.astype(w1_ref.dtype), w1_ref[...],
                preferred_element_type=jnp.float32)
    h = jnp.maximum(h + b1_ref[...], 0.0)                      # fc1 + relu
    z = jnp.dot(h.astype(wf_ref.dtype), wf_ref[...],
                preferred_element_type=jnp.float32)
    z = jnp.maximum(z + bf_ref[...], 0.0)                      # fc3 + relu
    m = jnp.max(z, axis=-1, keepdims=True)
    e = jnp.exp(z - m)
    o_ref[...] = (z - m - jnp.log(jnp.sum(e, axis=-1, keepdims=True))).astype(o_ref.dtype)


def fused_tail(a3, w3, b3, w1, b1, wf, bf):
    nb = a3.shape[1]
    vmem = pl.BlockSpec(memory_space=pltpu.MemorySpace.VMEM)
    return pl.pallas_call(
        _tail_kernel,
        out_shape=jax.ShapeDtypeStruct((nb, 10), jnp.float32),
        in_specs=[vmem] * 7,
        out_specs=vmem,
        compiler_params=pltpu.CompilerParams(vmem_limit_bytes=_VMEM_LIMIT),
    )(a3, w3, b3, w1, b1, wf, bf)


# -------------------------------- glue --------------------------------------

def im2col(x, k):
    """NHWC -> (N*Ho*Wo, C*k*k) patches; feature order (c, di, dj) matches the
    flattening of a PyTorch (Cout, Cin, kh, kw) weight."""
    N, H, W, C = x.shape
    Ho, Wo = H - k + 1, W - k + 1
    cols = [x[:, di:di + Ho, dj:dj + Wo, :] for di in range(k) for dj in range(k)]
    p = jnp.stack(cols, axis=-1)                  # (N, Ho, Wo, C, k*k)
    return p.reshape(N * Ho * Wo, C * k * k), (N, Ho, Wo)


def im2col_pooled(x, k):
    """Patches for conv(k) output pixels grouped by their position inside each
    2x2 max-pool window -> (4, N*Po*Qo, C*k*k) so the pool reduction can run
    inside the conv kernel.  Floor-mode pooling (trailing row/col dropped)."""
    N, H, W, C = x.shape
    Ho, Wo = H - k + 1, W - k + 1
    Po, Qo = Ho // 2, Wo // 2
    planes = []
    for a in range(2):
        for b in range(2):
            cols = []
            for di in range(k):
                for dj in range(k):
                    hs = a + di
                    ws = b + dj
                    cols.append(x[:, hs:hs + 2 * Po - 1:2, ws:ws + 2 * Qo - 1:2, :])
            p = jnp.stack(cols, axis=-1)          # (N, Po, Qo, C, k*k)
            planes.append(p.reshape(N * Po * Qo, C * k * k))
    return jnp.stack(planes, axis=0), (N, Po, Qo)


def prepare_params(params, eps=1e-3):
    """Fold eval-mode BN into conv weights/bias (offline) and cast matmul
    inputs to bf16 (biases stay f32)."""
    def fold(p):
        cout = p["w"].shape[0]
        w2d = p["w"].reshape(cout, -1).T.astype(jnp.float32)   # (Cin*k*k, Cout)
        scale = p["gamma"] / jnp.sqrt(p["var"] + eps)
        w_f = (w2d * scale[None, :]).astype(jnp.bfloat16)
        bias = ((p["b"] - p["mean"]) * scale + p["beta"])[None, :].astype(jnp.float32)
        return dict(w=w_f, b=bias)

    return dict(
        conv0=fold(params["conv0"]),
        conv1=fold(params["conv1"]),
        conv2=fold(params["conv2"]),
        conv3=fold(params["conv3"]),
        fc1=dict(w=params["fc1"]["w"].astype(jnp.bfloat16),
                 b=params["fc1"]["b"][None, :].astype(jnp.float32)),
        fc3=dict(w=params["fc3"]["w"].astype(jnp.bfloat16),
                 b=params["fc3"]["b"].astype(jnp.float32)),
    )


@jax.jit
def net_forward(x_nchw, prep):
    x = jnp.transpose(x_nchw, (0, 2, 3, 1)).astype(jnp.bfloat16)   # NCHW -> NHWC bf16

    # conv0 + BN + ReLU + 2x2 maxpool  (Dropout2d = identity in eval)
    a0, (N, P0, Q0) = im2col_pooled(x, 3)                          # (4, N*13*13, 9)
    x = conv_bias_relu_pool(a0, prep["conv0"]["w"], prep["conv0"]["b"])
    x = x.reshape(N, P0, Q0, -1)                                    # (N, 13, 13, 64)

    # conv1 + BN + ReLU + 2x2 maxpool
    a1, (_, P1, Q1) = im2col_pooled(x, 3)                          # (4, N*5*5, 576)
    x = conv_bias_relu_pool(a1, prep["conv1"]["w"], prep["conv1"]["b"])
    x = x.reshape(N, P1, Q1, -1)                                    # (N, 5, 5, 128)

    # conv2 + BN + ReLU (no pool)
    a2, (_, H2, W2) = im2col(x, 3)                                  # (N*3*3, 1152)
    x = matmul_bias_relu(a2, prep["conv2"]["w"], prep["conv2"]["b"])
    x = x.reshape(N, H2, W2, -1)                                    # (N, 3, 3, 128)

    # fused tail: conv3+BN+ReLU -> maxpool -> flatten -> fc1+ReLU -> fc3+ReLU
    #             -> log_softmax   (one pallas_call)
    a3, _ = im2col_pooled(x, 2)                                     # (4, N, 512)
    return fused_tail(a3, prep["conv3"]["w"], prep["conv3"]["b"],
                      prep["fc1"]["w"], prep["fc1"]["b"],
                      prep["fc3"]["w"], prep["fc3"]["b"])


# --------------------------- deterministic init ------------------------------

def init_params(key):
    def conv_block(k, cin, cout, ksz):
        k1, k2, k3, k4, k5, k6 = jax.random.split(k, 6)
        fan = cin * ksz * ksz
        return dict(
            w=jax.random.normal(k1, (cout, cin, ksz, ksz), jnp.float32) / math.sqrt(fan),
            b=jax.random.normal(k2, (cout,), jnp.float32) * 0.1,
            gamma=jax.random.uniform(k3, (cout,), jnp.float32, 0.5, 1.5),
            beta=jax.random.normal(k4, (cout,), jnp.float32) * 0.1,
            mean=jax.random.normal(k5, (cout,), jnp.float32) * 0.1,
            var=jax.random.uniform(k6, (cout,), jnp.float32, 0.5, 1.5),
        )

    ks = jax.random.split(key, 6)
    params = dict(
        conv0=conv_block(ks[0], 1, 64, 3),
        conv1=conv_block(ks[1], 64, 128, 3),
        conv2=conv_block(ks[2], 128, 128, 3),
        conv3=conv_block(ks[3], 128, 256, 2),
    )
    k1, k2 = jax.random.split(ks[4], 2)
    # NOTE: the reference Net defines bn3 = BatchNorm1d(512) but never applies
    # it in forward(), so fc1 here is a plain Linear (+ ReLU).
    params["fc1"] = dict(
        w=jax.random.normal(k1, (256, 512), jnp.float32) / math.sqrt(256),
        b=jax.random.normal(k2, (512,), jnp.float32) * 0.1,
    )
    k1, k2 = jax.random.split(ks[5], 2)
    params["fc3"] = dict(
        w=jax.random.normal(k1, (512, 10), jnp.float32) / math.sqrt(512),
        b=jax.random.normal(k2, (1, 10), jnp.float32) * 0.1,
    )
    return params


if __name__ == "__main__":
    key = jax.random.PRNGKey(0)
    kp, kx = jax.random.split(key)
    params = init_params(kp)
    prep = prepare_params(params)          # BN folding / bf16 cast done once, offline

    # MNIST-style input: batch=2, 1 channel, 28x28 (required so the trunk ends
    # at 1x1x256 before view(-1, 256)).
    x = jax.random.normal(kx, (2, 1, 28, 28), jnp.float32)

    out = jax.block_until_ready(net_forward(x, prep))

    assert out.shape == (2, 10), out.shape
    assert bool(jnp.all(jnp.isfinite(out)))
    # rows of log_softmax should exponentiate-sum to ~1
    assert bool(jnp.all(jnp.abs(jnp.sum(jnp.exp(out), axis=-1) - 1.0) < 1e-4))
    print("KERNEL_OK")
</pallas_src>

<mosaic_0001>
module attributes {stable_mosaic.version = 11 : i64} {
  func.func @_conv_bias_relu_pool_kernel(%arg0: i32, %arg1: memref<4x256x9xbf16, #tpu.memory_space<vmem>>, %arg2: memref<9x64xbf16, #tpu.memory_space<vmem>>, %arg3: memref<1x64xf32, #tpu.memory_space<vmem>>, %arg4: memref<256x64xbf16, #tpu.memory_space<vmem>>) attributes {dimension_semantics = [#tpu.dimension_semantics<parallel>], iteration_bounds = array<i64: 2>, scalar_prefetch = 0 : i64, scratch_operands = 0 : i64, tpu.core_type = #tpu.core_type<tc>, window_params = [{transform_indices = @transform_0, window_bounds = array<i64: 4, 256, 9>}, {pipeline_mode = #tpu.pipeline_mode<synchronous>, transform_indices = @transform_1, window_bounds = array<i64: 9, 64>}, {pipeline_mode = #tpu.pipeline_mode<synchronous>, transform_indices = @transform_2, window_bounds = array<i64: 1, 64>}, {transform_indices = @transform_3, window_bounds = array<i64: 256, 64>}]} {
    %c0 = arith.constant 0 : index
    %c0_0 = arith.constant 0 : index
    %0 = vector.load %arg2[%c0, %c0_0] : memref<9x64xbf16, #tpu.memory_space<vmem>>, vector<9x64xbf16>
    %c0_1 = arith.constant 0 : index
    %c0_2 = arith.constant 0 : index
    %1 = vector.load %arg3[%c0_1, %c0_2] : memref<1x64xf32, #tpu.memory_space<vmem>>, vector<1x64xf32>
    %c0_3 = arith.constant 0 : index
    %c0_4 = arith.constant 0 : index
    %c0_5 = arith.constant 0 : index
    %2 = vector.load %arg1[%c0_3, %c0_4, %c0_5] : memref<4x256x9xbf16, #tpu.memory_space<vmem>>, vector<1x256x9xbf16>
    %3 = vector.shape_cast %2 : vector<1x256x9xbf16> to vector<256x9xbf16>
    %cst = arith.constant dense<0.000000e+00> : vector<256x64xf32>
    %4 = tpu.matmul %3, %0, %cst {dimension_numbers = #tpu.dot_dimension_numbers<[1], [0], [0], [1], [0, 0, 1, 1], [], []>} : vector<256x9xbf16>, vector<9x64xbf16>, vector<256x64xf32> -> vector<256x64xf32>
    %5 = vector.broadcast %1 : vector<1x64xf32> to vector<256x64xf32>
    %6 = arith.addf %4, %5 : vector<256x64xf32>
    %cst_6 = arith.constant 0.000000e+00 : f32
    %7 = vector.broadcast %cst_6 : f32 to vector<256x64xf32>
    %8 = arith.maximumf %6, %7 : vector<256x64xf32>
    %c1 = arith.constant 1 : index
    %c0_7 = arith.constant 0 : index
    %c0_8 = arith.constant 0 : index
    %9 = vector.load %arg1[%c1, %c0_7, %c0_8] : memref<4x256x9xbf16, #tpu.memory_space<vmem>>, vector<1x256x9xbf16>
    %10 = vector.shape_cast %9 : vector<1x256x9xbf16> to vector<256x9xbf16>
    %cst_9 = arith.constant dense<0.000000e+00> : vector<256x64xf32>
    %11 = tpu.matmul %10, %0, %cst_9 {dimension_numbers = #tpu.dot_dimension_numbers<[1], [0], [0], [1], [0, 0, 1, 1], [], []>} : vector<256x9xbf16>, vector<9x64xbf16>, vector<256x64xf32> -> vector<256x64xf32>
    %12 = vector.broadcast %1 : vector<1x64xf32> to vector<256x64xf32>
    %13 = arith.addf %11, %12 : vector<256x64xf32>
    %cst_10 = arith.constant 0.000000e+00 : f32
    %14 = vector.broadcast %cst_10 : f32 to vector<256x64xf32>
    %15 = arith.maximumf %13, %14 : vector<256x64xf32>
    %16 = arith.maximumf %8, %15 : vector<256x64xf32>
    %c2 = arith.constant 2 : index
    %c0_11 = arith.constant 0 : index
    %c0_12 = arith.constant 0 : index
    %17 = vector.load %arg1[%c2, %c0_11, %c0_12] : memref<4x256x9xbf16, #tpu.memory_space<vmem>>, vector<1x256x9xbf16>
    %18 = vector.shape_cast %17 : vector<1x256x9xbf16> to vector<256x9xbf16>
    %cst_13 = arith.constant dense<0.000000e+00> : vector<256x64xf32>
    %19 = tpu.matmul %18, %0, %cst_13 {dimension_numbers = #tpu.dot_dimension_numbers<[1], [0], [0], [1], [0, 0, 1, 1], [], []>} : vector<256x9xbf16>, vector<9x64xbf16>, vector<256x64xf32> -> vector<256x64xf32>
    %20 = vector.broadcast %1 : vector<1x64xf32> to vector<256x64xf32>
    %21 = arith.addf %19, %20 : vector<256x64xf32>
    %cst_14 = arith.constant 0.000000e+00 : f32
    %22 = vector.broadcast %cst_14 : f32 to vector<256x64xf32>
    %23 = arith.maximumf %21, %22 : vector<256x64xf32>
    %c3 = arith.constant 3 : index
    %c0_15 = arith.constant 0 : index
    %c0_16 = arith.constant 0 : index
    %24 = vector.load %arg1[%c3, %c0_15, %c0_16] : memref<4x256x9xbf16, #tpu.memory_space<vmem>>, vector<1x256x9xbf16>
    %25 = vector.shape_cast %24 : vector<1x256x9xbf16> to vector<256x9xbf16>
    %cst_17 = arith.constant dense<0.000000e+00> : vector<256x64xf32>
    %26 = tpu.matmul %25, %0, %cst_17 {dimension_numbers = #tpu.dot_dimension_numbers<[1], [0], [0], [1], [0, 0, 1, 1], [], []>} : vector<256x9xbf16>, vector<9x64xbf16>, vector<256x64xf32> -> vector<256x64xf32>
    %27 = vector.broadcast %1 : vector<1x64xf32> to vector<256x64xf32>
    %28 = arith.addf %26, %27 : vector<256x64xf32>
    %cst_18 = arith.constant 0.000000e+00 : f32
    %29 = vector.broadcast %cst_18 : f32 to vector<256x64xf32>
    %30 = arith.maximumf %28, %29 : vector<256x64xf32>
    %31 = arith.maximumf %23, %30 : vector<256x64xf32>
    %32 = arith.maximumf %16, %31 : vector<256x64xf32>
    %33 = arith.truncf %32 : vector<256x64xf32> to vector<256x64xbf16>
    %c0_19 = arith.constant 0 : index
    %c0_20 = arith.constant 0 : index
    %34 = vector.load %arg4[%c0_19, %c0_20] : memref<256x64xbf16, #tpu.memory_space<vmem>>, vector<256x64xbf16>
    tpu.vector_store %arg4[%c0_19, %c0_20], %33 {strides = array<i32>} : memref<256x64xbf16, #tpu.memory_space<vmem>>, vector<256x64xbf16>,
    return
  }
  func.func @transform_0(%arg0: i32) -> (i32, i32, i32) {
    %c0_i32 = arith.constant 0 : i32
    %c0_i32_0 = arith.constant 0 : i32
    %c0_i32_1 = arith.constant 0 : i32
    return %c0_i32, %arg0, %c0_i32_0 : i32, i32, i32
  }
  func.func @transform_1(%arg0: i32) -> (i32, i32) {
    %c0_i32 = arith.constant 0 : i32
    %c0_i32_0 = arith.constant 0 : i32
    %c0_i32_1 = arith.constant 0 : i32
    return %c0_i32, %c0_i32_0 : i32, i32
  }
  func.func @transform_2(%arg0: i32) -> (i32, i32) {
    %c0_i32 = arith.constant 0 : i32
    %c0_i32_0 = arith.constant 0 : i32
    %c0_i32_1 = arith.constant 0 : i32
    return %c0_i32, %c0_i32_0 : i32, i32
  }
  func.func @transform_3(%arg0: i32) -> (i32, i32) {
    %c0_i32 = arith.constant 0 : i32
    %c0_i32_0 = arith.constant 0 : i32
    return %arg0, %c0_i32 : i32, i32
  }
}

module attributes {stable_mosaic.version = 11 : i64} {
  func.func @_conv_bias_relu_pool_kernel(%arg0: i32, %arg1: memref<4x50x576xbf16, #tpu.memory_space<vmem>>, %arg2: memref<576x128xbf16, #tpu.memory_space<vmem>>, %arg3: memref<1x128xf32, #tpu.memory_space<vmem>>, %arg4: memref<50x128xbf16, #tpu.memory_space<vmem>>) attributes {dimension_semantics = [#tpu.dimension_semantics<parallel>], iteration_bounds = array<i64: 1>, scalar_prefetch = 0 : i64, scratch_operands = 0 : i64, tpu.core_type = #tpu.core_type<tc>, window_params = [{transform_indices = @transform_0, window_bounds = array<i64: 4, 50, 576>}, {pipeline_mode = #tpu.pipeline_mode<synchronous>, transform_indices = @transform_1, window_bounds = array<i64: 576, 128>}, {pipeline_mode = #tpu.pipeline_mode<synchronous>, transform_indices = @transform_2, window_bounds = array<i64: 1, 128>}, {transform_indices = @transform_3, window_bounds = array<i64: 50, 128>}]} {
    %c0 = arith.constant 0 : index
    %c0_0 = arith.constant 0 : index
    %0 = vector.load %arg2[%c0, %c0_0] : memref<576x128xbf16, #tpu.memory_space<vmem>>, vector<576x128xbf16>
    %c0_1 = arith.constant 0 : index
    %c0_2 = arith.constant 0 : index
    %1 = vector.load %arg3[%c0_1, %c0_2] : memref<1x128xf32, #tpu.memory_space<vmem>>, vector<1x128xf32>
    %c0_3 = arith.constant 0 : index
    %c0_4 = arith.constant 0 : index
    %c0_5 = arith.constant 0 : index
    %2 = vector.load %arg1[%c0_3, %c0_4, %c0_5] : memref<4x50x576xbf16, #tpu.memory_space<vmem>>, vector<1x50x576xbf16>
    %3 = vector.shape_cast %2 : vector<1x50x576xbf16> to vector<50x576xbf16>
    %cst = arith.constant dense<0.000000e+00> : vector<50x128xf32>
    %4 = tpu.matmul %3, %0, %cst {dimension_numbers = #tpu.dot_dimension_numbers<[1], [0], [0], [1], [0, 0, 1, 1], [], []>} : vector<50x576xbf16>, vector<576x128xbf16>, vector<50x128xf32> -> vector<50x128xf32>
    %5 = vector.broadcast %1 : vector<1x128xf32> to vector<50x128xf32>
    %6 = arith.addf %4, %5 : vector<50x128xf32>
    %cst_6 = arith.constant 0.000000e+00 : f32
    %7 = vector.broadcast %cst_6 : f32 to vector<50x128xf32>
    %8 = arith.maximumf %6, %7 : vector<50x128xf32>
    %c1 = arith.constant 1 : index
    %c0_7 = arith.constant 0 : index
    %c0_8 = arith.constant 0 : index
    %9 = vector.load %arg1[%c1, %c0_7, %c0_8] : memref<4x50x576xbf16, #tpu.memory_space<vmem>>, vector<1x50x576xbf16>
    %10 = vector.shape_cast %9 : vector<1x50x576xbf16> to vector<50x576xbf16>
    %cst_9 = arith.constant dense<0.000000e+00> : vector<50x128xf32>
    %11 = tpu.matmul %10, %0, %cst_9 {dimension_numbers = #tpu.dot_dimension_numbers<[1], [0], [0], [1], [0, 0, 1, 1], [], []>} : vector<50x576xbf16>, vector<576x128xbf16>, vector<50x128xf32> -> vector<50x128xf32>
    %12 = vector.broadcast %1 : vector<1x128xf32> to vector<50x128xf32>
    %13 = arith.addf %11, %12 : vector<50x128xf32>
    %cst_10 = arith.constant 0.000000e+00 : f32
    %14 = vector.broadcast %cst_10 : f32 to vector<50x128xf32>
    %15 = arith.maximumf %13, %14 : vector<50x128xf32>
    %16 = arith.maximumf %8, %15 : vector<50x128xf32>
    %c2 = arith.constant 2 : index
    %c0_11 = arith.constant 0 : index
    %c0_12 = arith.constant 0 : index
    %17 = vector.load %arg1[%c2, %c0_11, %c0_12] : memref<4x50x576xbf16, #tpu.memory_space<vmem>>, vector<1x50x576xbf16>
    %18 = vector.shape_cast %17 : vector<1x50x576xbf16> to vector<50x576xbf16>
    %cst_13 = arith.constant dense<0.000000e+00> : vector<50x128xf32>
    %19 = tpu.matmul %18, %0, %cst_13 {dimension_numbers = #tpu.dot_dimension_numbers<[1], [0], [0], [1], [0, 0, 1, 1], [], []>} : vector<50x576xbf16>, vector<576x128xbf16>, vector<50x128xf32> -> vector<50x128xf32>
    %20 = vector.broadcast %1 : vector<1x128xf32> to vector<50x128xf32>
    %21 = arith.addf %19, %20 : vector<50x128xf32>
    %cst_14 = arith.constant 0.000000e+00 : f32
    %22 = vector.broadcast %cst_14 : f32 to vector<50x128xf32>
    %23 = arith.maximumf %21, %22 : vector<50x128xf32>
    %c3 = arith.constant 3 : index
    %c0_15 = arith.constant 0 : index
    %c0_16 = arith.constant 0 : index
    %24 = vector.load %arg1[%c3, %c0_15, %c0_16] : memref<4x50x576xbf16, #tpu.memory_space<vmem>>, vector<1x50x576xbf16>
    %25 = vector.shape_cast %24 : vector<1x50x576xbf16> to vector<50x576xbf16>
    %cst_17 = arith.constant dense<0.000000e+00> : vector<50x128xf32>
    %26 = tpu.matmul %25, %0, %cst_17 {dimension_numbers = #tpu.dot_dimension_numbers<[1], [0], [0], [1], [0, 0, 1, 1], [], []>} : vector<50x576xbf16>, vector<576x128xbf16>, vector<50x128xf32> -> vector<50x128xf32>
    %27 = vector.broadcast %1 : vector<1x128xf32> to vector<50x128xf32>
    %28 = arith.addf %26, %27 : vector<50x128xf32>
    %cst_18 = arith.constant 0.000000e+00 : f32
    %29 = vector.broadcast %cst_18 : f32 to vector<50x128xf32>
    %30 = arith.maximumf %28, %29 : vector<50x128xf32>
    %31 = arith.maximumf %23, %30 : vector<50x128xf32>
    %32 = arith.maximumf %16, %31 : vector<50x128xf32>
    %33 = arith.truncf %32 : vector<50x128xf32> to vector<50x128xbf16>
    %c0_19 = arith.constant 0 : index
    %c0_20 = arith.constant 0 : index
    %34 = vector.load %arg4[%c0_19, %c0_20] : memref<50x128xbf16, #tpu.memory_space<vmem>>, vector<50x128xbf16>
    tpu.vector_store %arg4[%c0_19, %c0_20], %33 {strides = array<i32>} : memref<50x128xbf16, #tpu.memory_space<vmem>>, vector<50x128xbf16>,
    return
  }
  func.func @transform_0(%arg0: i32) -> (i32, i32, i32) {
    %c0_i32 = arith.constant 0 : i32
    %c0_i32_0 = arith.constant 0 : i32
    %c0_i32_1 = arith.constant 0 : i32
    return %c0_i32, %arg0, %c0_i32_0 : i32, i32, i32
  }
  func.func @transform_1(%arg0: i32) -> (i32, i32) {
    %c0_i32 = arith.constant 0 : i32
    %c0_i32_0 = arith.constant 0 : i32
    %c0_i32_1 = arith.constant 0 : i32
    return %c0_i32, %c0_i32_0 : i32, i32
  }
  func.func @transform_2(%arg0: i32) -> (i32, i32) {
    %c0_i32 = arith.constant 0 : i32
    %c0_i32_0 = arith.constant 0 : i32
    %c0_i32_1 = arith.constant 0 : i32
    return %c0_i32, %c0_i32_0 : i32, i32
  }
  func.func @transform_3(%arg0: i32) -> (i32, i32) {
    %c0_i32 = arith.constant 0 : i32
    %c0_i32_0 = arith.constant 0 : i32
    return %arg0, %c0_i32 : i32, i32
  }
}

module attributes {stable_mosaic.version = 11 : i64} {
  func.func @_matmul_bias_relu_kernel(%arg0: i32, %arg1: memref<18x1152xbf16, #tpu.memory_space<vmem>>, %arg2: memref<1152x128xbf16, #tpu.memory_space<vmem>>, %arg3: memref<1x128xf32, #tpu.memory_space<vmem>>, %arg4: memref<18x128xbf16, #tpu.memory_space<vmem>>) attributes {dimension_semantics = [#tpu.dimension_semantics<parallel>], iteration_bounds = array<i64: 1>, scalar_prefetch = 0 : i64, scratch_operands = 0 : i64, tpu.core_type = #tpu.core_type<tc>, window_params = [{transform_indices = @transform_0, window_bounds = array<i64: 18, 1152>}, {pipeline_mode = #tpu.pipeline_mode<synchronous>, transform_indices = @transform_1, window_bounds = array<i64: 1152, 128>}, {pipeline_mode = #tpu.pipeline_mode<synchronous>, transform_indices = @transform_2, window_bounds = array<i64: 1, 128>}, {transform_indices = @transform_3, window_bounds = array<i64: 18, 128>}]} {
    %c0 = arith.constant 0 : index
    %c0_0 = arith.constant 0 : index
    %0 = vector.load %arg1[%c0, %c0_0] : memref<18x1152xbf16, #tpu.memory_space<vmem>>, vector<18x1152xbf16>
    %c0_1 = arith.constant 0 : index
    %c0_2 = arith.constant 0 : index
    %1 = vector.load %arg2[%c0_1, %c0_2] : memref<1152x128xbf16, #tpu.memory_space<vmem>>, vector<1152x128xbf16>
    %cst = arith.constant dense<0.000000e+00> : vector<18x128xf32>
    %2 = tpu.matmul %0, %1, %cst {dimension_numbers = #tpu.dot_dimension_numbers<[1], [0], [0], [1], [0, 0, 1, 1], [], []>} : vector<18x1152xbf16>, vector<1152x128xbf16>, vector<18x128xf32> -> vector<18x128xf32>
    %c0_3 = arith.constant 0 : index
    %c0_4 = arith.constant 0 : index
    %3 = vector.load %arg3[%c0_3, %c0_4] : memref<1x128xf32, #tpu.memory_space<vmem>>, vector<1x128xf32>
    %4 = vector.broadcast %3 : vector<1x128xf32> to vector<18x128xf32>
    %5 = arith.addf %2, %4 : vector<18x128xf32>
    %cst_5 = arith.constant 0.000000e+00 : f32
    %6 = vector.broadcast %cst_5 : f32 to vector<18x128xf32>
    %7 = arith.maximumf %5, %6 : vector<18x128xf32>
    %8 = arith.truncf %7 : vector<18x128xf32> to vector<18x128xbf16>
    %c0_6 = arith.constant 0 : index
    %c0_7 = arith.constant 0 : index
    %9 = vector.load %arg4[%c0_6, %c0_7] : memref<18x128xbf16, #tpu.memory_space<vmem>>, vector<18x128xbf16>
    tpu.vector_store %arg4[%c0_6, %c0_7], %8 {strides = array<i32>} : memref<18x128xbf16, #tpu.memory_space<vmem>>, vector<18x128xbf16>,
    return
  }
  func.func @transform_0(%arg0: i32) -> (i32, i32) {
    %c0_i32 = arith.constant 0 : i32
    %c0_i32_0 = arith.constant 0 : i32
    return %arg0, %c0_i32 : i32, i32
  }
  func.func @transform_1(%arg0: i32) -> (i32, i32) {
    %c0_i32 = arith.constant 0 : i32
    %c0_i32_0 = arith.constant 0 : i32
    %c0_i32_1 = arith.constant 0 : i32
    return %c0_i32, %c0_i32_0 : i32, i32
  }
  func.func @transform_2(%arg0: i32) -> (i32, i32) {
    %c0_i32 = arith.constant 0 : i32
    %c0_i32_0 = arith.constant 0 : i32
    %c0_i32_1 = arith.constant 0 : i32
    return %c0_i32, %c0_i32_0 : i32, i32
  }
  func.func @transform_3(%arg0: i32) -> (i32, i32) {
    %c0_i32 = arith.constant 0 : i32
    %c0_i32_0 = arith.constant 0 : i32
    return %arg0, %c0_i32 : i32, i32
  }
}

module attributes {stable_mosaic.version = 11 : i64} {
  func.func @_tail_kernel(%arg0: memref<4x2x512xbf16, #tpu.memory_space<vmem>>, %arg1: memref<512x256xbf16, #tpu.memory_space<vmem>>, %arg2: memref<1x256xf32, #tpu.memory_space<vmem>>, %arg3: memref<256x512xbf16, #tpu.memory_space<vmem>>, %arg4: memref<1x512xf32, #tpu.memory_space<vmem>>, %arg5: memref<512x10xbf16, #tpu.memory_space<vmem>>, %arg6: memref<1x10xf32, #tpu.memory_space<vmem>>, %arg7: memref<2x10xf32, #tpu.memory_space<vmem>>) attributes {dimension_semantics = [], scalar_prefetch = 0 : i64, scratch_operands = 0 : i64, tpu.core_type = #tpu.core_type<tc>} {
    %c0 = arith.constant 0 : index
    %c0_0 = arith.constant 0 : index
    %0 = vector.load %arg1[%c0, %c0_0] : memref<512x256xbf16, #tpu.memory_space<vmem>>, vector<512x256xbf16>
    %c0_1 = arith.constant 0 : index
    %c0_2 = arith.constant 0 : index
    %1 = vector.load %arg2[%c0_1, %c0_2] : memref<1x256xf32, #tpu.memory_space<vmem>>, vector<1x256xf32>
    %c0_3 = arith.constant 0 : index
    %c0_4 = arith.constant 0 : index
    %c0_5 = arith.constant 0 : index
    %2 = vector.load %arg0[%c0_3, %c0_4, %c0_5] : memref<4x2x512xbf16, #tpu.memory_space<vmem>>, vector<1x2x512xbf16>
    %3 = vector.shape_cast %2 : vector<1x2x512xbf16> to vector<2x512xbf16>
    %cst = arith.constant dense<0.000000e+00> : vector<2x256xf32>
    %4 = tpu.matmul %3, %0, %cst {dimension_numbers = #tpu.dot_dimension_numbers<[1], [0], [0], [1], [0, 0, 1, 1], [], []>} : vector<2x512xbf16>, vector<512x256xbf16>, vector<2x256xf32> -> vector<2x256xf32>
    %5 = vector.broadcast %1 : vector<1x256xf32> to vector<2x256xf32>
    %6 = arith.addf %4, %5 : vector<2x256xf32>
    %cst_6 = arith.constant 0.000000e+00 : f32
    %7 = vector.broadcast %cst_6 : f32 to vector<2x256xf32>
    %8 = arith.maximumf %6, %7 : vector<2x256xf32>
    %c1 = arith.constant 1 : index
    %c0_7 = arith.constant 0 : index
    %c0_8 = arith.constant 0 : index
    %9 = vector.load %arg0[%c1, %c0_7, %c0_8] : memref<4x2x512xbf16, #tpu.memory_space<vmem>>, vector<1x2x512xbf16>
    %10 = vector.shape_cast %9 : vector<1x2x512xbf16> to vector<2x512xbf16>
    %cst_9 = arith.constant dense<0.000000e+00> : vector<2x256xf32>
    %11 = tpu.matmul %10, %0, %cst_9 {dimension_numbers = #tpu.dot_dimension_numbers<[1], [0], [0], [1], [0, 0, 1, 1], [], []>} : vector<2x512xbf16>, vector<512x256xbf16>, vector<2x256xf32> -> vector<2x256xf32>
    %12 = vector.broadcast %1 : vector<1x256xf32> to vector<2x256xf32>
    %13 = arith.addf %11, %12 : vector<2x256xf32>
    %cst_10 = arith.constant 0.000000e+00 : f32
    %14 = vector.broadcast %cst_10 : f32 to vector<2x256xf32>
    %15 = arith.maximumf %13, %14 : vector<2x256xf32>
    %16 = arith.maximumf %8, %15 : vector<2x256xf32>
    %c2 = arith.constant 2 : index
    %c0_11 = arith.constant 0 : index
    %c0_12 = arith.constant 0 : index
    %17 = vector.load %arg0[%c2, %c0_11, %c0_12] : memref<4x2x512xbf16, #tpu.memory_space<vmem>>, vector<1x2x512xbf16>
    %18 = vector.shape_cast %17 : vector<1x2x512xbf16> to vector<2x512xbf16>
    %cst_13 = arith.constant dense<0.000000e+00> : vector<2x256xf32>
    %19 = tpu.matmul %18, %0, %cst_13 {dimension_numbers = #tpu.dot_dimension_numbers<[1], [0], [0], [1], [0, 0, 1, 1], [], []>} : vector<2x512xbf16>, vector<512x256xbf16>, vector<2x256xf32> -> vector<2x256xf32>
    %20 = vector.broadcast %1 : vector<1x256xf32> to vector<2x256xf32>
    %21 = arith.addf %19, %20 : vector<2x256xf32>
    %cst_14 = arith.constant 0.000000e+00 : f32
    %22 = vector.broadcast %cst_14 : f32 to vector<2x256xf32>
    %23 = arith.maximumf %21, %22 : vector<2x256xf32>
    %c3 = arith.constant 3 : index
    %c0_15 = arith.constant 0 : index
    %c0_16 = arith.constant 0 : index
    %24 = vector.load %arg0[%c3, %c0_15, %c0_16] : memref<4x2x512xbf16, #tpu.memory_space<vmem>>, vector<1x2x512xbf16>
    %25 = vector.shape_cast %24 : vector<1x2x512xbf16> to vector<2x512xbf16>
    %cst_17 = arith.constant dense<0.000000e+00> : vector<2x256xf32>
    %26 = tpu.matmul %25, %0, %cst_17 {dimension_numbers = #tpu.dot_dimension_numbers<[1], [0], [0], [1], [0, 0, 1, 1], [], []>} : vector<2x512xbf16>, vector<512x256xbf16>, vector<2x256xf32> -> vector<2x256xf32>
    %27 = vector.broadcast %1 : vector<1x256xf32> to vector<2x256xf32>
    %28 = arith.addf %26, %27 : vector<2x256xf32>
    %cst_18 = arith.constant 0.000000e+00 : f32
    %29 = vector.broadcast %cst_18 : f32 to vector<2x256xf32>
    %30 = arith.maximumf %28, %29 : vector<2x256xf32>
    %31 = arith.maximumf %23, %30 : vector<2x256xf32>
    %32 = arith.maximumf %16, %31 : vector<2x256xf32>
    %33 = arith.truncf %32 : vector<2x256xf32> to vector<2x256xbf16>
    %c0_19 = arith.constant 0 : index
    %c0_20 = arith.constant 0 : index
    %34 = vector.load %arg3[%c0_19, %c0_20] : memref<256x512xbf16, #tpu.memory_space<vmem>>, vector<256x512xbf16>
    %cst_21 = arith.constant dense<0.000000e+00> : vector<2x512xf32>
    %35 = tpu.matmul %33, %34, %cst_21 {dimension_numbers = #tpu.dot_dimension_numbers<[1], [0], [0], [1], [0, 0, 1, 1], [], []>} : vector<2x256xbf16>, vector<256x512xbf16>, vector<2x512xf32> -> vector<2x512xf32>
    %c0_22 = arith.constant 0 : index
    %c0_23 = arith.constant 0 : index
    %36 = vector.load %arg4[%c0_22, %c0_23] : memref<1x512xf32, #tpu.memory_space<vmem>>, vector<1x512xf32>
    %37 = vector.broadcast %36 : vector<1x512xf32> to vector<2x512xf32>
    %38 = arith.addf %35, %37 : vector<2x512xf32>
    %cst_24 = arith.constant 0.000000e+00 : f32
    %39 = vector.broadcast %cst_24 : f32 to vector<2x512xf32>
    %40 = arith.maximumf %38, %39 : vector<2x512xf32>
    %41 = arith.truncf %40 : vector<2x512xf32> to vector<2x512xbf16>
    %c0_25 = arith.constant 0 : index
    %c0_26 = arith.constant 0 : index
    %42 = vector.load %arg5[%c0_25, %c0_26] : memref<512x10xbf16, #tpu.memory_space<vmem>>, vector<512x10xbf16>
    %cst_27 = arith.constant dense<0.000000e+00> : vector<2x10xf32>
    %43 = tpu.matmul %41, %42, %cst_27 {dimension_numbers = #tpu.dot_dimension_numbers<[1], [0], [0], [1], [0, 0, 1, 1], [], []>} : vector<2x512xbf16>, vector<512x10xbf16>, vector<2x10xf32> -> vector<2x10xf32>
    %c0_28 = arith.constant 0 : index
    %c0_29 = arith.constant 0 : index
    %44 = vector.load %arg6[%c0_28, %c0_29] : memref<1x10xf32, #tpu.memory_space<vmem>>, vector<1x10xf32>
    %45 = vector.broadcast %44 : vector<1x10xf32> to vector<2x10xf32>
    %46 = arith.addf %43, %45 : vector<2x10xf32>
    %cst_30 = arith.constant 0.000000e+00 : f32
    %47 = vector.broadcast %cst_30 : f32 to vector<2x10xf32>
    %48 = arith.maximumf %46, %47 : vector<2x10xf32>
    %cst_31 = arith.constant dense<0xFF800000> : vector<2xf32>
    %49 = vector.multi_reduction <maximumf>, %48, %cst_31 [1] : vector<2x10xf32> to vector<2xf32>
    %50 = vector.shape_cast %49 : vector<2xf32> to vector<2x1xf32>
    %51 = vector.broadcast %50 : vector<2x1xf32> to vector<2x10xf32>
    %52 = arith.subf %48, %51 : vector<2x10xf32>
    %53 = math.exp %52 : vector<2x10xf32>
    %54 = vector.broadcast %50 : vector<2x1xf32> to vector<2x10xf32>
    %55 = arith.subf %48, %54 : vector<2x10xf32>
    %cst_32 = arith.constant dense<0.000000e+00> : vector<2xf32>
    %56 = vector.multi_reduction <add>, %53, %cst_32 [1] : vector<2x10xf32> to vector<2xf32>
    %57 = vector.shape_cast %56 : vector<2xf32> to vector<2x1xf32>
    %58 = math.log %57 : vector<2x1xf32>
    %59 = vector.broadcast %58 : vector<2x1xf32> to vector<2x10xf32>
    %60 = arith.subf %55, %59 : vector<2x10xf32>
    %c0_33 = arith.constant 0 : index
    %c0_34 = arith.constant 0 : index
    %61 = vector.load %arg7[%c0_33, %c0_34] : memref<2x10xf32, #tpu.memory_space<vmem>>, vector<2x10xf32>
    tpu.vector_store %arg7[%c0_33, %c0_34], %60 {strides = array<i32>} : memref<2x10xf32, #tpu.memory_space<vmem>>, vector<2x10xf32>,
    return
  }
}

</mosaic_0001>

<bundles_post_ra>
// kernel: net_forward.4
= control target key start
LH: loop header
LB: loop body
LE: loop exit
PB: predicated region body
PF: predicated region fallthrough
CT: control target
= control target key end

     0   :  { %s3032_s12 = smov 0   ;;  %s3034_s13 = smov 0   ;;  %s3708_s0 = inlined_call_operand.vmem [shape: bf16[4,338,9], index: 0, kind: input, shape index: {}]   ;;  %s3709_s1 = inlined_call_operand.vmem [shape: bf16[9,64], index: 1, kind: input, shape index: {}]   ;;  %s3710_s2 = inlined_call_operand.vmem [shape: f32[1,64], index: 2, kind: input, shape index: {}]   ;;  %s3711_s3 = inlined_call_operand.vmem [shape: bf16[338,64], index: 3, kind: output, shape index: {}]  }
   0x1   :  { %s3036_s14 = smov 0  }
   0x2 LB: > { %s3048_s15 = sadd.s32 4294967295, %s2945_s14   ;;  %s3051_s16 = sadd.s32 1, %s2945_s14   ;;  %s2945_s14 = sphi %s3036_s14, %s3727_s14   ;;  %s2941_s13 = sphi %s3034_s13, %s3726_s13   ;;  %s2937_s12 = sphi %s3032_s12, %s3725_s12  }
   0x3   : > { %s17_s17 = ssub.s32 %s2945_s14, %s3051_s16  ;;  %s20_s18 = sadd.s32 1, %s2941_s13 }
   0x4   : > { %p18_p0 = scmp.eq.s32.totalorder %s17_s17, 0  ;;  %p27_p1 = scmp.ne.s32.totalorder %s2941_s13, %s2937_s12 }
   0x5   : > { %p28_p2 = scmp.eq.s32.totalorder %s2945_s14, 0  ;;  %p99_p3 = scmp.eq.s32.totalorder %s3048_s15, 1 }
   0x6   : > { %s3061_s19 = scalar_select %p18_p0, %s2941_s13, %s20_s18  }
   0x7   : > { %p29_p4 = por %p28_p2, %p27_p1  ;;  %p3063_p5 = por %p99_p3, %p27_p1 }
   0x8   : > { %p2177_p6 = scmp.ge.s32.totalorder %s2945_s14, 2 }
   0xa   : > { %127 = sbr.rel (%p2177_p6) target bundleno = 85 (0x55), region = 24 }
   0xf   : > { %130 = sbr.rel (!%p29_p4) target bundleno = 85 (0x55), region = 28  ;;  %s132_s21 = sand.u32 (%p29_p4), 1, %s2941_s13  }
  0x10   : > { %s2179_s22 = sshll.u32 (%p29_p4), %s2945_s14, 5  ;;  %s2178_s23 = sshll.u32 (%p29_p4), %s132_s21, 9 }
  0x11   : > { %s136_s24 = ssub.s32 (%p29_p4), 43, %s2179_s22  ;;  %s2633_s25 = sshll.u32 (%p29_p4), %s2945_s14, 7 }
  0x12   : > { %p137_p7 = scmp.lt.s32.totalorder (%p29_p4), %s136_s24, 32  ;;  %s3076_s28 = scalar_lea.vmem (%p29_p4), %s3708_s0, %s2633_s25  }
  0x13   : > { %s3079_s30 = scalar_lea.vmem (%p29_p4), [#allocation2], %s2178_s23  }
  0x14   : > { %s3729_s24 = smov (!%p137_p7, %s136_s24), 32 }
  0x15   : > { %s2180_s29 = sshll.u32 %s3729_s24, 4 }
  0x16   : > { %p2183_p8 = scmp.eq.s32.totalorder %s2180_s29, 0 }
  0x17   : > { %s3082_s4 = sshrl.u32 (!%p2183_p8), %s3729_s24, 3 }
  0x18   : > { %145 = sbr.rel (%p2183_p8) target bundleno = 85 (0x55), region = 32  ;;  %p2184_p9 = scmp.le.s32.totalorder (!%p2183_p8), %s3082_s4, 0 }
  0x1d   : > { %2103 = sbr.rel (%p2184_p9) target bundleno = 67 (0x43), region = 196  ;;  %s3713_s5 = smov (!%p2184_p9), %s3079_s30 }
  0x1e   : > { %s3714_s6 = smov (!%p2184_p9), %s3076_s28  ;;  %s3091_s7 = smov (!%p2184_p9), 0  }
  0x1f   : > { %s3093_s8 = smov (!%p2184_p9), 0  }
  0x22 LB: >> { %v162_v0 = vld [vmem:[%s2953_s6] sm:$0xf]  ;;  %v164_v1 = vld [vmem:[%s2953_s6 + $0x4] sm:$0xf]  ;;  %v166_v2 = vld [vmem:[%s2953_s6 + $0x8] sm:$0xf]  ;;  %s2961_s8 = sphi %s3093_s8, %s156_s8   ;;  %s2957_s7 = sphi %s3091_s7, %s3717_s7   ;;  %s2953_s6 = sphi %s3714_s6, %s3716_s6   ;;  %s2949_s5 = sphi %s3713_s5, %s3715_s5  }
  0x23   : >> { %163 = vst [vmem:[%s2949_s5] sm:$0xf] %v162_v0  ;;  %v168_v3 = vld [vmem:[%s2953_s6 + $0xc] sm:$0xf]  ;;  %v170_v4 = vld [vmem:[%s2953_s6 + $0x10] sm:$0xf]  ;;  %s226_s9 = sadd.s32 1, %s2957_s7 }
  0x24   : >> { %165 = vst [vmem:[%s2949_s5 + $0x4] sm:$0xf] %v164_v1  ;;  %v172_v5 = vld [vmem:[%s2953_s6 + $0x14] sm:$0xf]  ;;  %v174_v6 = vld [vmem:[%s2953_s6 + $0x18] sm:$0xf]  ;;  %p227_p10 = scmp.ge.s32.totalorder %s226_s9, %s3082_s4 }
  0x25   : >> { %167 = vst [vmem:[%s2949_s5 + $0x8] sm:$0xf] %v166_v2  ;;  %v176_v7 = vld [vmem:[%s2953_s6 + $0x1c] sm:$0xf]  ;;  %v178_v8 = vld [vmem:[%s2953_s6 + $0xac] sm:$0xf] }
  0x26   : >> { %169 = vst [vmem:[%s2949_s5 + $0xc] sm:$0xf] %v168_v3  ;;  %v180_v9 = vld [vmem:[%s2953_s6 + $0xb0] sm:$0xf]  ;;  %v182_v10 = vld [vmem:[%s2953_s6 + $0xb4] sm:$0xf] }
  0x27   : >> { %171 = vst [vmem:[%s2949_s5 + $0x10] sm:$0xf] %v170_v4  ;;  %v184_v11 = vld [vmem:[%s2953_s6 + $0xb8] sm:$0xf]  ;;  %v186_v12 = vld [vmem:[%s2953_s6 + $0xbc] sm:$0xf] }
  0x28   : >> { %173 = vst [vmem:[%s2949_s5 + $0x14] sm:$0xf] %v172_v5  ;;  %v188_v13 = vld [vmem:[%s2953_s6 + $0xc0] sm:$0xf]  ;;  %v190_v14 = vld [vmem:[%s2953_s6 + $0xc4] sm:$0xf] }
  0x29   : >> { %175 = vst [vmem:[%s2949_s5 + $0x18] sm:$0xf] %v174_v6  ;;  %v192_v15 = vld [vmem:[%s2953_s6 + $0xc8] sm:$0xf]  ;;  %v194_v16 = vld [vmem:[%s2953_s6 + $0x158] sm:$0xf] }
  0x2a   : >> { %177 = vst [vmem:[%s2949_s5 + $0x1c] sm:$0xf] %v176_v7  ;;  %v196_v17 = vld [vmem:[%s2953_s6 + $0x15c] sm:$0xf]  ;;  %s3731_s9 = smov (%p227_p10, %s226_s9), 0  ;;  %s156_s8 = sadd.s32 1, %s2961_s8  }
  0x2b   : >> { %179 = vst [vmem:[%s2949_s5 + $0x80] sm:$0xf] %v178_v8  ;;  %v198_v18 = vld [vmem:[%s2953_s6 + $0x160] sm:$0xf]  ;;  %v200_v19 = vld [vmem:[%s2953_s6 + $0x164] sm:$0xf]  ;;  %p155_p11 = scmp.ge.s32.totalorder %s156_s8, %s3082_s4  ;;  %s3717_s7 = smov %s3731_s9 }
  0x2c   : >> { %181 = vst [vmem:[%s2949_s5 + $0x84] sm:$0xf] %v180_v9  ;;  %s2185_s10 = sshll.u32 %s3731_s9, 5  ;;  %v202_v20 = vld [vmem:[%s2953_s6 + $0x168] sm:$0xf] }
  0x2d   : >> { %183 = vst [vmem:[%s2949_s5 + $0x88] sm:$0xf] %v182_v10  ;;  %s3152_s11 = scalar_lea.vmem %s3076_s28, %s2185_s10   ;;  %s232_s17 = scalar_lea.vmem %s3079_s30, %s2185_s10 [#allocation2]   ;;  %v204_v21 = vld [vmem:[%s2953_s6 + $0x16c] sm:$0xf]  ;;  %v206_v22 = vld [vmem:[%s2953_s6 + $0x170] sm:$0xf] }
  0x2e   : >> { %185 = vst [vmem:[%s2949_s5 + $0x8c] sm:$0xf] %v184_v11  ;;  %v208_v23 = vld [vmem:[%s2953_s6 + $0x174] sm:$0xf]  ;;  %v210_v24 = vld [vmem:[%s2953_s6 + $0x204] sm:$0xf] }
  0x2f   : >> { %187 = vst [vmem:[%s2949_s5 + $0x90] sm:$0xf] %v186_v12  ;;  %v212_v25 = vld [vmem:[%s2953_s6 + $0x208] sm:$0xf]  ;;  %v214_v26 = vld [vmem:[%s2953_s6 + $0x20c] sm:$0xf] }
  0x30   : >> { %189 = vst [vmem:[%s2949_s5 + $0x94] sm:$0xf] %v188_v13  ;;  %v216_v27 = vld [vmem:[%s2953_s6 + $0x210] sm:$0xf]  ;;  %v218_v28 = vld [vmem:[%s2953_s6 + $0x214] sm:$0xf] }
  0x31   : >> { %191 = vst [vmem:[%s2949_s5 + $0x98] sm:$0xf] %v190_v14  ;;  %v220_v29 = vld [vmem:[%s2953_s6 + $0x218] sm:$0xf]  ;;  %v222_v30 = vld [vmem:[%s2953_s6 + $0x21c] sm:$0xf] }
  0x32   : >> { %193 = vst [vmem:[%s2949_s5 + $0x9c] sm:$0xf] %v192_v15  ;;  %v224_v31 = vld [vmem:[%s2953_s6 + $0x220] sm:$0xf]  ;;  %s3716_s6 = smov %s3152_s11 }
  0x33   : >> { %195 = vst [vmem:[%s2949_s5 + $0x100] sm:$0xf] %v194_v16 }
  0x34   : >> { %197 = vst [vmem:[%s2949_s5 + $0x104] sm:$0xf] %v196_v17 }
  0x35   : >> { %199 = vst [vmem:[%s2949_s5 + $0x108] sm:$0xf] %v198_v18 }
  0x36   : >> { %201 = vst [vmem:[%s2949_s5 + $0x10c] sm:$0xf] %v200_v19 }
  0x37   : >> { %203 = vst [vmem:[%s2949_s5 + $0x110] sm:$0xf] %v202_v20 }
  0x38   : >> { %205 = vst [vmem:[%s2949_s5 + $0x114] sm:$0xf] %v204_v21 }
  0x39   : >> { %207 = vst [vmem:[%s2949_s5 + $0x118] sm:$0xf] %v206_v22 }
  0x3a   : >> { %209 = vst [vmem:[%s2949_s5 + $0x11c] sm:$0xf] %v208_v23 }
  0x3b   : >> { %211 = vst [vmem:[%s2949_s5 + $0x180] sm:$0xf] %v210_v24 }
  0x3c   : >> { %213 = vst [vmem:[%s2949_s5 + $0x184] sm:$0xf] %v212_v25 }
  0x3d   : >> { %215 = vst [vmem:[%s2949_s5 + $0x188] sm:$0xf] %v214_v26 }
  0x3e   : >> { %217 = vst [vmem:[%s2949_s5 + $0x18c] sm:$0xf] %v216_v27  ;;  %158 = sbr.rel (!%p155_p11) target bundleno = 34 (0x22), region = 202 }
  0x3f   : >> { %219 = vst [vmem:[%s2949_s5 + $0x190] sm:$0xf] %v218_v28 }
  0x40   : >> { %221 = vst [vmem:[%s2949_s5 + $0x194] sm:$0xf] %v220_v29 }
  0x41   : >> { %223 = vst [vmem:[%s2949_s5 + $0x198] sm:$0xf] %v222_v30 }
  0x42   : >> { %225 = vst [vmem:[%s2949_s5 + $0x19c] sm:$0xf] %v224_v31  ;;  %s3715_s5 = smov %s232_s17 }
  0x43 PF: > { %s3193_s18 = sand.u32 7, %s3729_s24   ;;  %s2634_s21 = sshll.u32 %s3082_s4, 5 }
  0x44   : > { %s3197_s22 = scalar_lea.vmem %s3076_s28, %s2634_s21   ;;  %s3200_s23 = scalar_lea.vmem %s3079_s30, %s2634_s21 [#allocation2]  }
  0x45   : > { %p2190_p12 = scmp.le.s32.totalorder %s3193_s18, 0 }
  0x46   : > { %s3718_s25 = smov (!%p2190_p12), %s3200_s23  ;;  %s3719_s26 = smov (!%p2190_p12), %s3197_s22 }
  0x47   : > { %2117 = sbr.rel (%p2190_p12) target bundleno = 85 (0x55), region = 207  ;;  %s2971_s27 = smov (!%p2190_p12), 0  }
  0x48   : > { %s2975_s29 = smov (!%p2190_p12), 0  }
  0x4c LB: >> { %v249_v32 = vld [vmem:[%s2969_s26] sm:$0xf]  ;;  %v251_v33 = vld [vmem:[%s2969_s26 + $0xac] sm:$0xf]  ;;  %v253_v34 = vld [vmem:[%s2969_s26 + $0x158] sm:$0xf]  ;;  %s2977_s29 = sphi %s2975_s29, %s243_s29   ;;  %s2973_s27 = sphi %s2971_s27, %s2972_s27   ;;  %s2969_s26 = sphi %s3719_s26, %s262_s26   ;;  %s2965_s25 = sphi %s3718_s25, %s263_s25  }
  0x4d   : >> { %250 = vst [vmem:[%s2965_s25] sm:$0xf] %v249_v32  ;;  %v255_v35 = vld [vmem:[%s2969_s26 + $0x204] sm:$0xf]  ;;  %s257_s24 = sadd.s32 1, %s2973_s27  ;;  %s243_s29 = sadd.s32 1, %s2977_s29  }
  0x4e   : >> { %252 = vst [vmem:[%s2965_s25 + $0x80] sm:$0xf] %v251_v33  ;;  %p258_p13 = scmp.ge.s32.totalorder %s257_s24, %s3193_s18  ;;  %p242_p0 = scmp.ge.s32.totalorder %s243_s29, %s3193_s18 }
  0x4f   : >> { %254 = vst [vmem:[%s2965_s25 + $0x100] sm:$0xf] %v253_v34 }
  0x50   : >> { %256 = vst [vmem:[%s2965_s25 + $0x180] sm:$0xf] %v255_v35  ;;  %s3733_s24 = smov (%p258_p13, %s257_s24), 0  ;;  %245 = sbr.rel (!%p242_p0) target bundleno = 76 (0x4c), region = 213 }
  0x51   : >> { %s2191_s28 = sshll.u32 %s3733_s24, 2  ;;  %s2972_s27 = smov %s3733_s24  }
  0x52   : >> { %s262_s26 = scalar_lea.vmem %s3197_s22, %s2191_s28   ;;  %s263_s25 = scalar_lea.vmem %s3200_s23, %s2191_s28 [#allocation2]  }
  0x55 PF: > { %p2193_p1 = scmp.ge.s32.totalorder %s2945_s14, 1  ;;  %p422_p2 = scmp.lt.s32.totalorder %s2945_s14, 3 }
  0x57   : > { %p423_p3 = pnand %p2193_p1, %p422_p2 }
  0x58   : > { %s429_s7 = sand.u32 (!%p423_p3), 1, %s2937_s12  }
  0x59   : > { %426 = sbr.rel (%p423_p3) target bundleno = 559 (0x22f), region = 90  ;;  %s2194_s14 = sshll.u32 (!%p423_p3), %s429_s7, 9 }
  0x5a   : > { %s3230_s8 = scalar_lea.vmem (!%p423_p3), [#allocation2], %s2194_s14  ;;  %s2195_s11 = sshll.u32 (!%p423_p3), %s429_s7, 7 }
  0x5b   : > { %s3323_s12 = scalar_lea.vmem (!%p423_p3), [#allocation3], %s2195_s11  }
  0x5e   : > { %v2262_v36 = vld [vmem:[%s3709_s1] sm:$0xf]  ;;  %v2636_v37 = vld [vmem:[%s3709_s1] sm:$0x10]  ;;  %vm634_vm0 = vcmask 1043456   ;;  %vm635_vm1 = vcmask 1044480  }
  0x5f   : > { %v2263_v38 = vor.u32 %v2636_v37, %v2262_v36  ;;  %v3011_v39 = vmov 65535   ;;  %v2637_v43 = vld [vmem:[%s3230_s8] sm:$0xff]  ;;  %vm585_vm2 = vcmask 72704   ;;  %v2638_v47 = vld [vmem:[%s3230_s8 + $0x8] sm:$0xff]  ;;  %v2639_v51 = vld [vmem:[%s3230_s8 + $0x10] sm:$0xff]  ;;  %vm1736_vm3 = vcmask 519168  }
  0x60   : > { %v636_v40 = vsel %vm634_vm0, 4294967295, %v3011_v39  ;;  %v2653_v44 = vld [vmem:[%s3230_s8 + $0x80] sm:$0xff]  ;;  %v2654_v48 = vld [vmem:[%s3230_s8 + $0x88] sm:$0xff]  ;;  %v2655_v52 = vld [vmem:[%s3230_s8 + $0x90] sm:$0xff]  ;;  %s2617_s21 = sshll.u32 (%p3063_p5), %s3048_s15, 5  ;;  %s2701_s22 = sshll.u32 (%p3063_p5), %s3048_s15, 7 }
  0x61   : > { %v637_v41 = vsel %vm635_vm1, %v636_v40, 0  ;;  %v2669_v45 = vld [vmem:[%s3230_s8 + $0x100] sm:$0xff]  ;;  %v2670_v49 = vld [vmem:[%s3230_s8 + $0x108] sm:$0xff]  ;;  %v2671_v53 = vld [vmem:[%s3230_s8 + $0x110] sm:$0xff]  ;;  %s1777_s23 = ssub.s32 (%p3063_p5), 43, %s2617_s21  ;;  %s3573_s27 = scalar_lea.vmem (%p3063_p5), %s3711_s3, %s2701_s22  }
  0x62   : > { %v639_v42 = vand.u32 %v2263_v38, %v637_v41  ;;  %v2685_v46 = vld [vmem:[%s3230_s8 + $0x180] sm:$0xff]  ;;  %v2686_v50 = vld [vmem:[%s3230_s8 + $0x188] sm:$0xff]  ;;  %v2687_v54 = vld [vmem:[%s3230_s8 + $0x190] sm:$0xff]  ;;  %p1778_p4 = scmp.lt.s32.totalorder (%p3063_p5), %s1777_s23, 32 }
  0x63   : > { %v2640_v55 = vld [vmem:[%s3230_s8 + $0x18] sm:$0xff]  ;;  %v2641_v59 = vld [vmem:[%s3230_s8 + $0x20] sm:$0xff]  ;;  %v2642_v63 = vld [vmem:[%s3230_s8 + $0x28] sm:$0xff] }
  0x64   : > { %648 = vmatpush.bf16.msra.mxu0 %v639_v42  ;;  %930 = vmatpush.bf16.msra.mxu1 %v639_v42  ;;  %v2656_v56 = vld [vmem:[%s3230_s8 + $0x98] sm:$0xff]  ;;  %v2657_v60 = vld [vmem:[%s3230_s8 + $0xa0] sm:$0xff]  ;;  %v2658_v0 = vld [vmem:[%s3230_s8 + $0xa8] sm:$0xff] }
  0x65   : > { %1244 = vmatpush.bf16.msra.mxu2 %v639_v42  ;;  %1526 = vmatpush.bf16.msra.mxu3 %v639_v42  ;;  %v2672_v57 = vld [vmem:[%s3230_s8 + $0x118] sm:$0xff]  ;;  %v2673_v61 = vld [vmem:[%s3230_s8 + $0x120] sm:$0xff]  ;;  %v2674_v1 = vld [vmem:[%s3230_s8 + $0x128] sm:$0xff] }
  0x66   : > { %v2688_v58 = vld [vmem:[%s3230_s8 + $0x198] sm:$0xff]  ;;  %v2689_v62 = vld [vmem:[%s3230_s8 + $0x1a0] sm:$0xff]  ;;  %v2690_v2 = vld [vmem:[%s3230_s8 + $0x1a8] sm:$0xff] }
  0x67   : > { %2264 = vmatmul.msk.bf16.vlgmr.msra.gmra.mxu0 %vm585_vm2, %v2637_v43  ;;  %2376 = vmatmul.msk.bf16.vlgmr.msra.gmra.mxu1 %vm585_vm2, %v2653_v44  ;;  %v2643_v3 = vld [vmem:[%s3230_s8 + $0x30] sm:$0xff]  ;;  %v2644_v7 = vld [vmem:[%s3230_s8 + $0x38] sm:$0xff]  ;;  %v3299_v11 = vld [vmem:[%s3710_s2] ss:$0 sm:$0xff] }
  0x68   : > { %2488 = vmatmul.msk.bf16.vlgmr.msra.gmra.mxu2 %vm585_vm2, %v2669_v45  ;;  %2600 = vmatmul.msk.bf16.vlgmr.msra.gmra.mxu3 %vm585_vm2, %v2685_v46  ;;  %v2659_v4 = vld [vmem:[%s3230_s8 + $0xb0] sm:$0xff]  ;;  %v2660_v8 = vld [vmem:[%s3230_s8 + $0xb8] sm:$0xff]  ;;  %v2645_v12 = vld [vmem:[%s3230_s8 + $0x40] sm:$0xff] }
  0x69   : > { %v2675_v5 = vld [vmem:[%s3230_s8 + $0x130] sm:$0xff]  ;;  %v2676_v9 = vld [vmem:[%s3230_s8 + $0x138] sm:$0xff]  ;;  %v2661_v13 = vld [vmem:[%s3230_s8 + $0xc0] sm:$0xff] }
  0x6a   : > { %v2691_v6 = vld [vmem:[%s3230_s8 + $0x1b0] sm:$0xff]  ;;  %v2692_v10 = vld [vmem:[%s3230_s8 + $0x1b8] sm:$0xff]  ;;  %v2677_v16 = vld [vmem:[%s3230_s8 + $0x140] sm:$0xff] }
  0x6b   : > { %v2693_v17 = vld [vmem:[%s3230_s8 + $0x1c0] sm:$0xff]  ;;  %v2646_v38 = vld [vmem:[%s3230_s8 + $0x48] sm:$0xff] }
  0x6c   : > { %v2662_v39 = vld [vmem:[%s3230_s8 + $0xc8] sm:$0xff] }
  0x6d   : > { %v2678_v46 = vld [vmem:[%s3230_s8 + $0x148] sm:$0xff] }
  0x77   : > { %2265 = vmatmul.msk.bf16.gmra.mxu0 %vm585_vm2, %v2638_v47  ;;  %2377 = vmatmul.msk.bf16.gmra.mxu1 %vm585_vm2, %v2654_v48  ;;  %v2694_v47 = vld [vmem:[%s3230_s8 + $0x1c8] sm:$0xff] }
  0x78   : > { %2489 = vmatmul.msk.bf16.gmra.mxu2 %vm585_vm2, %v2670_v49  ;;  %2601 = vmatmul.msk.bf16.gmra.mxu3 %vm585_vm2, %v2686_v50 }
  0x87   : > { %2266 = vmatmul.msk.bf16.gmra.mxu0 %vm585_vm2, %v2639_v51  ;;  %2378 = vmatmul.msk.bf16.gmra.mxu1 %vm585_vm2, %v2655_v52 }
  0x88   : > { %2490 = vmatmul.msk.bf16.gmra.mxu2 %vm585_vm2, %v2671_v53  ;;  %2602 = vmatmul.msk.bf16.gmra.mxu3 %vm585_vm2, %v2687_v54 }
  0x97   : > { %2267 = vmatmul.msk.bf16.gmra.mxu0 %vm585_vm2, %v2640_v55  ;;  %2379 = vmatmul.msk.bf16.gmra.mxu1 %vm585_vm2, %v2656_v56 }
  0x98   : > { %2491 = vmatmul.msk.bf16.gmra.mxu2 %vm585_vm2, %v2672_v57  ;;  %2603 = vmatmul.msk.bf16.gmra.mxu3 %vm585_vm2, %v2688_v58 }
  0xa7   : > { %2268 = vmatmul.msk.bf16.gmra.mxu0 %vm585_vm2, %v2641_v59  ;;  %2380 = vmatmul.msk.bf16.gmra.mxu1 %vm585_vm2, %v2657_v60 }
  0xa8   : > { %2492 = vmatmul.msk.bf16.gmra.mxu2 %vm585_vm2, %v2673_v61  ;;  %2604 = vmatmul.msk.bf16.gmra.mxu3 %vm585_vm2, %v2689_v62 }
  0xb7   : > { %2269 = vmatmul.msk.bf16.gmra.mxu0 %vm585_vm2, %v2642_v63  ;;  %2381 = vmatmul.msk.bf16.gmra.mxu1 %vm585_vm2, %v2658_v0 }
  0xb8   : > { %2493 = vmatmul.msk.bf16.gmra.mxu2 %vm585_vm2, %v2674_v1  ;;  %2605 = vmatmul.msk.bf16.gmra.mxu3 %vm585_vm2, %v2690_v2 }
  0xc7   : > { %2270 = vmatmul.msk.bf16.gmra.mxu0 %vm585_vm2, %v2643_v3  ;;  %2382 = vmatmul.msk.bf16.gmra.mxu1 %vm585_vm2, %v2659_v4 }
  0xc8   : > { %2494 = vmatmul.msk.bf16.gmra.mxu2 %vm585_vm2, %v2675_v5  ;;  %2606 = vmatmul.msk.bf16.gmra.mxu3 %vm585_vm2, %v2691_v6 }
  0xd7   : > { %2271 = vmatmul.msk.bf16.gmra.mxu0 %vm585_vm2, %v2644_v7  ;;  %2383 = vmatmul.msk.bf16.gmra.mxu1 %vm585_vm2, %v2660_v8 }
  0xd8   : > { %2495 = vmatmul.msk.bf16.gmra.mxu2 %vm585_vm2, %v2676_v9  ;;  %2607 = vmatmul.msk.bf16.gmra.mxu3 %vm585_vm2, %v2692_v10  ;;  %v2647_v10 = vld [vmem:[%s3230_s8 + $0x50] sm:$0xff] }
  0xe4   : > { %v650_v14 = vpop.f32.mrf.mxu0  ;;  %v932_v15 = vpop.f32.mrf.mxu1 }
  0xe5   : > { %v651_v18 = vadd.f32 %v3299_v11, %v650_v14  ;;  %v933_v19 = vadd.f32 %v3299_v11, %v932_v15 }
  0xe7   : > { %2272 = vmatmul.msk.bf16.gmra.mxu0 %vm585_vm2, %v2645_v12  ;;  %2384 = vmatmul.msk.bf16.gmra.mxu1 %vm585_vm2, %v2661_v13  ;;  %v730_v20 = vmax.f32 %v651_v18, 0.0  ;;  %v1012_v21 = vmax.f32 %v933_v19, 0.0  ;;  %v2663_v12 = vld [vmem:[%s3230_s8 + $0xd0] sm:$0xff] }
  0xe8   : > { %2496 = vmatmul.msk.bf16.gmra.mxu2 %vm585_vm2, %v2677_v16  ;;  %2608 = vmatmul.msk.bf16.gmra.mxu3 %vm585_vm2, %v2693_v17  ;;  %v2679_v19 = vld [vmem:[%s3230_s8 + $0x150] sm:$0xff] }
  0xe9   : > { %v1044_v28 = vmax.f32 %v730_v20, %v1012_v21  ;;  %v2695_v20 = vld [vmem:[%s3230_s8 + $0x1d0] sm:$0xff] }
  0xeb   : > { %v1246_v22 = vpop.f32.mrf.mxu2  ;;  %v1528_v23 = vpop.f32.mrf.mxu3 }
  0xec   : > { %v1247_v24 = vadd.f32 %v3299_v11, %v1246_v22  ;;  %v1529_v25 = vadd.f32 %v3299_v11, %v1528_v23  ;;  %v652_v26 = vpop.f32.mrf.mxu0  ;;  %v934_v27 = vpop.f32.mrf.mxu1 }
  0xed   : > { %v653_v31 = vadd.f32 %v3299_v11, %v652_v26  ;;  %v935_v33 = vadd.f32 %v3299_v11, %v934_v27 }
  0xee   : > { %v1326_v29 = vmax.f32 %v1247_v24, 0.0  ;;  %v1608_v30 = vmax.f32 %v1529_v25, 0.0 }
  0xef   : > { %v731_v35 = vmax.f32 %v653_v31, 0.0  ;;  %v1013_v41 = vmax.f32 %v935_v33, 0.0 }
  0xf0   : > { %v1640_v32 = vmax.f32 %v1326_v29, %v1608_v30 }
  0xf1   : > { %v1045_v52 = vmax.f32 %v731_v35, %v1013_v41 }
  0xf2   : > { %v1672_v34 = vmax.f32 %v1044_v28, %v1640_v32 }
  0xf3   : > { %v1248_v36 = vpop.f32.mrf.mxu2  ;;  %v1530_v37 = vpop.f32.mrf.mxu3 }
  0xf4   : > { %v1704_v40 = vpack.c.bf16 %v1672_v34, %v1672_v34  ;;  %v1249_v42 = vadd.f32 %v3299_v11, %v1248_v36  ;;  %v1531_v43 = vadd.f32 %v3299_v11, %v1530_v37  ;;  %v655_v44 = vpop.f32.mrf.mxu0  ;;  %v937_v45 = vpop.f32.mrf.mxu1 }
  0xf5   : > { %v656_v50 = vadd.f32 %v3299_v11, %v655_v44  ;;  %v938_v51 = vadd.f32 %v3299_v11, %v937_v45 }
  0xf6   : > { %1737 = vst.msk [vmem:[%s3323_s12] sm:$0xf] %vm1736_vm3, %v1704_v40  ;;  %v1327_v48 = vmax.f32 %v1249_v42, 0.0  ;;  %v1609_v49 = vmax.f32 %v1531_v43, 0.0 }
  0xf7   : > { %2273 = vmatmul.msk.bf16.gmra.mxu0 %vm585_vm2, %v2646_v38  ;;  %2385 = vmatmul.msk.bf16.gmra.mxu1 %vm585_vm2, %v2662_v39  ;;  %v732_v55 = vmax.f32 %v656_v50, 0.0  ;;  %v1014_v56 = vmax.f32 %v938_v51, 0.0 }
  0xf8   : > { %v1641_v53 = vmax.f32 %v1327_v48, %v1609_v49  ;;  %2497 = vmatmul.msk.bf16.gmra.mxu2 %vm585_vm2, %v2678_v46  ;;  %2609 = vmatmul.msk.bf16.gmra.mxu3 %vm585_vm2, %v2694_v47  ;;  %v2648_v47 = vld [vmem:[%s3230_s8 + $0x58] sm:$0xff] }
  0xf9   : > { %v1046_v0 = vmax.f32 %v732_v55, %v1014_v56  ;;  %v2664_v48 = vld [vmem:[%s3230_s8 + $0xd8] sm:$0xff] }
  0xfa   : > { %v1673_v54 = vmax.f32 %v1045_v52, %v1641_v53  ;;  %v2680_v55 = vld [vmem:[%s3230_s8 + $0x158] sm:$0xff] }
  0xfb   : > { %v1251_v57 = vpop.f32.mrf.mxu2  ;;  %v1533_v58 = vpop.f32.mrf.mxu3  ;;  %v2696_v56 = vld [vmem:[%s3230_s8 + $0x1d8] sm:$0xff] }
  0xfc   : > { %v1705_v59 = vpack.c.bf16 %v1673_v54, %v1673_v54  ;;  %v1252_v60 = vadd.f32 %v3299_v11, %v1251_v57  ;;  %v1534_v61 = vadd.f32 %v3299_v11, %v1533_v58  ;;  %v657_v62 = vpop.f32.mrf.mxu0  ;;  %v939_v63 = vpop.f32.mrf.mxu1 }
  0xfd   : > { %v658_v3 = vadd.f32 %v3299_v11, %v657_v62  ;;  %v940_v5 = vadd.f32 %v3299_v11, %v939_v63 }
  0xfe   : > { %1738 = vst.msk [vmem:[%s3323_s12 + $0x4] sm:$0xf] %vm1736_vm3, %v1705_v59  ;;  %v1328_v1 = vmax.f32 %v1252_v60, 0.0  ;;  %v1610_v2 = vmax.f32 %v1534_v61, 0.0 }
  0xff   : > { %v733_v7 = vmax.f32 %v658_v3, 0.0  ;;  %v1015_v14 = vmax.f32 %v940_v5, 0.0 }
 0x100   : > { %v1642_v4 = vmax.f32 %v1328_v1, %v1610_v2 }
 0x101   : > { %v1047_v25 = vmax.f32 %v733_v7, %v1015_v14 }
 0x102   : > { %v1674_v6 = vmax.f32 %v1046_v0, %v1642_v4 }
 0x103   : > { %v1253_v8 = vpop.f32.mrf.mxu2  ;;  %v1535_v9 = vpop.f32.mrf.mxu3 }
 0x104   : > { %v1706_v13 = vpack.c.bf16 %v1674_v6, %v1674_v6  ;;  %v1254_v15 = vadd.f32 %v3299_v11, %v1253_v8  ;;  %v1536_v16 = vadd.f32 %v3299_v11, %v1535_v9  ;;  %v660_v17 = vpop.f32.mrf.mxu0  ;;  %v942_v18 = vpop.f32.mrf.mxu1 }
 0x105   : > { %v661_v23 = vadd.f32 %v3299_v11, %v660_v17  ;;  %v943_v24 = vadd.f32 %v3299_v11, %v942_v18 }
 0x106   : > { %1739 = vst.msk [vmem:[%s3323_s12 + $0x8] sm:$0xf] %vm1736_vm3, %v1706_v13  ;;  %v1329_v21 = vmax.f32 %v1254_v15, 0.0  ;;  %v1611_v22 = vmax.f32 %v1536_v16, 0.0 }
 0x107   : > { %2274 = vmatmul.msk.bf16.gmra.mxu0 %vm585_vm2, %v2647_v10  ;;  %2386 = vmatmul.msk.bf16.gmra.mxu1 %vm585_vm2, %v2663_v12  ;;  %v734_v28 = vmax.f32 %v661_v23, 0.0  ;;  %v1016_v29 = vmax.f32 %v943_v24, 0.0 }
 0x108   : > { %v1643_v26 = vmax.f32 %v1329_v21, %v1611_v22  ;;  %2498 = vmatmul.msk.bf16.gmra.mxu2 %vm585_vm2, %v2679_v19  ;;  %2610 = vmatmul.msk.bf16.gmra.mxu3 %vm585_vm2, %v2695_v20  ;;  %v2649_v20 = vld [vmem:[%s3230_s8 + $0x60] sm:$0xff] }
 0x109   : > { %v1048_v37 = vmax.f32 %v734_v28, %v1016_v29  ;;  %v2665_v21 = vld [vmem:[%s3230_s8 + $0xe0] sm:$0xff] }
 0x10a   : > { %v1675_v27 = vmax.f32 %v1047_v25, %v1643_v26  ;;  %v2681_v28 = vld [vmem:[%s3230_s8 + $0x160] sm:$0xff] }
 0x10b   : > { %v1256_v30 = vpop.f32.mrf.mxu2  ;;  %v1538_v31 = vpop.f32.mrf.mxu3  ;;  %v2697_v29 = vld [vmem:[%s3230_s8 + $0x1e0] sm:$0xff] }
 0x10c   : > { %v1707_v32 = vpack.c.bf16 %v1675_v27, %v1675_v27  ;;  %v1257_v33 = vadd.f32 %v3299_v11, %v1256_v30  ;;  %v1539_v34 = vadd.f32 %v3299_v11, %v1538_v31  ;;  %v662_v35 = vpop.f32.mrf.mxu0  ;;  %v944_v36 = vpop.f32.mrf.mxu1 }
 0x10d   : > { %v663_v40 = vadd.f32 %v3299_v11, %v662_v35  ;;  %v945_v42 = vadd.f32 %v3299_v11, %v944_v36 }
 0x10e   : > { %1740 = vst.msk [vmem:[%s3323_s12 + $0xc] sm:$0xf] %vm1736_vm3, %v1707_v32  ;;  %v1330_v38 = vmax.f32 %v1257_v33, 0.0  ;;  %v1612_v39 = vmax.f32 %v1539_v34, 0.0 }
 0x10f   : > { %v735_v44 = vmax.f32 %v663_v40, 0.0  ;;  %v1017_v50 = vmax.f32 %v945_v42, 0.0 }
 0x110   : > { %v1644_v41 = vmax.f32 %v1330_v38, %v1612_v39 }
 0x111   : > { %v1049_v61 = vmax.f32 %v735_v44, %v1017_v50 }
 0x112   : > { %v1676_v43 = vmax.f32 %v1048_v37, %v1644_v41 }
 0x113   : > { %v1258_v45 = vpop.f32.mrf.mxu2  ;;  %v1540_v46 = vpop.f32.mrf.mxu3 }
 0x114   : > { %v1708_v49 = vpack.c.bf16 %v1676_v43, %v1676_v43  ;;  %v1259_v51 = vadd.f32 %v3299_v11, %v1258_v45  ;;  %v1541_v52 = vadd.f32 %v3299_v11, %v1540_v46  ;;  %v665_v53 = vpop.f32.mrf.mxu0  ;;  %v947_v54 = vpop.f32.mrf.mxu1 }
 0x115   : > { %v666_v59 = vadd.f32 %v3299_v11, %v665_v53  ;;  %v948_v60 = vadd.f32 %v3299_v11, %v947_v54 }
 0x116   : > { %1741 = vst.msk [vmem:[%s3323_s12 + $0x10] sm:$0xf] %vm1736_vm3, %v1708_v49  ;;  %v1331_v57 = vmax.f32 %v1259_v51, 0.0  ;;  %v1613_v58 = vmax.f32 %v1541_v52, 0.0 }
 0x117   : > { %2275 = vmatmul.msk.bf16.gmra.mxu0 %vm585_vm2, %v2648_v47  ;;  %2387 = vmatmul.msk.bf16.gmra.mxu1 %vm585_vm2, %v2664_v48  ;;  %v736_v0 = vmax.f32 %v666_v59, 0.0  ;;  %v1018_v1 = vmax.f32 %v948_v60, 0.0 }
 0x118   : > { %v1645_v62 = vmax.f32 %v1331_v57, %v1613_v58  ;;  %2499 = vmatmul.msk.bf16.gmra.mxu2 %vm585_vm2, %v2680_v55  ;;  %2611 = vmatmul.msk.bf16.gmra.mxu3 %vm585_vm2, %v2696_v56  ;;  %v2650_v56 = vld [vmem:[%s3230_s8 + $0x68] sm:$0xff] }
 0x119   : > { %v1050_v9 = vmax.f32 %v736_v0, %v1018_v1  ;;  %v2666_v57 = vld [vmem:[%s3230_s8 + $0xe8] sm:$0xff] }
 0x11a   : > { %v1677_v63 = vmax.f32 %v1049_v61, %v1645_v62  ;;  %v2682_v0 = vld [vmem:[%s3230_s8 + $0x168] sm:$0xff] }
 0x11b   : > { %v1261_v2 = vpop.f32.mrf.mxu2  ;;  %v1543_v3 = vpop.f32.mrf.mxu3  ;;  %v2698_v1 = vld [vmem:[%s3230_s8 + $0x1e8] sm:$0xff] }
 0x11c   : > { %v1709_v4 = vpack.c.bf16 %v1677_v63, %v1677_v63  ;;  %v1262_v5 = vadd.f32 %v3299_v11, %v1261_v2  ;;  %v1544_v6 = vadd.f32 %v3299_v11, %v1543_v3  ;;  %v667_v7 = vpop.f32.mrf.mxu0  ;;  %v949_v8 = vpop.f32.mrf.mxu1 }
 0x11d   : > { %v668_v13 = vadd.f32 %v3299_v11, %v667_v7  ;;  %v950_v15 = vadd.f32 %v3299_v11, %v949_v8 }
 0x11e   : > { %1742 = vst.msk [vmem:[%s3323_s12 + $0x14] sm:$0xf] %vm1736_vm3, %v1709_v4  ;;  %v1332_v10 = vmax.f32 %v1262_v5, 0.0  ;;  %v1614_v12 = vmax.f32 %v1544_v6, 0.0 }
 0x11f   : > { %v737_v17 = vmax.f32 %v668_v13, 0.0  ;;  %v1019_v23 = vmax.f32 %v950_v15, 0.0 }
 0x120   : > { %v1646_v14 = vmax.f32 %v1332_v10, %v1614_v12 }
 0x121   : > { %v1051_v34 = vmax.f32 %v737_v17, %v1019_v23 }
 0x122   : > { %v1678_v16 = vmax.f32 %v1050_v9, %v1646_v14 }
 0x123   : > { %v1263_v18 = vpop.f32.mrf.mxu2  ;;  %v1545_v19 = vpop.f32.mrf.mxu3 }
 0x124   : > { %v1710_v22 = vpack.c.bf16 %v1678_v16, %v1678_v16  ;;  %v1264_v24 = vadd.f32 %v3299_v11, %v1263_v18  ;;  %v1546_v25 = vadd.f32 %v3299_v11, %v1545_v19  ;;  %v670_v26 = vpop.f32.mrf.mxu0  ;;  %v952_v27 = vpop.f32.mrf.mxu1 }
 0x125   : > { %v671_v32 = vadd.f32 %v3299_v11, %v670_v26  ;;  %v953_v33 = vadd.f32 %v3299_v11, %v952_v27 }
 0x126   : > { %1743 = vst.msk [vmem:[%s3323_s12 + $0x18] sm:$0xf] %vm1736_vm3, %v1710_v22  ;;  %v1333_v30 = vmax.f32 %v1264_v24, 0.0  ;;  %v1615_v31 = vmax.f32 %v1546_v25, 0.0 }
 0x127   : > { %2276 = vmatmul.msk.bf16.gmra.mxu0 %vm585_vm2, %v2649_v20  ;;  %2388 = vmatmul.msk.bf16.gmra.mxu1 %vm585_vm2, %v2665_v21  ;;  %v738_v37 = vmax.f32 %v671_v32, 0.0  ;;  %v1020_v38 = vmax.f32 %v953_v33, 0.0 }
 0x128   : > { %v1647_v35 = vmax.f32 %v1333_v30, %v1615_v31  ;;  %2500 = vmatmul.msk.bf16.gmra.mxu2 %vm585_vm2, %v2681_v28  ;;  %2612 = vmatmul.msk.bf16.gmra.mxu3 %vm585_vm2, %v2697_v29  ;;  %v2651_v29 = vld [vmem:[%s3230_s8 + $0x70] sm:$0xff] }
 0x129   : > { %v1052_v46 = vmax.f32 %v738_v37, %v1020_v38  ;;  %v2667_v30 = vld [vmem:[%s3230_s8 + $0xf0] sm:$0xff] }
 0x12a   : > { %v1679_v36 = vmax.f32 %v1051_v34, %v1647_v35  ;;  %v2683_v37 = vld [vmem:[%s3230_s8 + $0x170] sm:$0xff] }
 0x12b   : > { %v1266_v39 = vpop.f32.mrf.mxu2  ;;  %v1548_v40 = vpop.f32.mrf.mxu3  ;;  %v2699_v38 = vld [vmem:[%s3230_s8 + $0x1f0] sm:$0xff] }
 0x12c   : > { %v1711_v41 = vpack.c.bf16 %v1679_v36, %v1679_v36  ;;  %v1267_v42 = vadd.f32 %v3299_v11, %v1266_v39  ;;  %v1549_v43 = vadd.f32 %v3299_v11, %v1548_v40  ;;  %v672_v44 = vpop.f32.mrf.mxu0  ;;  %v954_v45 = vpop.f32.mrf.mxu1 }
 0x12d   : > { %v673_v49 = vadd.f32 %v3299_v11, %v672_v44  ;;  %v955_v51 = vadd.f32 %v3299_v11, %v954_v45 }
 0x12e   : > { %1744 = vst.msk [vmem:[%s3323_s12 + $0x1c] sm:$0xf] %vm1736_vm3, %v1711_v41  ;;  %v1334_v47 = vmax.f32 %v1267_v42, 0.0  ;;  %v1616_v48 = vmax.f32 %v1549_v43, 0.0 }
 0x12f   : > { %v739_v53 = vmax.f32 %v673_v49, 0.0  ;;  %v1021_v59 = vmax.f32 %v955_v51, 0.0 }
 0x130   : > { %v1648_v50 = vmax.f32 %v1334_v47, %v1616_v48 }
 0x131   : > { %v1053_v6 = vmax.f32 %v739_v53, %v1021_v59 }
 0x132   : > { %v1680_v52 = vmax.f32 %v1052_v46, %v1648_v50 }
 0x133   : > { %v1268_v54 = vpop.f32.mrf.mxu2  ;;  %v1550_v55 = vpop.f32.mrf.mxu3 }
 0x134   : > { %v1712_v58 = vpack.c.bf16 %v1680_v52, %v1680_v52  ;;  %v1269_v60 = vadd.f32 %v3299_v11, %v1268_v54  ;;  %v1551_v61 = vadd.f32 %v3299_v11, %v1550_v55  ;;  %v675_v62 = vpop.f32.mrf.mxu0  ;;  %v957_v63 = vpop.f32.mrf.mxu1 }
 0x135   : > { %v676_v4 = vadd.f32 %v3299_v11, %v675_v62  ;;  %v958_v5 = vadd.f32 %v3299_v11, %v957_v63 }
 0x136   : > { %1745 = vst.msk [vmem:[%s3323_s12 + $0x20] sm:$0xf] %vm1736_vm3, %v1712_v58  ;;  %v1335_v2 = vmax.f32 %v1269_v60, 0.0  ;;  %v1617_v3 = vmax.f32 %v1551_v61, 0.0 }
 0x137   : > { %2277 = vmatmul.msk.bf16.gmra.mxu0 %vm585_vm2, %v2650_v56  ;;  %2389 = vmatmul.msk.bf16.gmra.mxu1 %vm585_vm2, %v2666_v57  ;;  %v740_v9 = vmax.f32 %v676_v4, 0.0  ;;  %v1022_v10 = vmax.f32 %v958_v5, 0.0 }
 0x138   : > { %v1649_v7 = vmax.f32 %v1335_v2, %v1617_v3  ;;  %2501 = vmatmul.msk.bf16.gmra.mxu2 %vm585_vm2, %v2682_v0  ;;  %2613 = vmatmul.msk.bf16.gmra.mxu3 %vm585_vm2, %v2698_v1  ;;  %v2652_v1 = vld [vmem:[%s3230_s8 + $0x78] sm:$0xff] }
 0x139   : > { %v1054_v19 = vmax.f32 %v740_v9, %v1022_v10  ;;  %v2668_v2 = vld [vmem:[%s3230_s8 + $0xf8] sm:$0xff] }
 0x13a   : > { %v1681_v8 = vmax.f32 %v1053_v6, %v1649_v7  ;;  %v2684_v9 = vld [vmem:[%s3230_s8 + $0x178] sm:$0xff] }
 0x13b   : > { %v1271_v12 = vpop.f32.mrf.mxu2  ;;  %v1553_v13 = vpop.f32.mrf.mxu3  ;;  %v2700_v10 = vld [vmem:[%s3230_s8 + $0x1f8] sm:$0xff] }
 0x13c   : > { %v1713_v14 = vpack.c.bf16 %v1681_v8, %v1681_v8  ;;  %v1272_v15 = vadd.f32 %v3299_v11, %v1271_v12  ;;  %v1554_v16 = vadd.f32 %v3299_v11, %v1553_v13  ;;  %v677_v17 = vpop.f32.mrf.mxu0  ;;  %v959_v18 = vpop.f32.mrf.mxu1 }
 0x13d   : > { %v678_v22 = vadd.f32 %v3299_v11, %v677_v17  ;;  %v960_v24 = vadd.f32 %v3299_v11, %v959_v18 }
 0x13e   : > { %1746 = vst.msk [vmem:[%s3323_s12 + $0x24] sm:$0xf] %vm1736_vm3, %v1713_v14  ;;  %v1336_v20 = vmax.f32 %v1272_v15, 0.0  ;;  %v1618_v21 = vmax.f32 %v1554_v16, 0.0 }
 0x13f   : > { %v741_v26 = vmax.f32 %v678_v22, 0.0  ;;  %v1023_v32 = vmax.f32 %v960_v24, 0.0 }
 0x140   : > { %v1650_v23 = vmax.f32 %v1336_v20, %v1618_v21 }
 0x141   : > { %v1055_v43 = vmax.f32 %v741_v26, %v1023_v32 }
 0x142   : > { %v1682_v25 = vmax.f32 %v1054_v19, %v1650_v23 }
 0x143   : > { %v1273_v27 = vpop.f32.mrf.mxu2  ;;  %v1555_v28 = vpop.f32.mrf.mxu3 }
 0x144   : > { %v1714_v31 = vpack.c.bf16 %v1682_v25, %v1682_v25  ;;  %v1274_v33 = vadd.f32 %v3299_v11, %v1273_v27  ;;  %v1556_v34 = vadd.f32 %v3299_v11, %v1555_v28  ;;  %v680_v35 = vpop.f32.mrf.mxu0  ;;  %v962_v36 = vpop.f32.mrf.mxu1 }
 0x145   : > { %v681_v41 = vadd.f32 %v3299_v11, %v680_v35  ;;  %v963_v42 = vadd.f32 %v3299_v11, %v962_v36 }
 0x146   : > { %1747 = vst.msk [vmem:[%s3323_s12 + $0x28] sm:$0xf] %vm1736_vm3, %v1714_v31  ;;  %v1337_v39 = vmax.f32 %v1274_v33, 0.0  ;;  %v1619_v40 = vmax.f32 %v1556_v34, 0.0 }
 0x147   : > { %2278 = vmatmul.msk.bf16.gmra.mxu0 %vm585_vm2, %v2651_v29  ;;  %2390 = vmatmul.msk.bf16.gmra.mxu1 %vm585_vm2, %v2667_v30  ;;  %v742_v46 = vmax.f32 %v681_v41, 0.0  ;;  %v1024_v47 = vmax.f32 %v963_v42, 0.0 }
 0x148   : > { %v1651_v44 = vmax.f32 %v1337_v39, %v1619_v40  ;;  %2502 = vmatmul.msk.bf16.gmra.mxu2 %vm585_vm2, %v2683_v37  ;;  %2614 = vmatmul.msk.bf16.gmra.mxu3 %vm585_vm2, %v2699_v38 }
 0x149   : > { %v1056_v55 = vmax.f32 %v742_v46, %v1024_v47 }
 0x14a   : > { %v1683_v45 = vmax.f32 %v1055_v43, %v1651_v44 }
 0x14b   : > { %v1276_v48 = vpop.f32.mrf.mxu2  ;;  %v1558_v49 = vpop.f32.mrf.mxu3 }
 0x14c   : > { %v1715_v50 = vpack.c.bf16 %v1683_v45, %v1683_v45  ;;  %v1277_v51 = vadd.f32 %v3299_v11, %v1276_v48  ;;  %v1559_v52 = vadd.f32 %v3299_v11, %v1558_v49  ;;  %v682_v53 = vpop.f32.mrf.mxu0  ;;  %v964_v54 = vpop.f32.mrf.mxu1 }
 0x14d   : > { %v683_v58 = vadd.f32 %v3299_v11, %v682_v53  ;;  %v965_v60 = vadd.f32 %v3299_v11, %v964_v54 }
 0x14e   : > { %1748 = vst.msk [vmem:[%s3323_s12 + $0x2c] sm:$0xf] %vm1736_vm3, %v1715_v50  ;;  %v1338_v56 = vmax.f32 %v1277_v51, 0.0  ;;  %v1620_v57 = vmax.f32 %v1559_v52, 0.0 }
 0x14f   : > { %v743_v62 = vmax.f32 %v683_v58, 0.0  ;;  %v1025_v4 = vmax.f32 %v965_v60, 0.0 }
 0x150   : > { %v1652_v59 = vmax.f32 %v1338_v56, %v1620_v57 }
 0x151   : > { %v1057_v16 = vmax.f32 %v743_v62, %v1025_v4 }
 0x152   : > { %v1684_v61 = vmax.f32 %v1056_v55, %v1652_v59 }
 0x153   : > { %v1278_v63 = vpop.f32.mrf.mxu2  ;;  %v1560_v0 = vpop.f32.mrf.mxu3 }
 0x154   : > { %v1716_v3 = vpack.c.bf16 %v1684_v61, %v1684_v61  ;;  %v1279_v5 = vadd.f32 %v3299_v11, %v1278_v63  ;;  %v1561_v6 = vadd.f32 %v3299_v11, %v1560_v0  ;;  %v685_v7 = vpop.f32.mrf.mxu0  ;;  %v967_v8 = vpop.f32.mrf.mxu1 }
 0x155   : > { %v686_v14 = vadd.f32 %v3299_v11, %v685_v7  ;;  %v968_v15 = vadd.f32 %v3299_v11, %v967_v8 }
 0x156   : > { %1749 = vst.msk [vmem:[%s3323_s12 + $0x30] sm:$0xf] %vm1736_vm3, %v1716_v3  ;;  %v1339_v12 = vmax.f32 %v1279_v5, 0.0  ;;  %v1621_v13 = vmax.f32 %v1561_v6, 0.0 }
 0x157   : > { %2279 = vmatmul.msk.bf16.gmra.mxu0 %vm585_vm2, %v2652_v1  ;;  %2391 = vmatmul.msk.bf16.gmra.mxu1 %vm585_vm2, %v2668_v2  ;;  %v744_v19 = vmax.f32 %v686_v14, 0.0  ;;  %v1026_v20 = vmax.f32 %v968_v15, 0.0 }
 0x158   : > { %v1653_v17 = vmax.f32 %v1339_v12, %v1621_v13  ;;  %2503 = vmatmul.msk.bf16.gmra.mxu2 %vm585_vm2, %v2684_v9  ;;  %2615 = vmatmul.msk.bf16.gmra.mxu3 %vm585_vm2, %v2700_v10 }
 0x159   : > { %v1058_v28 = vmax.f32 %v744_v19, %v1026_v20 }
 0x15a   : > { %v1685_v18 = vmax.f32 %v1057_v16, %v1653_v17 }
 0x15b   : > { %v1281_v21 = vpop.f32.mrf.mxu2  ;;  %v1563_v22 = vpop.f32.mrf.mxu3 }
 0x15c   : > { %v1717_v23 = vpack.c.bf16 %v1685_v18, %v1685_v18  ;;  %v1282_v24 = vadd.f32 %v3299_v11, %v1281_v21  ;;  %v1564_v25 = vadd.f32 %v3299_v11, %v1563_v22  ;;  %v687_v26 = vpop.f32.mrf.mxu0  ;;  %v969_v27 = vpop.f32.mrf.mxu1 }
 0x15d   : > { %v688_v31 = vadd.f32 %v3299_v11, %v687_v26  ;;  %v970_v33 = vadd.f32 %v3299_v11, %v969_v27 }
 0x15e   : > { %1750 = vst.msk [vmem:[%s3323_s12 + $0x34] sm:$0xf] %vm1736_vm3, %v1717_v23  ;;  %v1340_v29 = vmax.f32 %v1282_v24, 0.0  ;;  %v1622_v30 = vmax.f32 %v1564_v25, 0.0 }
 0x15f   : > { %v745_v35 = vmax.f32 %v688_v31, 0.0  ;;  %v1027_v39 = vmax.f32 %v970_v33, 0.0 }
 0x160   : > { %v1654_v32 = vmax.f32 %v1340_v29, %v1622_v30 }
 0x161   : > { %v1059_v48 = vmax.f32 %v745_v35, %v1027_v39 }
 0x162   : > { %v1686_v34 = vmax.f32 %v1058_v28, %v1654_v32 }
 0x163   : > { %v1283_v36 = vpop.f32.mrf.mxu2  ;;  %v1565_v37 = vpop.f32.mrf.mxu3 }
 0x164   : > { %v1718_v38 = vpack.c.bf16 %v1686_v34, %v1686_v34  ;;  %v1284_v40 = vadd.f32 %v3299_v11, %v1283_v36  ;;  %v1566_v41 = vadd.f32 %v3299_v11, %v1565_v37  ;;  %v690_v42 = vpop.f32.mrf.mxu0  ;;  %v972_v43 = vpop.f32.mrf.mxu1 }
 0x165   : > { %v691_v46 = vadd.f32 %v3299_v11, %v690_v42  ;;  %v973_v47 = vadd.f32 %v3299_v11, %v972_v43 }
 0x166   : > { %1751 = vst.msk [vmem:[%s3323_s12 + $0x38] sm:$0xf] %vm1736_vm3, %v1718_v38  ;;  %v1341_v44 = vmax.f32 %v1284_v40, 0.0  ;;  %v1623_v45 = vmax.f32 %v1566_v41, 0.0 }
 0x167   : > { %v746_v51 = vmax.f32 %v691_v46, 0.0  ;;  %v1028_v52 = vmax.f32 %v973_v47, 0.0 }
 0x168   : > { %v1655_v49 = vmax.f32 %v1341_v44, %v1623_v45 }
 0x169   : > { %v1060_v60 = vmax.f32 %v746_v51, %v1028_v52 }
 0x16a   : > { %v1687_v50 = vmax.f32 %v1059_v48, %v1655_v49 }
 0x16b   : > { %v1286_v53 = vpop.f32.mrf.mxu2  ;;  %v1568_v54 = vpop.f32.mrf.mxu3 }
 0x16c   : > { %v1719_v55 = vpack.c.bf16 %v1687_v50, %v1687_v50  ;;  %v1287_v56 = vadd.f32 %v3299_v11, %v1286_v53  ;;  %v1569_v57 = vadd.f32 %v3299_v11, %v1568_v54  ;;  %v692_v58 = vpop.f32.mrf.mxu0  ;;  %v974_v59 = vpop.f32.mrf.mxu1 }
 0x16d   : > { %v693_v63 = vadd.f32 %v3299_v11, %v692_v58  ;;  %v975_v1 = vadd.f32 %v3299_v11, %v974_v59 }
 0x16e   : > { %1752 = vst.msk [vmem:[%s3323_s12 + $0x3c] sm:$0xf] %vm1736_vm3, %v1719_v55  ;;  %v1342_v61 = vmax.f32 %v1287_v56, 0.0  ;;  %v1624_v62 = vmax.f32 %v1569_v57, 0.0 }
 0x16f   : > { %v747_v3 = vmax.f32 %v693_v63, 0.0  ;;  %v1029_v7 = vmax.f32 %v975_v1, 0.0 }
 0x170   : > { %v1656_v0 = vmax.f32 %v1342_v61, %v1624_v62 }
 0x171   : > { %v1061_v17 = vmax.f32 %v747_v3, %v1029_v7 }
 0x172   : > { %v1688_v2 = vmax.f32 %v1060_v60, %v1656_v0 }
 0x173   : > { %v1288_v4 = vpop.f32.mrf.mxu2  ;;  %v1570_v5 = vpop.f32.mrf.mxu3 }
 0x174   : > { %v1720_v6 = vpack.c.bf16 %v1688_v2, %v1688_v2  ;;  %v1289_v8 = vadd.f32 %v3299_v11, %v1288_v4  ;;  %v1571_v9 = vadd.f32 %v3299_v11, %v1570_v5  ;;  %v695_v10 = vpop.f32.mrf.mxu0  ;;  %v977_v12 = vpop.f32.mrf.mxu1 }
 0x175   : > { %v696_v15 = vadd.f32 %v3299_v11, %v695_v10  ;;  %v978_v16 = vadd.f32 %v3299_v11, %v977_v12 }
 0x176   : > { %1753 = vst.msk [vmem:[%s3323_s12 + $0x40] sm:$0xf] %vm1736_vm3, %v1720_v6  ;;  %v1343_v13 = vmax.f32 %v1289_v8, 0.0  ;;  %v1625_v14 = vmax.f32 %v1571_v9, 0.0 }
 0x177   : > { %v748_v20 = vmax.f32 %v696_v15, 0.0  ;;  %v1030_v21 = vmax.f32 %v978_v16, 0.0 }
 0x178   : > { %v1657_v18 = vmax.f32 %v1343_v13, %v1625_v14 }
 0x179   : > { %v1062_v29 = vmax.f32 %v748_v20, %v1030_v21 }
 0x17a   : > { %v1689_v19 = vmax.f32 %v1061_v17, %v1657_v18 }
 0x17b   : > { %v1291_v22 = vpop.f32.mrf.mxu2  ;;  %v1573_v23 = vpop.f32.mrf.mxu3 }
 0x17c   : > { %v1721_v24 = vpack.c.bf16 %v1689_v19, %v1689_v19  ;;  %v1292_v25 = vadd.f32 %v3299_v11, %v1291_v22  ;;  %v1574_v26 = vadd.f32 %v3299_v11, %v1573_v23  ;;  %v697_v27 = vpop.f32.mrf.mxu0  ;;  %v979_v28 = vpop.f32.mrf.mxu1 }
 0x17d   : > { %v698_v32 = vadd.f32 %v3299_v11, %v697_v27  ;;  %v980_v34 = vadd.f32 %v3299_v11, %v979_v28 }
 0x17e   : > { %1754 = vst.msk [vmem:[%s3323_s12 + $0x44] sm:$0xf] %vm1736_vm3, %v1721_v24  ;;  %v1344_v30 = vmax.f32 %v1292_v25, 0.0  ;;  %v1626_v31 = vmax.f32 %v1574_v26, 0.0 }
 0x17f   : > { %v749_v36 = vmax.f32 %v698_v32, 0.0  ;;  %v1031_v40 = vmax.f32 %v980_v34, 0.0 }
 0x180   : > { %v1658_v33 = vmax.f32 %v1344_v30, %v1626_v31 }
 0x181   : > { %v1063_v49 = vmax.f32 %v749_v36, %v1031_v40 }
 0x182   : > { %v1690_v35 = vmax.f32 %v1062_v29, %v1658_v33 }
 0x183   : > { %v1293_v37 = vpop.f32.mrf.mxu2  ;;  %v1575_v38 = vpop.f32.mrf.mxu3 }
 0x184   : > { %v1722_v39 = vpack.c.bf16 %v1690_v35, %v1690_v35  ;;  %v1294_v41 = vadd.f32 %v3299_v11, %v1293_v37  ;;  %v1576_v42 = vadd.f32 %v3299_v11, %v1575_v38  ;;  %v700_v43 = vpop.f32.mrf.mxu0  ;;  %v982_v44 = vpop.f32.mrf.mxu1 }
 0x185   : > { %v701_v47 = vadd.f32 %v3299_v11, %v700_v43  ;;  %v983_v48 = vadd.f32 %v3299_v11, %v982_v44 }
 0x186   : > { %1755 = vst.msk [vmem:[%s3323_s12 + $0x48] sm:$0xf] %vm1736_vm3, %v1722_v39  ;;  %v1345_v45 = vmax.f32 %v1294_v41, 0.0  ;;  %v1627_v46 = vmax.f32 %v1576_v42, 0.0 }
 0x187   : > { %v750_v52 = vmax.f32 %v701_v47, 0.0  ;;  %v1032_v53 = vmax.f32 %v983_v48, 0.0 }
 0x188   : > { %v1659_v50 = vmax.f32 %v1345_v45, %v1627_v46 }
 0x189   : > { %v1064_v61 = vmax.f32 %v750_v52, %v1032_v53 }
 0x18a   : > { %v1691_v51 = vmax.f32 %v1063_v49, %v1659_v50 }
 0x18b   : > { %v1296_v54 = vpop.f32.mrf.mxu2  ;;  %v1578_v55 = vpop.f32.mrf.mxu3 }
 0x18c   : > { %v1723_v56 = vpack.c.bf16 %v1691_v51, %v1691_v51  ;;  %v1297_v57 = vadd.f32 %v3299_v11, %v1296_v54  ;;  %v1579_v58 = vadd.f32 %v3299_v11, %v1578_v55  ;;  %v702_v59 = vpop.f32.mrf.mxu0  ;;  %v984_v60 = vpop.f32.mrf.mxu1 }
 0x18d   : > { %v703_v0 = vadd.f32 %v3299_v11, %v702_v59  ;;  %v985_v2 = vadd.f32 %v3299_v11, %v984_v60 }
 0x18e   : > { %1756 = vst.msk [vmem:[%s3323_s12 + $0x4c] sm:$0xf] %vm1736_vm3, %v1723_v56  ;;  %v1346_v62 = vmax.f32 %v1297_v57, 0.0  ;;  %v1628_v63 = vmax.f32 %v1579_v58, 0.0 }
 0x18f   : > { %v751_v4 = vmax.f32 %v703_v0, 0.0  ;;  %v1033_v8 = vmax.f32 %v985_v2, 0.0 }
 0x190   : > { %v1660_v1 = vmax.f32 %v1346_v62, %v1628_v63 }
 0x191   : > { %v1065_v18 = vmax.f32 %v751_v4, %v1033_v8 }
 0x192   : > { %v1692_v3 = vmax.f32 %v1064_v61, %v1660_v1 }
 0x193   : > { %v1298_v5 = vpop.f32.mrf.mxu2  ;;  %v1580_v6 = vpop.f32.mrf.mxu3 }
 0x194   : > { %v1724_v7 = vpack.c.bf16 %v1692_v3, %v1692_v3  ;;  %v1299_v9 = vadd.f32 %v3299_v11, %v1298_v5  ;;  %v1581_v10 = vadd.f32 %v3299_v11, %v1580_v6  ;;  %v705_v12 = vpop.f32.mrf.mxu0  ;;  %v987_v13 = vpop.f32.mrf.mxu1 }
 0x195   : > { %v706_v16 = vadd.f32 %v3299_v11, %v705_v12  ;;  %v988_v17 = vadd.f32 %v3299_v11, %v987_v13 }
 0x196   : > { %1757 = vst.msk [vmem:[%s3323_s12 + $0x50] sm:$0xf] %vm1736_vm3, %v1724_v7  ;;  %v1347_v14 = vmax.f32 %v1299_v9, 0.0  ;;  %v1629_v15 = vmax.f32 %v1581_v10, 0.0 }
 0x197   : > { %v752_v21 = vmax.f32 %v706_v16, 0.0  ;;  %v1034_v22 = vmax.f32 %v988_v17, 0.0 }
 0x198   : > { %v1661_v19 = vmax.f32 %v1347_v14, %v1629_v15 }
 0x199   : > { %v1066_v30 = vmax.f32 %v752_v21, %v1034_v22 }
 0x19a   : > { %v1693_v20 = vmax.f32 %v1065_v18, %v1661_v19 }
 0x19b   : > { %v1301_v23 = vpop.f32.mrf.mxu2  ;;  %v1583_v24 = vpop.f32.mrf.mxu3 }
 0x19c   : > { %v1725_v25 = vpack.c.bf16 %v1693_v20, %v1693_v20  ;;  %v1302_v26 = vadd.f32 %v3299_v11, %v1301_v23  ;;  %v1584_v27 = vadd.f32 %v3299_v11, %v1583_v24  ;;  %v707_v28 = vpop.f32.mrf.mxu0  ;;  %v989_v29 = vpop.f32.mrf.mxu1 }
 0x19d   : > { %v708_v33 = vadd.f32 %v3299_v11, %v707_v28  ;;  %v990_v35 = vadd.f32 %v3299_v11, %v989_v29 }
 0x19e   : > { %1758 = vst.msk [vmem:[%s3323_s12 + $0x54] sm:$0xf] %vm1736_vm3, %v1725_v25  ;;  %v1348_v31 = vmax.f32 %v1302_v26, 0.0  ;;  %v1630_v32 = vmax.f32 %v1584_v27, 0.0  ;;  %v3528_v27 = vld [vmem:[%s3710_s2] ss:$0 sm:$0xff] }
 0x19f   : > { %v753_v37 = vmax.f32 %v708_v33, 0.0  ;;  %v1035_v41 = vmax.f32 %v990_v35, 0.0 }
 0x1a0   : > { %v1662_v34 = vmax.f32 %v1348_v31, %v1630_v32 }
 0x1a1   : > { %v1067_v50 = vmax.f32 %v753_v37, %v1035_v41 }
 0x1a2   : > { %v1694_v36 = vmax.f32 %v1066_v30, %v1662_v34 }
 0x1a3   : > { %v1303_v38 = vpop.f32.mrf.mxu2  ;;  %v1585_v39 = vpop.f32.mrf.mxu3 }
 0x1a4   : > { %v1726_v40 = vpack.c.bf16 %v1694_v36, %v1694_v36  ;;  %v1304_v42 = vadd.f32 %v3299_v11, %v1303_v38  ;;  %v1586_v43 = vadd.f32 %v3299_v11, %v1585_v39  ;;  %v710_v44 = vpop.f32.mrf.mxu0  ;;  %v992_v45 = vpop.f32.mrf.mxu1 }
 0x1a5   : > { %v711_v48 = vadd.f32 %v3299_v11, %v710_v44  ;;  %v993_v49 = vadd.f32 %v3299_v11, %v992_v45 }
 0x1a6   : > { %1759 = vst.msk [vmem:[%s3323_s12 + $0x58] sm:$0xf] %vm1736_vm3, %v1726_v40  ;;  %v1349_v46 = vmax.f32 %v1304_v42, 0.0  ;;  %v1631_v47 = vmax.f32 %v1586_v43, 0.0 }
 0x1a7   : > { %v754_v53 = vmax.f32 %v711_v48, 0.0  ;;  %v1036_v54 = vmax.f32 %v993_v49, 0.0 }
 0x1a8   : > { %v1663_v51 = vmax.f32 %v1349_v46, %v1631_v47 }
 0x1a9   : > { %v1068_v62 = vmax.f32 %v754_v53, %v1036_v54 }
 0x1aa   : > { %v1695_v52 = vmax.f32 %v1067_v50, %v1663_v51 }
 0x1ab   : > { %v1306_v55 = vpop.f32.mrf.mxu2  ;;  %v1588_v56 = vpop.f32.mrf.mxu3 }
 0x1ac   : > { %v1727_v57 = vpack.c.bf16 %v1695_v52, %v1695_v52  ;;  %v1307_v58 = vadd.f32 %v3299_v11, %v1306_v55  ;;  %v1589_v59 = vadd.f32 %v3299_v11, %v1588_v56  ;;  %v712_v60 = vpop.f32.mrf.mxu0  ;;  %v994_v61 = vpop.f32.mrf.mxu1 }
 0x1ad   : > { %v713_v1 = vadd.f32 %v3299_v11, %v712_v60  ;;  %v995_v3 = vadd.f32 %v3299_v11, %v994_v61 }
 0x1ae   : > { %1760 = vst.msk [vmem:[%s3323_s12 + $0x5c] sm:$0xf] %vm1736_vm3, %v1727_v57  ;;  %v1350_v63 = vmax.f32 %v1307_v58, 0.0  ;;  %v1632_v0 = vmax.f32 %v1589_v59, 0.0 }
 0x1af   : > { %v755_v5 = vmax.f32 %v713_v1, 0.0  ;;  %v1037_v9 = vmax.f32 %v995_v3, 0.0 }
 0x1b0   : > { %v1664_v2 = vmax.f32 %v1350_v63, %v1632_v0 }
 0x1b1   : > { %v1069_v19 = vmax.f32 %v755_v5, %v1037_v9 }
 0x1b2   : > { %v1696_v4 = vmax.f32 %v1068_v62, %v1664_v2 }
 0x1b3   : > { %v1308_v6 = vpop.f32.mrf.mxu2  ;;  %v1590_v7 = vpop.f32.mrf.mxu3 }
 0x1b4   : > { %v1728_v8 = vpack.c.bf16 %v1696_v4, %v1696_v4  ;;  %v1309_v10 = vadd.f32 %v3299_v11, %v1308_v6  ;;  %v1591_v12 = vadd.f32 %v3299_v11, %v1590_v7  ;;  %v715_v13 = vpop.f32.mrf.mxu0  ;;  %v997_v14 = vpop.f32.mrf.mxu1 }
 0x1b5   : > { %v716_v17 = vadd.f32 %v3299_v11, %v715_v13  ;;  %v998_v18 = vadd.f32 %v3299_v11, %v997_v14 }
 0x1b6   : > { %1761 = vst.msk [vmem:[%s3323_s12 + $0x60] sm:$0xf] %vm1736_vm3, %v1728_v8  ;;  %v1351_v15 = vmax.f32 %v1309_v10, 0.0  ;;  %v1633_v16 = vmax.f32 %v1591_v12, 0.0 }
 0x1b7   : > { %v756_v22 = vmax.f32 %v716_v17, 0.0  ;;  %v1038_v23 = vmax.f32 %v998_v18, 0.0 }
 0x1b8   : > { %v1665_v20 = vmax.f32 %v1351_v15, %v1633_v16 }
 0x1b9   : > { %v1070_v11 = vmax.f32 %v756_v22, %v1038_v23 }
 0x1ba   : > { %v1697_v21 = vmax.f32 %v1069_v19, %v1665_v20 }
 0x1bb   : > { %v1311_v24 = vpop.f32.mrf.mxu2  ;;  %v1593_v25 = vpop.f32.mrf.mxu3 }
 0x1bc   : > { %v1729_v26 = vpack.c.bf16 %v1697_v21, %v1697_v21  ;;  %v1312_v28 = vadd.f32 %v3528_v27, %v1311_v24  ;;  %v1594_v29 = vadd.f32 %v3528_v27, %v1593_v25  ;;  %v717_v30 = vpop.f32.mrf.mxu0  ;;  %v999_v31 = vpop.f32.mrf.mxu1 }
 0x1bd   : > { %v718_v34 = vadd.f32 %v3528_v27, %v717_v30  ;;  %v1000_v36 = vadd.f32 %v3528_v27, %v999_v31 }
 0x1be   : > { %1762 = vst.msk [vmem:[%s3323_s12 + $0x64] sm:$0xf] %vm1736_vm3, %v1729_v26  ;;  %v1352_v32 = vmax.f32 %v1312_v28, 0.0  ;;  %v1634_v33 = vmax.f32 %v1594_v29, 0.0 }
 0x1bf   : > { %v757_v38 = vmax.f32 %v718_v34, 0.0  ;;  %v1039_v42 = vmax.f32 %v1000_v36, 0.0 }
 0x1c0   : > { %v1666_v35 = vmax.f32 %v1352_v32, %v1634_v33 }
 0x1c1   : > { %v1071_v51 = vmax.f32 %v757_v38, %v1039_v42 }
 0x1c2   : > { %v1698_v37 = vmax.f32 %v1070_v11, %v1666_v35 }
 0x1c3   : > { %v1313_v39 = vpop.f32.mrf.mxu2  ;;  %v1595_v40 = vpop.f32.mrf.mxu3 }
 0x1c4   : > { %v1730_v41 = vpack.c.bf16 %v1698_v37, %v1698_v37  ;;  %v1314_v43 = vadd.f32 %v3528_v27, %v1313_v39  ;;  %v1596_v44 = vadd.f32 %v3528_v27, %v1595_v40  ;;  %v720_v45 = vpop.f32.mrf.mxu0  ;;  %v1002_v46 = vpop.f32.mrf.mxu1 }
 0x1c5   : > { %v721_v49 = vadd.f32 %v3528_v27, %v720_v45  ;;  %v1003_v50 = vadd.f32 %v3528_v27, %v1002_v46 }
 0x1c6   : > { %1763 = vst.msk [vmem:[%s3323_s12 + $0x68] sm:$0xf] %vm1736_vm3, %v1730_v41  ;;  %v1353_v47 = vmax.f32 %v1314_v43, 0.0  ;;  %v1635_v48 = vmax.f32 %v1596_v44, 0.0 }
 0x1c7   : > { %v758_v54 = vmax.f32 %v721_v49, 0.0  ;;  %v1040_v55 = vmax.f32 %v1003_v50, 0.0 }
 0x1c8   : > { %v1667_v52 = vmax.f32 %v1353_v47, %v1635_v48 }
 0x1c9   : > { %v1072_v63 = vmax.f32 %v758_v54, %v1040_v55 }
 0x1ca   : > { %v1699_v53 = vmax.f32 %v1071_v51, %v1667_v52 }
 0x1cb   : > { %v1316_v56 = vpop.f32.mrf.mxu2  ;;  %v1598_v57 = vpop.f32.mrf.mxu3 }
 0x1cc   : > { %v1731_v58 = vpack.c.bf16 %v1699_v53, %v1699_v53  ;;  %v1317_v59 = vadd.f32 %v3528_v27, %v1316_v56  ;;  %v1599_v60 = vadd.f32 %v3528_v27, %v1598_v57  ;;  %v722_v61 = vpop.f32.mrf.mxu0  ;;  %v1004_v62 = vpop.f32.mrf.mxu1 }
 0x1cd   : > { %v723_v2 = vadd.f32 %v3528_v27, %v722_v61  ;;  %v1005_v4 = vadd.f32 %v3528_v27, %v1004_v62 }
 0x1ce   : > { %1764 = vst.msk [vmem:[%s3323_s12 + $0x6c] sm:$0xf] %vm1736_vm3, %v1731_v58  ;;  %v1354_v0 = vmax.f32 %v1317_v59, 0.0  ;;  %v1636_v1 = vmax.f32 %v1599_v60, 0.0 }
 0x1cf   : > { %v759_v6 = vmax.f32 %v723_v2, 0.0  ;;  %v1041_v10 = vmax.f32 %v1005_v4, 0.0 }
 0x1d0   : > { %v1668_v3 = vmax.f32 %v1354_v0, %v1636_v1 }
 0x1d1   : > { %v1073_v20 = vmax.f32 %v759_v6, %v1041_v10 }
 0x1d2   : > { %v1700_v5 = vmax.f32 %v1072_v63, %v1668_v3 }
 0x1d3   : > { %v1318_v7 = vpop.f32.mrf.mxu2  ;;  %v1600_v8 = vpop.f32.mrf.mxu3 }
 0x1d4   : > { %v1732_v9 = vpack.c.bf16 %v1700_v5, %v1700_v5  ;;  %v1319_v12 = vadd.f32 %v3528_v27, %v1318_v7  ;;  %v1601_v13 = vadd.f32 %v3528_v27, %v1600_v8  ;;  %v725_v14 = vpop.f32.mrf.mxu0  ;;  %v1007_v15 = vpop.f32.mrf.mxu1 }
 0x1d5   : > { %v726_v18 = vadd.f32 %v3528_v27, %v725_v14  ;;  %v1008_v19 = vadd.f32 %v3528_v27, %v1007_v15 }
 0x1d6   : > { %1765 = vst.msk [vmem:[%s3323_s12 + $0x70] sm:$0xf] %vm1736_vm3, %v1732_v9  ;;  %v1355_v16 = vmax.f32 %v1319_v12, 0.0  ;;  %v1637_v17 = vmax.f32 %v1601_v13, 0.0 }
 0x1d7   : > { %v760_v23 = vmax.f32 %v726_v18, 0.0  ;;  %v1042_v24 = vmax.f32 %v1008_v19, 0.0 }
 0x1d8   : > { %v1669_v21 = vmax.f32 %v1355_v16, %v1637_v17 }
 0x1d9   : > { %v1074_v32 = vmax.f32 %v760_v23, %v1042_v24 }
 0x1da   : > { %v1701_v22 = vmax.f32 %v1073_v20, %v1669_v21 }
 0x1db   : > { %v1321_v25 = vpop.f32.mrf.mxu2  ;;  %v1603_v26 = vpop.f32.mrf.mxu3 }
 0x1dc   : > { %v1733_v28 = vpack.c.bf16 %v1701_v22, %v1701_v22  ;;  %v1322_v29 = vadd.f32 %v3528_v27, %v1321_v25  ;;  %v1604_v30 = vadd.f32 %v3528_v27, %v1603_v26  ;;  %v727_v31 = vpop.f32.mrf.mxu0  ;;  %v1009_v11 = vpop.f32.mrf.mxu1 }
 0x1dd   : > { %v728_v35 = vadd.f32 %v3528_v27, %v727_v31  ;;  %v1010_v37 = vadd.f32 %v3528_v27, %v1009_v11 }
 0x1de   : > { %1766 = vst.msk [vmem:[%s3323_s12 + $0x74] sm:$0xf] %vm1736_vm3, %v1733_v28  ;;  %v1356_v33 = vmax.f32 %v1322_v29, 0.0  ;;  %v1638_v34 = vmax.f32 %v1604_v30, 0.0 }
 0x1df   : > { %v761_v39 = vmax.f32 %v728_v35, 0.0  ;;  %v1043_v43 = vmax.f32 %v1010_v37, 0.0 }
 0x1e0   : > { %v1670_v36 = vmax.f32 %v1356_v33, %v1638_v34 }
 0x1e1   : > { %v1075_v48 = vmax.f32 %v761_v39, %v1043_v43 }
 0x1e2   : > { %v1702_v38 = vmax.f32 %v1074_v32, %v1670_v36 }
 0x1e3   : > { %v1323_v40 = vpop.f32.mrf.mxu2  ;;  %v1605_v41 = vpop.f32.mrf.mxu3 }
 0x1e4   : > { %v1734_v42 = vpack.c.bf16 %v1702_v38, %v1702_v38  ;;  %v1324_v44 = vadd.f32 %v3528_v27, %v1323_v40  ;;  %v1606_v45 = vadd.f32 %v3528_v27, %v1605_v41 }
 0x1e6   : > { %1767 = vst.msk [vmem:[%s3323_s12 + $0x78] sm:$0xf] %vm1736_vm3, %v1734_v42  ;;  %v1357_v46 = vmax.f32 %v1324_v44, 0.0  ;;  %v1639_v47 = vmax.f32 %v1606_v45, 0.0 }
 0x1e8   : > { %v1671_v49 = vmax.f32 %v1357_v46, %v1639_v47 }
 0x1ea   : > { %v1703_v50 = vmax.f32 %v1075_v48, %v1671_v49  ;;  %1775 = sbr.rel (!%p3063_p5) target bundleno = 559 (0x22f), region = 98 }
 0x1ec   : > { %v1735_v51 = vpack.c.bf16 %v1703_v50, %v1703_v50 }
 0x1ee   : > { %1768 = vst.msk [vmem:[%s3323_s12 + $0x7c] sm:$0xf] %vm1736_vm3, %v1735_v51 }
 0x1ef   : > { %s3735_s23 = smov (!%p1778_p4, %s1777_s23), 32 }
 0x1f0   : > { %s2618_s29 = sshll.u32 %s3735_s23, 2 }
 0x1f1   : > { %p2621_p6 = scmp.eq.s32.totalorder %s2618_s29, 0 }
 0x1f2   : > { %s3579_s20 = sshrl.u32 (!%p2621_p6), %s3735_s23, 5 }
 0x1f3   : > { %1786 = sbr.rel (%p2621_p6) target bundleno = 559 (0x22f), region = 102  ;;  %p2622_p5 = scmp.le.s32.totalorder (!%p2621_p6), %s3579_s20, 0 }
 0x1f8   : > { %2131 = sbr.rel (%p2622_p5) target bundleno = 542 (0x21e), region = 218  ;;  %s3720_s15 = smov (!%p2622_p5), %s3573_s27 }
 0x1f9   : > { %s3721_s24 = smov (!%p2622_p5), %s3323_s12  ;;  %s3588_s28 = smov (!%p2622_p5), 0  }
 0x1fa   : > { %s3590_s30 = smov (!%p2622_p5), 0  }
 0x1fd LB: >> { %v1803_v27 = vld [vmem:[%s2985_s24] sm:$0xf]  ;;  %v1805_v52 = vld [vmem:[%s2985_s24 + $0x4] sm:$0xf]  ;;  %v1807_v53 = vld [vmem:[%s2985_s24 + $0x8] sm:$0xf]  ;;  %s2993_s30 = sphi %s3590_s30, %s1797_s30   ;;  %s2989_s28 = sphi %s3588_s28, %s3724_s28   ;;  %s2985_s24 = sphi %s3721_s24, %s3723_s24   ;;  %s2981_s15 = sphi %s3720_s15, %s3722_s15  }
 0x1fe   : >> { %1804 = vst [vmem:[%s2981_s15] sm:$0xf] %v1803_v27  ;;  %v1809_v54 = vld [vmem:[%s2985_s24 + $0xc] sm:$0xf]  ;;  %v1811_v55 = vld [vmem:[%s2985_s24 + $0x10] sm:$0xf]  ;;  %s1867_s4 = sadd.s32 1, %s2989_s28 }
 0x1ff   : >> { %1806 = vst [vmem:[%s2981_s15 + $0x4] sm:$0xf] %v1805_v52  ;;  %v1813_v56 = vld [vmem:[%s2985_s24 + $0x14] sm:$0xf]  ;;  %v1815_v57 = vld [vmem:[%s2985_s24 + $0x18] sm:$0xf]  ;;  %p1868_p7 = scmp.ge.s32.totalorder %s1867_s4, %s3579_s20 }
 0x200   : >> { %1808 = vst [vmem:[%s2981_s15 + $0x8] sm:$0xf] %v1807_v53  ;;  %v1817_v58 = vld [vmem:[%s2985_s24 + $0x1c] sm:$0xf]  ;;  %v1819_v59 = vld [vmem:[%s2985_s24 + $0x20] sm:$0xf] }
 0x201   : >> { %1810 = vst [vmem:[%s2981_s15 + $0xc] sm:$0xf] %v1809_v54  ;;  %v1821_v60 = vld [vmem:[%s2985_s24 + $0x24] sm:$0xf]  ;;  %v1823_v61 = vld [vmem:[%s2985_s24 + $0x28] sm:$0xf] }
 0x202   : >> { %1812 = vst [vmem:[%s2981_s15 + $0x10] sm:$0xf] %v1811_v55  ;;  %v1825_v62 = vld [vmem:[%s2985_s24 + $0x2c] sm:$0xf]  ;;  %v1827_v63 = vld [vmem:[%s2985_s24 + $0x30] sm:$0xf] }
 0x203   : >> { %1814 = vst [vmem:[%s2981_s15 + $0x14] sm:$0xf] %v1813_v56  ;;  %v1829_v0 = vld [vmem:[%s2985_s24 + $0x34] sm:$0xf]  ;;  %v1831_v1 = vld [vmem:[%s2985_s24 + $0x38] sm:$0xf] }
 0x204   : >> { %1816 = vst [vmem:[%s2981_s15 + $0x18] sm:$0xf] %v1815_v57  ;;  %v1833_v2 = vld [vmem:[%s2985_s24 + $0x3c] sm:$0xf]  ;;  %v1835_v3 = vld [vmem:[%s2985_s24 + $0x40] sm:$0xf] }
 0x205   : >> { %1818 = vst [vmem:[%s2981_s15 + $0x1c] sm:$0xf] %v1817_v58  ;;  %v1837_v4 = vld [vmem:[%s2985_s24 + $0x44] sm:$0xf]  ;;  %s3737_s4 = smov (%p1868_p7, %s1867_s4), 0  ;;  %s1797_s30 = sadd.s32 1, %s2993_s30  }
 0x206   : >> { %1820 = vst [vmem:[%s2981_s15 + $0x20] sm:$0xf] %v1819_v59  ;;  %v1839_v5 = vld [vmem:[%s2985_s24 + $0x48] sm:$0xf]  ;;  %v1841_v6 = vld [vmem:[%s2985_s24 + $0x4c] sm:$0xf]  ;;  %p1796_p8 = scmp.ge.s32.totalorder %s1797_s30, %s3579_s20  ;;  %s3724_s28 = smov %s3737_s4 }
 0x207   : >> { %1822 = vst [vmem:[%s2981_s15 + $0x24] sm:$0xf] %v1821_v60  ;;  %s2623_s5 = sshll.u32 %s3737_s4, 7  ;;  %v1843_v7 = vld [vmem:[%s2985_s24 + $0x50] sm:$0xf] }
 0x208   : >> { %1824 = vst [vmem:[%s2981_s15 + $0x28] sm:$0xf] %v1823_v61  ;;  %s3649_s6 = scalar_lea.vmem %s3323_s12, %s2623_s5 [#allocation3]   ;;  %s1873_s7 = scalar_lea.vmem %s3573_s27, %s2623_s5   ;;  %v1845_v8 = vld [vmem:[%s2985_s24 + $0x54] sm:$0xf]  ;;  %v1847_v9 = vld [vmem:[%s2985_s24 + $0x58] sm:$0xf] }
 0x209   : >> { %1826 = vst [vmem:[%s2981_s15 + $0x2c] sm:$0xf] %v1825_v62  ;;  %v1849_v10 = vld [vmem:[%s2985_s24 + $0x5c] sm:$0xf]  ;;  %v1851_v12 = vld [vmem:[%s2985_s24 + $0x60] sm:$0xf] }
 0x20a   : >> { %1828 = vst [vmem:[%s2981_s15 + $0x30] sm:$0xf] %v1827_v63  ;;  %v1853_v13 = vld [vmem:[%s2985_s24 + $0x64] sm:$0xf]  ;;  %v1855_v14 = vld [vmem:[%s2985_s24 + $0x68] sm:$0xf] }
 0x20b   : >> { %1830 = vst [vmem:[%s2981_s15 + $0x34] sm:$0xf] %v1829_v0  ;;  %v1857_v15 = vld [vmem:[%s2985_s24 + $0x6c] sm:$0xf]  ;;  %v1859_v16 = vld [vmem:[%s2985_s24 + $0x70] sm:$0xf] }
 0x20c   : >> { %1832 = vst [vmem:[%s2981_s15 + $0x38] sm:$0xf] %v1831_v1  ;;  %v1861_v17 = vld [vmem:[%s2985_s24 + $0x74] sm:$0xf]  ;;  %v1863_v18 = vld [vmem:[%s2985_s24 + $0x78] sm:$0xf] }
 0x20d   : >> { %1834 = vst [vmem:[%s2981_s15 + $0x3c] sm:$0xf] %v1833_v2  ;;  %v1865_v19 = vld [vmem:[%s2985_s24 + $0x7c] sm:$0xf]  ;;  %s3723_s24 = smov %s3649_s6 }
 0x20e   : >> { %1836 = vst [vmem:[%s2981_s15 + $0x40] sm:$0xf] %v1835_v3 }
 0x20f   : >> { %1838 = vst [vmem:[%s2981_s15 + $0x44] sm:$0xf] %v1837_v4 }
 0x210   : >> { %1840 = vst [vmem:[%s2981_s15 + $0x48] sm:$0xf] %v1839_v5 }
 0x211   : >> { %1842 = vst [vmem:[%s2981_s15 + $0x4c] sm:$0xf] %v1841_v6 }
 0x212   : >> { %1844 = vst [vmem:[%s2981_s15 + $0x50] sm:$0xf] %v1843_v7 }
 0x213   : >> { %1846 = vst [vmem:[%s2981_s15 + $0x54] sm:$0xf] %v1845_v8 }
 0x214   : >> { %1848 = vst [vmem:[%s2981_s15 + $0x58] sm:$0xf] %v1847_v9 }
 0x215   : >> { %1850 = vst [vmem:[%s2981_s15 + $0x5c] sm:$0xf] %v1849_v10 }
 0x216   : >> { %1852 = vst [vmem:[%s2981_s15 + $0x60] sm:$0xf] %v1851_v12 }
 0x217   : >> { %1854 = vst [vmem:[%s2981_s15 + $0x64] sm:$0xf] %v1853_v13 }
 0x218   : >> { %1856 = vst [vmem:[%s2981_s15 + $0x68] sm:$0xf] %v1855_v14 }
 0x219   : >> { %1858 = vst [vmem:[%s2981_s15 + $0x6c] sm:$0xf] %v1857_v15  ;;  %1799 = sbr.rel (!%p1796_p8) target bundleno = 509 (0x1fd), region = 224 }
 0x21a   : >> { %1860 = vst [vmem:[%s2981_s15 + $0x70] sm:$0xf] %v1859_v16 }
 0x21b   : >> { %1862 = vst [vmem:[%s2981_s15 + $0x74] sm:$0xf] %v1861_v17 }
 0x21c   : >> { %1864 = vst [vmem:[%s2981_s15 + $0x78] sm:$0xf] %v1863_v18 }
 0x21d   : >> { %1866 = vst [vmem:[%s2981_s15 + $0x7c] sm:$0xf] %v1865_v19  ;;  %s3722_s15 = smov %s1873_s7 }
 0x21e PF: > { %s3690_s14 = sand.u32 31, %s3735_s23   ;;  %s2702_s8 = sshll.u32 %s3579_s20, 7 }
 0x21f   : > { %s1878_s9 = scalar_lea.vmem %s3323_s12, %s2702_s8 [#allocation3]   ;;  %s1880_s10 = scalar_lea.vmem %s3573_s27, %s2702_s8  }
 0x220   : > { %p2628_p9 = scmp.le.s32.totalorder %s3690_s14, 0 }
 0x221   : > { %s2995_s11 = smov (!%p2628_p9), %s1880_s10   ;;  %s2999_s17 = smov (!%p2628_p9), %s1878_s9  }
 0x222   : > { %2145 = sbr.rel (%p2628_p9) target bundleno = 559 (0x22f), region = 229  ;;  %s3003_s18 = smov (!%p2628_p9), 0  }
 0x223   : > { %s3007_s21 = smov (!%p2628_p9), 0  }
 0x227 LB: >> { %v1890_v20 = vld [vmem:[%s3001_s17] sm:$0xf]  ;;  %s1892_s22 = sadd.s32 1, %s3005_s18  ;;  %s1884_s21 = sadd.s32 1, %s3009_s21   ;;  %s3009_s21 = sphi %s3007_s21, %s1884_s21   ;;  %s3005_s18 = sphi %s3003_s18, %s3004_s18   ;;  %s3001_s17 = sphi %s2999_s17, %s1897_s17   ;;  %s2997_s11 = sphi %s2995_s11, %s1898_s11  }
 0x228   : >> { %1891 = vst [vmem:[%s2997_s11] sm:$0xf] %v1890_v20  ;;  %p1893_p10 = scmp.ge.s32.totalorder %s1892_s22, %s3690_s14  ;;  %p1883_p11 = scmp.ge.s32.totalorder %s1884_s21, %s3690_s14 }
 0x22a   : >> { %s3739_s22 = smov (%p1893_p10, %s1892_s22), 0  ;;  %1886 = sbr.rel (!%p1883_p11) target bundleno = 551 (0x227), region = 235 }
 0x22b   : >> { %s2629_s12 = sshll.u32 %s3739_s22, 2  ;;  %s3004_s18 = smov %s3739_s22  }
 0x22c   : >> { %s1897_s17 = scalar_lea.vmem %s1878_s9, %s2629_s12 [#allocation3]   ;;  %s1898_s11 = scalar_lea.vmem %s1880_s10, %s2629_s12  }
 0x22f PF: > { %p10_p12 = scmp.ge.s32.totalorder %s3051_s16, 4   ;;  %s3725_s12 = smov %s2941_s13 }
 0x230   : > { %s3726_s13 = smov %s3061_s19  ;;  %s3727_s14 = smov %s3051_s16 }
 0x231   :  { %12 = sbr.rel (!%p10_p12) target bundleno = 2 (0x2), region = 246 }

// kernel: net_forward.5
= control target key start
LH: loop header
LB: loop body
LE: loop exit
PB: predicated region body
PF: predicated region fallthrough
CT: control target
= control target key end

     0   :  { %vm420_vm0 = vcmask 523264   ;;  %s2954_s1 = inlined_call_operand.vmem [shape: bf16[576,128], index: 1, kind: input, shape index: {}]   ;;  %s2955_s2 = inlined_call_operand.vmem [shape: f32[1,128], index: 2, kind: input, shape index: {}]   ;;  %s2956_s0 = inlined_call_operand.vmem [shape: bf16[4,50,576], index: 0, kind: input, shape index: {}]   ;;  %s2957_s3 = inlined_call_operand.vmem [shape: bf16[50,128], index: 3, kind: output, shape index: {}]  }
   0x1   :  { %v2039_v0 = vld [vmem:[%s2954_s1 + $0x38] sm:$0xff]  ;;  %v2061_v4 = vld [vmem:[%s2954_s1 + $0x30] sm:$0xff]  ;;  %v2085_v8 = vld [vmem:[%s2954_s1 + $0x28] sm:$0xff] }
   0x2   :  { %v2044_v1 = vld [vmem:[%s2954_s1 + $0x78] sm:$0xff]  ;;  %433 = vmatpush.bf16.msra.mxu0 %v2039_v0  ;;  %v2066_v5 = vld [vmem:[%s2954_s1 + $0x70] sm:$0xff]  ;;  %v2090_v9 = vld [vmem:[%s2954_s1 + $0x68] sm:$0xff] }
   0x3   :  { %v2049_v2 = vld [vmem:[%s2954_s1 + $0xb8] sm:$0xff]  ;;  %461 = vmatpush.bf16.msra.mxu1 %v2044_v1  ;;  %v2073_v6 = vld [vmem:[%s2954_s1 + $0xb0] sm:$0xff]  ;;  %v2097_v10 = vld [vmem:[%s2954_s1 + $0xa8] sm:$0xff] }
   0x4   :  { %v2054_v3 = vld [vmem:[%s2954_s1 + $0xf8] sm:$0xff]  ;;  %489 = vmatpush.bf16.msra.mxu2 %v2049_v2  ;;  %v2078_v7 = vld [vmem:[%s2954_s1 + $0xf0] sm:$0xff]  ;;  %v2102_v11 = vld [vmem:[%s2954_s1 + $0xe8] sm:$0xff] }
   0x5   :  { %517 = vmatpush.bf16.msra.mxu3 %v2054_v3  ;;  %v2109_v12 = vld [vmem:[%s2954_s1 + $0x20] sm:$0xff]  ;;  %v2133_v16 = vld [vmem:[%s2954_s1 + $0x18] sm:$0xff]  ;;  %v2157_v20 = vld [vmem:[%s2954_s1 + $0x10] sm:$0xff] }
   0x6   :  { %434 = vmatpush.bf16.msra.mxu0 %v2061_v4  ;;  %v2114_v13 = vld [vmem:[%s2954_s1 + $0x60] sm:$0xff]  ;;  %v2138_v17 = vld [vmem:[%s2954_s1 + $0x58] sm:$0xff]  ;;  %v2162_v21 = vld [vmem:[%s2954_s1 + $0x50] sm:$0xff] }
   0x7   :  { %462 = vmatpush.bf16.msra.mxu1 %v2066_v5  ;;  %v2121_v14 = vld [vmem:[%s2954_s1 + $0xa0] sm:$0xff]  ;;  %v2145_v18 = vld [vmem:[%s2954_s1 + $0x98] sm:$0xff]  ;;  %v2169_v22 = vld [vmem:[%s2954_s1 + $0x90] sm:$0xff] }
   0x8   :  { %490 = vmatpush.bf16.msra.mxu2 %v2073_v6  ;;  %v2126_v15 = vld [vmem:[%s2954_s1 + $0xe0] sm:$0xff]  ;;  %v2150_v19 = vld [vmem:[%s2954_s1 + $0xd8] sm:$0xff]  ;;  %v2174_v23 = vld [vmem:[%s2954_s1 + $0xd0] sm:$0xff] }
   0x9   :  { %518 = vmatpush.bf16.msra.mxu3 %v2078_v7  ;;  %v2181_v24 = vld [vmem:[%s2954_s1 + $0x8] sm:$0xff]  ;;  %v2203_v28 = vld [vmem:[%s2954_s1] sm:$0xff]  ;;  %v1939_v33 = vld [vmem:[%s2956_s0 + $0x10] sm:$0xf0] }
   0xa   :  { %435 = vmatpush.bf16.msra.mxu0 %v2085_v8  ;;  %v2186_v25 = vld [vmem:[%s2954_s1 + $0x48] sm:$0xff]  ;;  %v2208_v29 = vld [vmem:[%s2954_s1 + $0x40] sm:$0xff]  ;;  %v1442_v35 = vld [vmem:[%s2956_s0 + $0x14] sm:$0xf0] }
   0xb   :  { %463 = vmatpush.bf16.msra.mxu1 %v2090_v9  ;;  %v2193_v26 = vld [vmem:[%s2954_s1 + $0x88] sm:$0xff]  ;;  %v2213_v30 = vld [vmem:[%s2954_s1 + $0x80] sm:$0xff]  ;;  %v1940_v37 = vld [vmem:[%s2956_s0 + $0x18] sm:$0xf0] }
   0xc   :  { %491 = vmatpush.bf16.msra.mxu2 %v2097_v10  ;;  %v2198_v27 = vld [vmem:[%s2954_s1 + $0xc8] sm:$0xff]  ;;  %v2218_v31 = vld [vmem:[%s2954_s1 + $0xc0] sm:$0xff]  ;;  %v2251_v40 = vld [vmem:[%s2954_s1 + $0x118] sm:$0xff] }
   0xd   :  { %519 = vmatpush.bf16.msra.mxu3 %v2102_v11  ;;  %v1440_v32 = vld [vmem:[%s2956_s0] sm:$0xf]  ;;  %v1937_v34 = vld [vmem:[%s2956_s0 + $0x4] sm:$0xf]  ;;  %v1448_v36 = vld [vmem:[%s2956_s0 + $0x8] sm:$0xf] }
   0xe   :  { %436 = vmatpush.bf16.msra.mxu0 %v2109_v12  ;;  %v1938_v38 = vld [vmem:[%s2956_s0 + $0xc] sm:$0xf]  ;;  %v1450_v39 = vld [vmem:[%s2956_s0 + $0x1c] sm:$0xf0]  ;;  %v1441_v41 = vor.u32 %v1939_v33, %v1440_v32  ;;  %v1445_v42 = vor.u32 %v1937_v34, %v1442_v35  ;;  %v1449_v43 = vor.u32 %v1940_v37, %v1448_v36  ;;  %v2262_v45 = vld [vmem:[%s2954_s1 + $0x110] sm:$0xff] }
   0xf   :  { %464 = vmatpush.bf16.msra.mxu1 %v2114_v13  ;;  %v1453_v44 = vor.u32 %v1938_v38, %v1450_v39  ;;  %v2271_v46 = vld [vmem:[%s2954_s1 + $0x108] sm:$0xff]  ;;  %v1944_v48 = vld [vmem:[%s2956_s0 + $0x38] sm:$0xf0]  ;;  %v1462_v50 = vld [vmem:[%s2956_s0 + $0x3c] sm:$0xf0] }
  0x10   :  { %492 = vmatpush.bf16.msra.mxu2 %v2121_v14  ;;  %v1460_v47 = vld [vmem:[%s2956_s0 + $0x28] sm:$0xf]  ;;  %v1942_v49 = vld [vmem:[%s2956_s0 + $0x2c] sm:$0xf]  ;;  %v1468_v51 = vld [vmem:[%s2956_s0 + $0x30] sm:$0xf] }
  0x11   :  { %520 = vmatpush.bf16.msra.mxu3 %v2126_v15  ;;  %v1945_v52 = vld [vmem:[%s2956_s0 + $0x40] sm:$0xf0]  ;;  %v1943_v53 = vld [vmem:[%s2956_s0 + $0x34] sm:$0xf]  ;;  %v1470_v54 = vld [vmem:[%s2956_s0 + $0x44] sm:$0xf0]  ;;  %v1461_v55 = vor.u32 %v1944_v48, %v1460_v47  ;;  %v1465_v56 = vor.u32 %v1942_v49, %v1462_v50 }
  0x12   :  { %437 = vmatpush.bf16.msra.mxu0 %v2133_v16  ;;  %v1469_v57 = vor.u32 %v1945_v52, %v1468_v51  ;;  %v1473_v58 = vor.u32 %v1943_v53, %v1470_v54  ;;  %v2310_v59 = vld [vmem:[%s2954_s1 + $0x100] sm:$0xff]  ;;  %v1480_v60 = vld [vmem:[%s2956_s0 + $0x50] sm:$0xf]  ;;  %v1947_v62 = vld [vmem:[%s2956_s0 + $0x54] sm:$0xf] }
  0x13   :  { %465 = vmatpush.bf16.msra.mxu1 %v2138_v17  ;;  %v1949_v61 = vld [vmem:[%s2956_s0 + $0x60] sm:$0xf0]  ;;  %v1482_v63 = vld [vmem:[%s2956_s0 + $0x64] sm:$0xf0]  ;;  %v1488_v32 = vld [vmem:[%s2956_s0 + $0x58] sm:$0xf] }
  0x14   :  { %493 = vmatpush.bf16.msra.mxu2 %v2145_v18  ;;  %v1950_v33 = vld [vmem:[%s2956_s0 + $0x68] sm:$0xf0]  ;;  %v1948_v34 = vld [vmem:[%s2956_s0 + $0x5c] sm:$0xf]  ;;  %v1490_v35 = vld [vmem:[%s2956_s0 + $0x6c] sm:$0xf0]  ;;  %v1481_v36 = vor.u32 %v1949_v61, %v1480_v60  ;;  %v1485_v37 = vor.u32 %v1947_v62, %v1482_v63 }
  0x15   :  { %521 = vmatpush.bf16.msra.mxu3 %v2150_v19  ;;  %v1489_v38 = vor.u32 %v1950_v33, %v1488_v32  ;;  %v1493_v39 = vor.u32 %v1948_v34, %v1490_v35  ;;  %v1456_v53 = vld [vmem:[%s2956_s0 + $0x10] sm:$0xf]  ;;  %v1941_v54 = vld [vmem:[%s2956_s0 + $0x20] sm:$0xf0]  ;;  %v1677_v60 = vld [vmem:[%s2956_s0 + $0x94] sm:$0xf] }
  0x16   :  { %438 = vmatpush.bf16.msra.mxu0 %v2157_v20  ;;  %v1955_v61 = vld [vmem:[%s2956_s0 + $0xa4] sm:$0xf0]  ;;  %v1457_v62 = vor.u32 %v1941_v54, %v1456_v53  ;;  %v1476_v34 = vld [vmem:[%s2956_s0 + $0x38] sm:$0xf]  ;;  %v1946_v35 = vld [vmem:[%s2956_s0 + $0x48] sm:$0xf0] }
  0x17   :  { %466 = vmatpush.bf16.msra.mxu1 %v2162_v21  ;;  %v1678_v33 = vor.u32 %v1955_v61, %v1677_v60 }
  0x18   :  { %494 = vmatpush.bf16.msra.mxu2 %v2169_v22 }
  0x19   :  { %522 = vmatpush.bf16.msra.mxu3 %v2174_v23 }
  0x1a   :  { %439 = vmatpush.bf16.msra.mxu0 %v2181_v24 }
  0x1b   :  { %467 = vmatpush.bf16.msra.mxu1 %v2186_v25 }
  0x1c   :  { %495 = vmatpush.bf16.msra.mxu2 %v2193_v26 }
  0x1d   :  { %523 = vmatpush.bf16.msra.mxu3 %v2198_v27 }
  0x1e   :  { %440 = vmatpush.bf16.msra.mxu0 %v2203_v28 }
  0x1f   :  { %468 = vmatpush.bf16.msra.mxu1 %v2208_v29 }
  0x20   :  { %496 = vmatpush.bf16.msra.mxu2 %v2213_v30 }
  0x21   :  { %524 = vmatpush.bf16.msra.mxu3 %v2218_v31  ;;  %441 = vmatmul.bf16.vlgmr.msra.gmra.mxu0 %v1441_v41  ;;  %v106_v41 = vld [vmem:[%s2956_s0 + $0x78] sm:$0x11] }
  0x22   :  { %549 = vmatpush.bf16.msrb.mxu0 %v2251_v40  ;;  %469 = vmatmul.bf16.vlgmr.msra.gmra.mxu1 %v1445_v42  ;;  %v107_v42 = vld [vmem:[%s2956_s0 + $0x80] sm:$0x11] }
  0x23   :  { %497 = vmatmul.bf16.vlgmr.msra.gmra.mxu2 %v1449_v43  ;;  %706 = vmatpush.bf16.msrb.mxu1 %v2039_v0  ;;  %v163_v43 = vunpack.c.l.b16 %v106_v41  ;;  %v165_v47 = vunpack.c.l.b16 %v107_v42  ;;  %v166_v48 = vunpack.c.h.b16 %v107_v42 }
  0x24   :  { %734 = vmatpush.bf16.msrb.mxu2 %v2044_v1  ;;  %525 = vmatmul.bf16.vlgmr.msra.gmra.mxu3 %v1453_v44  ;;  %v164_v44 = vunpack.c.h.b16 %v106_v41  ;;  %v1477_v41 = vor.u32 %v1946_v35, %v1476_v34  ;;  %v1953_v34 = vld [vmem:[%s2956_s0 + $0x98] sm:$0xf]  ;;  %v1679_v35 = vld [vmem:[%s2956_s0 + $0xa8] sm:$0xf0] }
  0x25   :  { %762 = vmatpush.bf16.msrb.mxu3 %v2049_v2  ;;  %v183_v49 = vpack.c.b16 %v163_v43, %v163_v43  ;;  %v185_v51 = vpack.c.b16 %v165_v47, %v165_v47  ;;  %v186_v52 = vpack.c.b16 %v166_v48, %v166_v48  ;;  %v1964_v47 = vld [vmem:[%s2956_s0 + $0xec] sm:$0xf0]  ;;  %v1711_v48 = vld [vmem:[%s2956_s0 + $0xf0] sm:$0xf0] }
  0x26   :  { %550 = vmatpush.bf16.msrb.mxu0 %v2262_v45  ;;  %v184_v50 = vpack.c.b16 %v164_v44, %v164_v44 }
  0x27   :  { %707 = vmatpush.bf16.msrb.mxu1 %v2061_v4 }
  0x28   :  { %735 = vmatpush.bf16.msrb.mxu2 %v2066_v5 }
  0x29   :  { %763 = vmatpush.bf16.msrb.mxu3 %v2073_v6 }
  0x2a   :  { %551 = vmatpush.bf16.msrb.mxu0 %v2271_v46 }
  0x2b   :  { %708 = vmatpush.bf16.msrb.mxu1 %v2085_v8 }
  0x2c   :  { %736 = vmatpush.bf16.msrb.mxu2 %v2090_v9 }
  0x2d   :  { %764 = vmatpush.bf16.msrb.mxu3 %v2097_v10 }
  0x2e   :  { %552 = vmatpush.bf16.msrb.mxu0 %v2310_v59 }
  0x2f   :  { %709 = vmatpush.bf16.msrb.mxu1 %v2109_v12 }
  0x30   :  { %737 = vmatpush.bf16.msrb.mxu2 %v2114_v13 }
  0x31   :  { %765 = vmatpush.bf16.msrb.mxu3 %v2121_v14  ;;  %446 = vmatmul.bf16.gmra.mxu0 %v1461_v55  ;;  %v1669_v55 = vld [vmem:[%s2956_s0 + $0x8c] sm:$0xf] }
  0x32   :  { %474 = vmatmul.bf16.gmra.mxu1 %v1465_v56  ;;  %790 = vmatpush.bf16.msra.mxu0 %v2054_v3  ;;  %v1954_v56 = vld [vmem:[%s2956_s0 + $0x9c] sm:$0xf0] }
  0x33   :  { %502 = vmatmul.bf16.gmra.mxu2 %v1469_v57  ;;  %710 = vmatpush.bf16.msrb.mxu1 %v2133_v16  ;;  %v1952_v57 = vld [vmem:[%s2956_s0 + $0x90] sm:$0xf]  ;;  %v1670_v63 = vor.u32 %v1954_v56, %v1669_v55  ;;  %v1664_v55 = vld [vmem:[%s2956_s0 + $0x104] sm:$0x11] }
  0x34   :  { %738 = vmatpush.bf16.msrb.mxu2 %v2138_v17  ;;  %530 = vmatmul.bf16.gmra.mxu3 %v1473_v58  ;;  %v1671_v58 = vld [vmem:[%s2956_s0 + $0xa0] sm:$0xf0]  ;;  %v2494_v56 = vld [vmem:[%s2956_s0 + $0x10c] sm:$0x11] }
  0x35   :  { %766 = vmatpush.bf16.msrb.mxu3 %v2145_v18  ;;  %v1674_v32 = vor.u32 %v1952_v57, %v1671_v58  ;;  %v653_v57 = vunpack.c.l.b16 %v1664_v55  ;;  %v654_v58 = vunpack.c.h.b16 %v1664_v55  ;;  %v655_v60 = vunpack.c.l.b16 %v2494_v56 }
  0x36   :  { %791 = vmatpush.bf16.msra.mxu0 %v2078_v7 }
  0x37   :  { %711 = vmatpush.bf16.msrb.mxu1 %v2157_v20 }
  0x38   :  { %739 = vmatpush.bf16.msrb.mxu2 %v2162_v21 }
  0x39   :  { %767 = vmatpush.bf16.msrb.mxu3 %v2169_v22 }
  0x3a   :  { %792 = vmatpush.bf16.msra.mxu0 %v2102_v11 }
  0x3b   :  { %712 = vmatpush.bf16.msrb.mxu1 %v2181_v24 }
  0x3c   :  { %740 = vmatpush.bf16.msrb.mxu2 %v2186_v25 }
  0x3d   :  { %768 = vmatpush.bf16.msrb.mxu3 %v2193_v26 }
  0x3e   :  { %793 = vmatpush.bf16.msra.mxu0 %v2126_v15 }
  0x3f   :  { %713 = vmatpush.bf16.msrb.mxu1 %v2203_v28 }
  0x40   :  { %741 = vmatpush.bf16.msrb.mxu2 %v2208_v29 }
  0x41   :  { %769 = vmatpush.bf16.msrb.mxu3 %v2213_v30  ;;  %451 = vmatmul.bf16.gmra.mxu0 %v1481_v36  ;;  %v1959_v36 = vld [vmem:[%s2956_s0 + $0xc4] sm:$0xf0] }
  0x42   :  { %479 = vmatmul.bf16.gmra.mxu1 %v1485_v37  ;;  %794 = vmatpush.bf16.msra.mxu0 %v2150_v19  ;;  %v1691_v37 = vld [vmem:[%s2956_s0 + $0xc8] sm:$0xf0] }
  0x43   :  { %822 = vmatpush.bf16.msra.mxu1 %v2251_v40  ;;  %507 = vmatmul.bf16.gmra.mxu2 %v1489_v38  ;;  %v1697_v38 = vld [vmem:[%s2956_s0 + $0xbc] sm:$0xf] }
  0x44   :  { %986 = vmatpush.bf16.msra.mxu2 %v2039_v0  ;;  %535 = vmatmul.bf16.gmra.mxu3 %v1493_v39  ;;  %v1960_v39 = vld [vmem:[%s2956_s0 + $0xcc] sm:$0xf0] }
  0x45   :  { %1014 = vmatpush.bf16.msra.mxu3 %v2044_v1  ;;  %v1698_v44 = vor.u32 %v1960_v39, %v1697_v38  ;;  %v1967_v38 = vld [vmem:[%s2956_s0 + $0x11c] sm:$0xf]  ;;  %v1756_v39 = vld [vmem:[%s2956_s0 + $0x12c] sm:$0xf0] }
  0x46   :  { %795 = vmatpush.bf16.msra.mxu0 %v2174_v23 }
  0x47   :  { %823 = vmatpush.bf16.msra.mxu1 %v2262_v45 }
  0x48   :  { %987 = vmatpush.bf16.msra.mxu2 %v2061_v4 }
  0x49   :  { %1015 = vmatpush.bf16.msra.mxu3 %v2066_v5 }
  0x4a   :  { %796 = vmatpush.bf16.msra.mxu0 %v2198_v27 }
  0x4b   :  { %824 = vmatpush.bf16.msra.mxu1 %v2271_v46 }
  0x4c   :  { %988 = vmatpush.bf16.msra.mxu2 %v2085_v8 }
  0x4d   :  { %1016 = vmatpush.bf16.msra.mxu3 %v2090_v9 }
  0x4e   :  { %797 = vmatpush.bf16.msra.mxu0 %v2218_v31 }
  0x4f   :  { %825 = vmatpush.bf16.msra.mxu1 %v2310_v59 }
  0x50   :  { %989 = vmatpush.bf16.msra.mxu2 %v2109_v12 }
  0x51   :  { %1017 = vmatpush.bf16.msra.mxu3 %v2114_v13  ;;  %456 = vmatmul.bf16.gmra.mxu0 %v183_v49  ;;  %v1717_v49 = vld [vmem:[%s2956_s0 + $0xe4] sm:$0xf] }
  0x52   :  { %484 = vmatmul.bf16.gmra.mxu1 %v184_v50  ;;  %v1965_v50 = vld [vmem:[%s2956_s0 + $0xf4] sm:$0xf0] }
  0x53   :  { %512 = vmatmul.bf16.gmra.mxu2 %v185_v51  ;;  %v1718_v54 = vor.u32 %v1965_v50, %v1717_v49 }
  0x54   :  { %990 = vmatpush.bf16.msra.mxu2 %v2133_v16  ;;  %540 = vmatmul.bf16.gmra.mxu3 %v186_v52 }
  0x55   :  { %1018 = vmatpush.bf16.msra.mxu3 %v2138_v17 }
  0x58   :  { %991 = vmatpush.bf16.msra.mxu2 %v2157_v20 }
  0x59   :  { %1019 = vmatpush.bf16.msra.mxu3 %v2162_v21 }
  0x5c   :  { %992 = vmatpush.bf16.msra.mxu2 %v2181_v24 }
  0x5d   :  { %1020 = vmatpush.bf16.msra.mxu3 %v2186_v25 }
  0x60   :  { %993 = vmatpush.bf16.msra.mxu2 %v2203_v28 }
  0x61   :  { %1021 = vmatpush.bf16.msra.mxu3 %v2208_v29  ;;  %1642 = vmatmul.msk.bf16.vlgmr.msrb.gmra.mxu0 %vm420_vm0, %v1457_v62  ;;  %v673_v62 = vpack.c.b16 %v653_v57, %v653_v57 }
  0x62   :  { %714 = vmatmul.bf16.vlgmr.msrb.gmra.mxu1 %v1670_v63  ;;  %1042 = vmatpush.bf16.msrb.mxu0 %v2049_v2  ;;  %v674_v63 = vpack.c.b16 %v654_v58, %v654_v58 }
  0x63   :  { %742 = vmatmul.bf16.vlgmr.msrb.gmra.mxu2 %v1674_v32  ;;  %1070 = vmatpush.bf16.msrb.mxu1 %v2054_v3  ;;  %v675_v32 = vpack.c.b16 %v655_v60, %v655_v60 }
  0x64   :  { %770 = vmatmul.bf16.vlgmr.msrb.gmra.mxu3 %v1678_v33  ;;  %1102 = vmatpush.bf16.msrb.mxu2 %v2251_v40  ;;  %v2501_v33 = vld [vmem:[%s2955_s2] ss:$0 sm:$0xff] }
  0x65   :  { %1259 = vmatpush.bf16.msrb.mxu3 %v2039_v0  ;;  %v1689_v0 = vld [vmem:[%s2956_s0 + $0xb4] sm:$0xf] }
  0x66   :  { %1043 = vmatpush.bf16.msrb.mxu0 %v2073_v6  ;;  %v1690_v42 = vor.u32 %v1959_v36, %v1689_v0  ;;  %v1685_v0 = vld [vmem:[%s2956_s0 + $0x9c] sm:$0xf]  ;;  %v1956_v36 = vld [vmem:[%s2956_s0 + $0xac] sm:$0xf0] }
  0x67   :  { %1071 = vmatpush.bf16.msrb.mxu1 %v2078_v7 }
  0x68   :  { %1103 = vmatpush.bf16.msrb.mxu2 %v2262_v45 }
  0x69   :  { %1260 = vmatpush.bf16.msrb.mxu3 %v2061_v4  ;;  %v1957_v4 = vld [vmem:[%s2956_s0 + $0xb8] sm:$0xf] }
  0x6a   :  { %1044 = vmatpush.bf16.msrb.mxu0 %v2097_v10  ;;  %v1694_v43 = vor.u32 %v1957_v4, %v1691_v37  ;;  %v1754_v4 = vld [vmem:[%s2956_s0 + $0x118] sm:$0xf]  ;;  %v1969_v37 = vld [vmem:[%s2956_s0 + $0x128] sm:$0xf0] }
  0x6b   :  { %1072 = vmatpush.bf16.msrb.mxu1 %v2102_v11 }
  0x6c   :  { %1104 = vmatpush.bf16.msrb.mxu2 %v2271_v46 }
  0x6d   :  { %1261 = vmatpush.bf16.msrb.mxu3 %v2085_v8  ;;  %v1496_v8 = vld [vmem:[%s2956_s0 + $0x60] sm:$0xf] }
  0x6e   :  { %1045 = vmatpush.bf16.msrb.mxu0 %v2121_v14 }
  0x6f   :  { %1073 = vmatpush.bf16.msrb.mxu1 %v2126_v15 }
  0x70   :  { %1105 = vmatpush.bf16.msrb.mxu2 %v2310_v59 }
  0x71   :  { %1262 = vmatpush.bf16.msrb.mxu3 %v2109_v12  ;;  %1643 = vmatmul.msk.bf16.gmra.mxu0 %vm420_vm0, %v1477_v41  ;;  %v1951_v12 = vld [vmem:[%s2956_s0 + $0x70] sm:$0xf0]  ;;  %v1682_v41 = vor.u32 %v1953_v34, %v1679_v35 }
  0x72   :  { %719 = vmatmul.bf16.gmra.mxu1 %v1690_v42  ;;  %1046 = vmatpush.bf16.msrb.mxu0 %v2145_v18  ;;  %v1497_v51 = vor.u32 %v1951_v12, %v1496_v8  ;;  %v1686_v42 = vor.u32 %v1956_v36, %v1685_v0  ;;  %v1755_v8 = vor.u32 %v1969_v37, %v1754_v4  ;;  %v1977_v0 = vld [vmem:[%s2956_s0 + $0x16c] sm:$0xf]  ;;  %v1796_v36 = vld [vmem:[%s2956_s0 + $0x17c] sm:$0xf0] }
  0x73   :  { %747 = vmatmul.bf16.gmra.mxu2 %v1694_v43  ;;  %1074 = vmatpush.bf16.msrb.mxu1 %v2150_v19  ;;  %v1759_v12 = vor.u32 %v1967_v38, %v1756_v39 }
  0x74   :  { %775 = vmatmul.bf16.gmra.mxu3 %v1698_v44 }
  0x75   :  { %1263 = vmatpush.bf16.msrb.mxu3 %v2133_v16  ;;  %v1709_v16 = vld [vmem:[%s2956_s0 + $0xdc] sm:$0xf] }
  0x76   :  { %1047 = vmatpush.bf16.msrb.mxu0 %v2169_v22  ;;  %v1710_v52 = vor.u32 %v1964_v47, %v1709_v16 }
  0x77   :  { %1075 = vmatpush.bf16.msrb.mxu1 %v2174_v23 }
  0x79   :  { %1264 = vmatpush.bf16.msrb.mxu3 %v2157_v20  ;;  %v1962_v20 = vld [vmem:[%s2956_s0 + $0xe0] sm:$0xf] }
  0x7a   :  { %1048 = vmatpush.bf16.msrb.mxu0 %v2193_v26  ;;  %v1714_v53 = vor.u32 %v1962_v20, %v1711_v48 }
  0x7b   :  { %1076 = vmatpush.bf16.msrb.mxu1 %v2198_v27 }
  0x7d   :  { %1265 = vmatpush.bf16.msrb.mxu3 %v2181_v24  ;;  %v108_v24 = vld [vmem:[%s2956_s0 + $0x88] sm:$0x1] }
  0x7e   :  { %1049 = vmatpush.bf16.msrb.mxu0 %v2213_v30 }
  0x7f   :  { %1077 = vmatpush.bf16.msrb.mxu1 %v2218_v31 }
  0x81   :  { %1266 = vmatpush.bf16.msrb.mxu3 %v2203_v28  ;;  %1644 = vmatmul.msk.bf16.gmra.mxu0 %vm420_vm0, %v1497_v51  ;;  %v167_v28 = vunpack.c.l.b16 %v108_v24 }
  0x82   :  { %724 = vmatmul.bf16.gmra.mxu1 %v1710_v52 }
  0x83   :  { %752 = vmatmul.bf16.gmra.mxu2 %v1714_v53  ;;  %v187_v61 = vpack.c.b16 %v167_v28, %v167_v28 }
  0x84   :  { %780 = vmatmul.bf16.gmra.mxu3 %v1718_v54  ;;  %v1776_v54 = vld [vmem:[%s2956_s0 + $0x154] sm:$0xf0] }
  0x91   :  { %1645 = vmatmul.msk.bf16.gmra.mxu0 %vm420_vm0, %v187_v61 }
  0x92   :  { %729 = vmatmul.bf16.gmra.mxu1 %v673_v62 }
  0x93   :  { %757 = vmatmul.bf16.gmra.mxu2 %v674_v63 }
  0x94   :  { %785 = vmatmul.bf16.gmra.mxu3 %v675_v32 }
  0x9e   :  { %v442_v43 = vpop.f32.mrf.mxu0 }
  0x9f   :  { %v470_v44 = vpop.f32.mrf.mxu1  ;;  %v443_v16 = vadd.f32 %v2501_v33, %v442_v43 }
  0xa1   :  { %v471_v47 = vadd.f32 %v470_v44, %v443_v16  ;;  %798 = vmatmul.bf16.vlgmr.msra.gmra.mxu0 %v1682_v41 }
  0xa2   :  { %1727 = vmatmul.msk.bf16.vlgmr.msra.gmra.mxu1 %vm420_vm0, %v1686_v42  ;;  %1287 = vmatpush.bf16.msra.mxu0 %v2044_v1 }
  0xa3   :  { %994 = vmatmul.bf16.vlgmr.msra.gmra.mxu2 %v1755_v8  ;;  %1315 = vmatpush.bf16.msra.mxu1 %v2049_v2  ;;  %v1958_v2 = vld [vmem:[%s2956_s0 + $0xc0] sm:$0xf]  ;;  %v1799_v8 = vor.u32 %v1977_v0, %v1796_v36 }
  0xa4   :  { %1022 = vmatmul.bf16.vlgmr.msra.gmra.mxu3 %v1759_v12  ;;  %1343 = vmatpush.bf16.msra.mxu2 %v2054_v3  ;;  %v1699_v3 = vld [vmem:[%s2956_s0 + $0xd0] sm:$0xf0] }
  0xa5   :  { %1375 = vmatpush.bf16.msra.mxu3 %v2251_v40  ;;  %v1974_v40 = vld [vmem:[%s2956_s0 + $0x150] sm:$0xf0]  ;;  %v1702_v28 = vor.u32 %v1958_v2, %v1699_v3 }
  0xa6   :  { %v498_v20 = vpop.f32.mrf.mxu2  ;;  %v444_v50 = vpop.f32.mrf.mxu0  ;;  %1288 = vmatpush.bf16.msra.mxu0 %v2066_v5  ;;  %v1961_v5 = vld [vmem:[%s2956_s0 + $0xd4] sm:$0xf0] }
  0xa7   :  { %v526_v48 = vpop.f32.mrf.mxu3  ;;  %v499_v49 = vadd.f32 %v498_v20, %v471_v47  ;;  %v472_v51 = vpop.f32.mrf.mxu1  ;;  %v445_v52 = vadd.f32 %v2501_v33, %v444_v50  ;;  %1316 = vmatpush.bf16.msra.mxu1 %v2073_v6  ;;  %v1774_v6 = vld [vmem:[%s2956_s0 + $0x140] sm:$0xf] }
  0xa8   :  { %1344 = vmatpush.bf16.msra.mxu2 %v2078_v7  ;;  %v1705_v7 = vld [vmem:[%s2956_s0 + $0xc4] sm:$0xf]  ;;  %v1775_v62 = vor.u32 %v1974_v40, %v1774_v6 }
  0xa9   :  { %v2536_v53 = vadd.f32 %v526_v48, %v499_v49  ;;  %1376 = vmatpush.bf16.msra.mxu3 %v2262_v45  ;;  %v473_v1 = vadd.f32 %v472_v51, %v445_v52  ;;  %v1972_v45 = vld [vmem:[%s2956_s0 + $0x144] sm:$0xf]  ;;  %v1706_v57 = vor.u32 %v1961_v5, %v1705_v7  ;;  %v656_v51 = vunpack.c.h.b16 %v2494_v56 }
  0xaa   :  { %1289 = vmatpush.bf16.msra.mxu0 %v2090_v9  ;;  %v1779_v63 = vor.u32 %v1972_v45, %v1776_v54 }
  0xab   :  { %1317 = vmatpush.bf16.msra.mxu1 %v2097_v10  ;;  %v676_v5 = vpack.c.b16 %v656_v51, %v656_v51 }
  0xac   :  { %1345 = vmatpush.bf16.msra.mxu2 %v2102_v11 }
  0xad   :  { %1377 = vmatpush.bf16.msra.mxu3 %v2271_v46 }
  0xae   :  { %v500_v24 = vpop.f32.mrf.mxu2  ;;  %v447_v60 = vpop.f32.mrf.mxu0  ;;  %1290 = vmatpush.bf16.msra.mxu0 %v2114_v13 }
  0xaf   :  { %v528_v55 = vpop.f32.mrf.mxu3  ;;  %v501_v58 = vadd.f32 %v500_v24, %v473_v1  ;;  %v475_v61 = vpop.f32.mrf.mxu1  ;;  %v448_v32 = vadd.f32 %v2501_v33, %v447_v60  ;;  %1318 = vmatpush.bf16.msra.mxu1 %v2121_v14 }
  0xb0   :  { %1346 = vmatpush.bf16.msra.mxu2 %v2126_v15 }
  0xb1   :  { %v2571_v9 = vadd.f32 %v528_v55, %v501_v58  ;;  %v476_v10 = vadd.f32 %v475_v61, %v448_v32  ;;  %803 = vmatmul.bf16.gmra.mxu0 %v1702_v28  ;;  %1378 = vmatpush.bf16.msra.mxu3 %v2310_v59  ;;  %v1725_v59 = vld [vmem:[%s2956_s0 + $0xec] sm:$0xf] }
  0xb2   :  { %1728 = vmatmul.msk.bf16.gmra.mxu1 %vm420_vm0, %v1706_v57  ;;  %1291 = vmatpush.bf16.msra.mxu0 %v2138_v17 }
  0xb3   :  { %999 = vmatmul.bf16.gmra.mxu2 %v1775_v62  ;;  %1319 = vmatpush.bf16.msra.mxu1 %v2145_v18  ;;  %v1963_v18 = vld [vmem:[%s2956_s0 + $0xe8] sm:$0xf] }
  0xb4   :  { %1027 = vmatmul.bf16.gmra.mxu3 %v1779_v63  ;;  %1347 = vmatpush.bf16.msra.mxu2 %v2150_v19  ;;  %v1719_v19 = vld [vmem:[%s2956_s0 + $0xf8] sm:$0xf0] }
  0xb5   :  { %v1722_v38 = vor.u32 %v1963_v18, %v1719_v19 }
  0xb6   :  { %v503_v11 = vpop.f32.mrf.mxu2  ;;  %v449_v46 = vpop.f32.mrf.mxu0  ;;  %1292 = vmatpush.bf16.msra.mxu0 %v2162_v21  ;;  %v1966_v21 = vld [vmem:[%s2956_s0 + $0xfc] sm:$0xf0] }
  0xb7   :  { %v531_v13 = vpop.f32.mrf.mxu3  ;;  %v504_v15 = vadd.f32 %v503_v11, %v476_v10  ;;  %v477_v34 = vpop.f32.mrf.mxu1  ;;  %v450_v14 = vadd.f32 %v2501_v33, %v449_v46  ;;  %1320 = vmatpush.bf16.msra.mxu1 %v2169_v22  ;;  %v1794_v22 = vld [vmem:[%s2956_s0 + $0x168] sm:$0xf]  ;;  %v1726_v39 = vor.u32 %v1966_v21, %v1725_v59  ;;  %v1762_v10 = vld [vmem:[%s2956_s0 + $0x120] sm:$0xf]  ;;  %v1970_v11 = vld [vmem:[%s2956_s0 + $0x130] sm:$0xf0] }
  0xb8   :  { %1348 = vmatpush.bf16.msra.mxu2 %v2174_v23  ;;  %v1979_v23 = vld [vmem:[%s2956_s0 + $0x178] sm:$0xf0]  ;;  %v1770_v46 = vld [vmem:[%s2956_s0 + $0x128] sm:$0xf]  ;;  %v1763_v59 = vor.u32 %v1970_v11, %v1762_v10 }
  0xb9   :  { %v2582_v35 = vadd.f32 %v531_v13, %v504_v15  ;;  %v478_v17 = vadd.f32 %v477_v34, %v450_v14  ;;  %v1795_v44 = vor.u32 %v1979_v23, %v1794_v22  ;;  %v1968_v13 = vld [vmem:[%s2956_s0 + $0x124] sm:$0xf]  ;;  %v1764_v15 = vld [vmem:[%s2956_s0 + $0x134] sm:$0xf0]  ;;  %v1971_v34 = vld [vmem:[%s2956_s0 + $0x138] sm:$0xf0] }
  0xba   :  { %1293 = vmatpush.bf16.msra.mxu0 %v2186_v25  ;;  %v1839_v14 = vld [vmem:[%s2956_s0 + $0x1a4] sm:$0xf]  ;;  %v1767_v21 = vor.u32 %v1968_v13, %v1764_v15  ;;  %v1771_v0 = vor.u32 %v1971_v34, %v1770_v46  ;;  %v1994_v10 = vld [vmem:[%s2956_s0 + $0x204] sm:$0xf0] }
  0xbb   :  { %1321 = vmatpush.bf16.msra.mxu1 %v2193_v26 }
  0xbc   :  { %1349 = vmatpush.bf16.msra.mxu2 %v2198_v27 }
  0xbe   :  { %v505_v4 = vpop.f32.mrf.mxu2  ;;  %v452_v42 = vpop.f32.mrf.mxu0  ;;  %1294 = vmatpush.bf16.msra.mxu0 %v2208_v29 }
  0xbf   :  { %v533_v37 = vpop.f32.mrf.mxu3  ;;  %v506_v41 = vadd.f32 %v505_v4, %v478_v17  ;;  %v480_v43 = vpop.f32.mrf.mxu1  ;;  %v453_v12 = vadd.f32 %v2501_v33, %v452_v42  ;;  %1322 = vmatpush.bf16.msra.mxu1 %v2213_v30  ;;  %v1749_v30 = vld [vmem:[%s2956_s0 + $0x190] sm:$0x11]  ;;  %v1984_v17 = vld [vmem:[%s2956_s0 + $0x1b4] sm:$0xf0] }
  0xc0   :  { %1350 = vmatpush.bf16.msra.mxu2 %v2218_v31  ;;  %v1666_v31 = vld [vmem:[%s2956_s0 + $0x114] sm:$0x1]  ;;  %v933_v1 = vunpack.c.l.b16 %v1749_v30  ;;  %v934_v2 = vunpack.c.h.b16 %v1749_v30  ;;  %v1840_v36 = vor.u32 %v1984_v17, %v1839_v14 }
  0xc1   :  { %v2615_v27 = vadd.f32 %v533_v37, %v506_v41  ;;  %v481_v25 = vadd.f32 %v480_v43, %v453_v12  ;;  %808 = vmatmul.bf16.gmra.mxu0 %v1722_v38  ;;  %v657_v52 = vunpack.c.l.b16 %v1666_v31  ;;  %v1975_v12 = vld [vmem:[%s2956_s0 + $0x158] sm:$0xf0] }
  0xc2   :  { %1729 = vmatmul.msk.bf16.gmra.mxu1 %vm420_vm0, %v1726_v39  ;;  %v953_v24 = vpack.c.b16 %v933_v1, %v933_v1  ;;  %v954_v55 = vpack.c.b16 %v934_v2, %v934_v2 }
  0xc3   :  { %1004 = vmatmul.bf16.gmra.mxu2 %v1795_v44  ;;  %v677_v6 = vpack.c.b16 %v657_v52, %v657_v52 }
  0xc4   :  { %1032 = vmatmul.bf16.gmra.mxu3 %v1799_v8 }
  0xc6   :  { %v508_v26 = vpop.f32.mrf.mxu2  ;;  %v454_v20 = vpop.f32.mrf.mxu0 }
  0xc7   :  { %v536_v16 = vpop.f32.mrf.mxu3  ;;  %v509_v47 = vadd.f32 %v508_v26, %v481_v25  ;;  %v482_v48 = vpop.f32.mrf.mxu1  ;;  %v455_v29 = vadd.f32 %v2501_v33, %v454_v20  ;;  %v1973_v25 = vld [vmem:[%s2956_s0 + $0x14c] sm:$0xf]  ;;  %v1784_v26 = vld [vmem:[%s2956_s0 + $0x15c] sm:$0xf0] }
  0xc8   :  { %v1989_v20 = vld [vmem:[%s2956_s0 + $0x1dc] sm:$0xf0] }
  0xc9   :  { %v2626_v49 = vadd.f32 %v536_v16, %v509_v47  ;;  %v483_v50 = vadd.f32 %v482_v48, %v455_v29  ;;  %v1976_v16 = vld [vmem:[%s2956_s0 + $0x160] sm:$0xf0]  ;;  %v1859_v47 = vld [vmem:[%s2956_s0 + $0x1cc] sm:$0xf] }
  0xce   :  { %v510_v3 = vpop.f32.mrf.mxu2  ;;  %v457_v45 = vpop.f32.mrf.mxu0 }
  0xcf   :  { %v538_v7 = vpop.f32.mrf.mxu3  ;;  %v511_v40 = vadd.f32 %v510_v3, %v483_v50  ;;  %v485_v54 = vpop.f32.mrf.mxu1  ;;  %v458_v28 = vadd.f32 %v2501_v33, %v457_v45  ;;  %v1787_v50 = vor.u32 %v1973_v25, %v1784_v26  ;;  %v1860_v3 = vor.u32 %v1989_v20, %v1859_v47 }
  0xd1   :  { %v2630_v57 = vadd.f32 %v538_v7, %v511_v40  ;;  %v486_v58 = vadd.f32 %v485_v54, %v458_v28  ;;  %813 = vmatmul.bf16.gmra.mxu0 %v676_v5 }
  0xd2   :  { %1730 = vmatmul.msk.bf16.gmra.mxu1 %vm420_vm0, %v677_v6 }
  0xd3   :  { %1009 = vmatmul.bf16.gmra.mxu2 %v953_v24 }
  0xd4   :  { %1037 = vmatmul.bf16.gmra.mxu3 %v954_v55 }
  0xd6   :  { %v513_v56 = vpop.f32.mrf.mxu2  ;;  %v459_v62 = vpop.f32.mrf.mxu0 }
  0xd7   :  { %v541_v60 = vpop.f32.mrf.mxu3  ;;  %v514_v61 = vadd.f32 %v513_v56, %v486_v58  ;;  %v487_v63 = vpop.f32.mrf.mxu1  ;;  %v1980_v56 = vld [vmem:[%s2956_s0 + $0x180] sm:$0xf0]  ;;  %v1981_v62 = vld [vmem:[%s2956_s0 + $0x188] sm:$0xf0] }
  0xd8   :  { %v1879_v63 = vld [vmem:[%s2956_s0 + $0x1f4] sm:$0xf] }
  0xd9   :  { %v2633_v32 = vadd.f32 %v541_v60, %v514_v61  ;;  %v1978_v60 = vld [vmem:[%s2956_s0 + $0x174] sm:$0xf]  ;;  %v1804_v61 = vld [vmem:[%s2956_s0 + $0x184] sm:$0xf0] }
  0xda   :  { %v1807_v34 = vor.u32 %v1978_v60, %v1804_v61  ;;  %v1983_v60 = vld [vmem:[%s2956_s0 + $0x1b0] sm:$0xf]  ;;  %v1849_v61 = vld [vmem:[%s2956_s0 + $0x1c0] sm:$0xf0] }
  0xde   :  { %v515_v18 = vpop.f32.mrf.mxu2  ;;  %v554_v22 = vpop.f32.mrf.mxu0 }
  0xdf   :  { %v543_v19 = vpop.f32.mrf.mxu3  ;;  %v715_v23 = vpop.f32.mrf.mxu1  ;;  %v2660_v4 = vadd.f32 %v554_v22, %v2536_v53  ;;  %v1782_v53 = vld [vmem:[%s2956_s0 + $0x148] sm:$0xf] }
  0xe0   :  { %v716_v37 = vadd.f32 %v2501_v33, %v715_v23  ;;  %v1783_v30 = vor.u32 %v1975_v12, %v1782_v53 }
  0xe1   :  { %1050 = vmatmul.bf16.vlgmr.msrb.gmra.mxu0 %v1763_v59  ;;  %v1880_v59 = vor.u32 %v1994_v10, %v1879_v63 }
  0xe2   :  { %1078 = vmatmul.bf16.vlgmr.msrb.gmra.mxu1 %v1767_v21 }
  0xe3   :  { %1812 = vmatmul.msk.bf16.vlgmr.msrb.gmra.mxu2 %vm420_vm0, %v1771_v0 }
  0xe4   :  { %1267 = vmatmul.bf16.vlgmr.msrb.gmra.mxu3 %v1840_v36 }
  0xe6   :  { %v743_v38 = vpop.f32.mrf.mxu2  ;;  %v556_v42 = vpop.f32.mrf.mxu0 }
  0xe7   :  { %v771_v39 = vpop.f32.mrf.mxu3  ;;  %v744_v41 = vadd.f32 %v743_v38, %v716_v37  ;;  %v717_v43 = vpop.f32.mrf.mxu1  ;;  %v2665_v44 = vadd.f32 %v556_v42, %v2571_v9  ;;  %v1790_v9 = vld [vmem:[%s2956_s0 + $0x150] sm:$0xf]  ;;  %v1751_v42 = vld [vmem:[%s2956_s0 + $0x1a0] sm:$0x1] }
  0xe8   :  { %v718_v48 = vadd.f32 %v2501_v33, %v717_v43  ;;  %v1791_v2 = vor.u32 %v1976_v16, %v1790_v9  ;;  %v2750_v43 = vld [vmem:[%s2956_s0 + $0x21c] sm:$0x11]  ;;  %v937_v26 = vunpack.c.l.b16 %v1751_v42 }
  0xe9   :  { %v2667_v8 = vadd.f32 %v771_v39, %v744_v41  ;;  %v1750_v41 = vld [vmem:[%s2956_s0 + $0x198] sm:$0x11]  ;;  %v1206_v9 = vunpack.c.l.b16 %v2750_v43 }
  0xea   :  { %v935_v12 = vunpack.c.l.b16 %v1750_v41  ;;  %v936_v25 = vunpack.c.h.b16 %v1750_v41 }
  0xec   :  { %v955_v20 = vpack.c.b16 %v935_v12, %v935_v12  ;;  %v1987_v12 = vld [vmem:[%s2956_s0 + $0x1d0] sm:$0xf] }
  0xee   :  { %v745_v31 = vpop.f32.mrf.mxu2  ;;  %v559_v52 = vpop.f32.mrf.mxu0 }
  0xef   :  { %v773_v29 = vpop.f32.mrf.mxu3  ;;  %v746_v51 = vadd.f32 %v745_v31, %v718_v48  ;;  %v720_v1 = vpop.f32.mrf.mxu1  ;;  %v2695_v7 = vadd.f32 %v559_v52, %v2582_v35  ;;  %v1802_v35 = vld [vmem:[%s2956_s0 + $0x170] sm:$0xf]  ;;  %v956_v48 = vpack.c.b16 %v936_v25, %v936_v25  ;;  %v1867_v25 = vld [vmem:[%s2956_s0 + $0x1d4] sm:$0xf] }
  0xf0   :  { %v721_v6 = vadd.f32 %v2501_v33, %v720_v1  ;;  %v1803_v46 = vor.u32 %v1980_v56, %v1802_v35  ;;  %v1847_v35 = vld [vmem:[%s2956_s0 + $0x1ac] sm:$0xf]  ;;  %v1985_v56 = vld [vmem:[%s2956_s0 + $0x1bc] sm:$0xf0] }
  0xf1   :  { %v2697_v5 = vadd.f32 %v773_v29, %v746_v51  ;;  %1055 = vmatmul.bf16.gmra.mxu0 %v1783_v30  ;;  %v1226_v51 = vpack.c.b16 %v1206_v9, %v1206_v9  ;;  %v1869_v9 = vld [vmem:[%s2956_s0 + $0x1e8] sm:$0xf0] }
  0xf2   :  { %1083 = vmatmul.bf16.gmra.mxu1 %v1787_v50  ;;  %v957_v50 = vpack.c.b16 %v937_v26, %v937_v26  ;;  %v1990_v26 = vld [vmem:[%s2956_s0 + $0x1e4] sm:$0xf0] }
  0xf3   :  { %1813 = vmatmul.msk.bf16.gmra.mxu2 %vm420_vm0, %v1791_v2 }
  0xf4   :  { %1272 = vmatmul.bf16.gmra.mxu3 %v1860_v3 }
  0xf6   :  { %v748_v40 = vpop.f32.mrf.mxu2  ;;  %v561_v24 = vpop.f32.mrf.mxu0 }
  0xf7   :  { %v776_v45 = vpop.f32.mrf.mxu3  ;;  %v749_v54 = vadd.f32 %v748_v40, %v721_v6  ;;  %v722_v55 = vpop.f32.mrf.mxu1  ;;  %v2702_v28 = vadd.f32 %v561_v24, %v2615_v27  ;;  %v1810_v27 = vld [vmem:[%s2956_s0 + $0x178] sm:$0xf] }
  0xf8   :  { %v723_v11 = vadd.f32 %v2501_v33, %v722_v55  ;;  %v1811_v19 = vor.u32 %v1981_v62, %v1810_v27  ;;  %v1841_v55 = vld [vmem:[%s2956_s0 + $0x1b8] sm:$0xf0]  ;;  %v1855_v27 = vld [vmem:[%s2956_s0 + $0x1b4] sm:$0xf]  ;;  %v1986_v62 = vld [vmem:[%s2956_s0 + $0x1c4] sm:$0xf0] }
  0xf9   :  { %v2704_v58 = vadd.f32 %v776_v45, %v749_v54 }
  0xfe   :  { %v750_v13 = vpop.f32.mrf.mxu2  ;;  %v564_v17 = vpop.f32.mrf.mxu0 }
  0xff   :  { %v778_v15 = vpop.f32.mrf.mxu3  ;;  %v751_v14 = vadd.f32 %v750_v13, %v723_v11  ;;  %v725_v18 = vpop.f32.mrf.mxu1  ;;  %v2732_v21 = vadd.f32 %v564_v17, %v2626_v49  ;;  %v1848_v13 = vor.u32 %v1985_v56, %v1847_v35 }
 0x100   :  { %v726_v23 = vadd.f32 %v2501_v33, %v725_v18 }
 0x101   :  { %v2734_v22 = vadd.f32 %v778_v15, %v751_v14  ;;  %1060 = vmatmul.bf16.gmra.mxu0 %v1803_v46  ;;  %v1856_v14 = vor.u32 %v1986_v62, %v1855_v27 }
 0x102   :  { %1088 = vmatmul.bf16.gmra.mxu1 %v1807_v34  ;;  %v1852_v34 = vor.u32 %v1983_v60, %v1849_v61 }
 0x103   :  { %1814 = vmatmul.msk.bf16.gmra.mxu2 %vm420_vm0, %v1811_v19  ;;  %v573_v19 = vmax.f32 %v2660_v4, 0.0  ;;  %v1861_v4 = vld [vmem:[%s2956_s0 + $0x1e0] sm:$0xf0] }
 0x104   :  { %1277 = vmatmul.bf16.gmra.mxu3 %v1880_v59 }
 0x106   :  { %v753_v0 = vpop.f32.mrf.mxu2  ;;  %v566_v38 = vpop.f32.mrf.mxu0 }
 0x107   :  { %v781_v36 = vpop.f32.mrf.mxu3  ;;  %v754_v37 = vadd.f32 %v753_v0, %v726_v23  ;;  %v727_v39 = vpop.f32.mrf.mxu1  ;;  %v2742_v49 = vadd.f32 %v566_v38, %v2630_v57 }
 0x108   :  { %v728_v16 = vadd.f32 %v2501_v33, %v727_v39 }
 0x109   :  { %v2752_v53 = vadd.f32 %v781_v36, %v754_v37 }
 0x10e   :  { %v755_v57 = vpop.f32.mrf.mxu2  ;;  %v569_v29 = vpop.f32.mrf.mxu0 }
 0x10f   :  { %v783_v47 = vpop.f32.mrf.mxu3  ;;  %v756_v31 = vadd.f32 %v755_v57, %v728_v16  ;;  %v730_v30 = vpop.f32.mrf.mxu1  ;;  %v2757_v52 = vadd.f32 %v569_v29, %v2633_v32  ;;  %v1982_v32 = vld [vmem:[%s2956_s0 + $0x1a8] sm:$0xf]  ;;  %v574_v16 = vmax.f32 %v2665_v44, 0.0 }
 0x110   :  { %v731_v2 = vadd.f32 %v2501_v33, %v730_v30  ;;  %v1844_v11 = vor.u32 %v1982_v32, %v1841_v55  ;;  %v1864_v30 = vor.u32 %v1987_v12, %v1861_v4  ;;  %v575_v32 = vmax.f32 %v2695_v7, 0.0  ;;  %v1881_v7 = vld [vmem:[%s2956_s0 + $0x208] sm:$0xf0] }
 0x111   :  { %v2759_v1 = vadd.f32 %v783_v47, %v756_v31  ;;  %1065 = vmatmul.bf16.gmra.mxu0 %v955_v20  ;;  %v1875_v47 = vld [vmem:[%s2956_s0 + $0x1dc] sm:$0xf]  ;;  %v1991_v20 = vld [vmem:[%s2956_s0 + $0x1ec] sm:$0xf0] }
 0x112   :  { %1093 = vmatmul.bf16.gmra.mxu1 %v956_v48 }
 0x113   :  { %1815 = vmatmul.msk.bf16.gmra.mxu2 %vm420_vm0, %v957_v50  ;;  %v1868_v50 = vor.u32 %v1990_v26, %v1867_v25  ;;  %v577_v26 = vmax.f32 %v2732_v21, 0.0 }
 0x114   :  { %1282 = vmatmul.bf16.gmra.mxu3 %v1226_v51 }
 0x116   :  { %v758_v3 = vpop.f32.mrf.mxu2  ;;  %v571_v45 = vpop.f32.mrf.mxu0 }
 0x117   :  { %v786_v6 = vpop.f32.mrf.mxu3  ;;  %v759_v40 = vadd.f32 %v758_v3, %v731_v2  ;;  %v732_v54 = vpop.f32.mrf.mxu1 }
 0x119   :  { %v2763_v24 = vadd.f32 %v786_v6, %v759_v40  ;;  %v1876_v6 = vor.u32 %v1991_v20, %v1875_v47 }
 0x11e   :  { %v760_v63 = vpop.f32.mrf.mxu2  ;;  %v799_v15 = vpop.f32.mrf.mxu0 }
 0x11f   :  { %v788_v10 = vpop.f32.mrf.mxu3  ;;  %v827_v46 = vpop.f32.mrf.mxu1  ;;  %v800_v17 = vadd.f32 %v799_v15, %v2667_v8  ;;  %v1995_v15 = vld [vmem:[%s2956_s0 + $0x20c] sm:$0xf0] }
 0x121   :  { %v828_v18 = vadd.f32 %v827_v46, %v800_v17  ;;  %1295 = vmatmul.bf16.vlgmr.msra.gmra.mxu0 %v1844_v11  ;;  %v1992_v11 = vld [vmem:[%s2956_s0 + $0x1f8] sm:$0xf]  ;;  %v1889_v46 = vld [vmem:[%s2956_s0 + $0x210] sm:$0xf0]  ;;  %v1895_v17 = vld [vmem:[%s2956_s0 + $0x204] sm:$0xf] }
 0x122   :  { %1323 = vmatmul.bf16.vlgmr.msra.gmra.mxu1 %v1848_v13  ;;  %v1887_v13 = vld [vmem:[%s2956_s0 + $0x1fc] sm:$0xf] }
 0x123   :  { %1351 = vmatmul.bf16.vlgmr.msra.gmra.mxu2 %v1852_v34  ;;  %v846_v59 = vmax.f32 %v828_v18, 0.0  ;;  %v576_v34 = vmax.f32 %v2702_v28, 0.0  ;;  %v1996_v18 = vld [vmem:[%s2956_s0 + $0x214] sm:$0xf0] }
 0x124   :  { %1897 = vmatmul.msk.bf16.vlgmr.msra.gmra.mxu3 %vm420_vm0, %v1856_v14 }
 0x125   :  { %v2792_v23 = vmax.f32 %v573_v19, %v846_v59 }
 0x126   :  { %v995_v0 = vpop.f32.mrf.mxu2  ;;  %v801_v38 = vpop.f32.mrf.mxu0 }
 0x127   :  { %v1023_v36 = vpop.f32.mrf.mxu3  ;;  %v996_v37 = vadd.f32 %v2501_v33, %v995_v0  ;;  %v829_v39 = vpop.f32.mrf.mxu1  ;;  %v802_v41 = vadd.f32 %v801_v38, %v2697_v5  ;;  %v1988_v5 = vld [vmem:[%s2956_s0 + $0x1d8] sm:$0xf] }
 0x128   :  { %v1872_v44 = vor.u32 %v1988_v5, %v1869_v9 }
 0x129   :  { %v2796_v8 = vadd.f32 %v1023_v36, %v996_v37  ;;  %v830_v42 = vadd.f32 %v829_v39, %v802_v41  ;;  %v1884_v36 = vor.u32 %v1992_v11, %v1881_v7  ;;  %v1888_v37 = vor.u32 %v1995_v15, %v1887_v13 }
 0x12b   :  { %v847_v57 = vmax.f32 %v830_v42, 0.0  ;;  %v1896_v42 = vor.u32 %v1996_v18, %v1895_v17 }
 0x12d   :  { %v2823_v48 = vmax.f32 %v574_v16, %v847_v57 }
 0x12e   :  { %v997_v31 = vpop.f32.mrf.mxu2  ;;  %v804_v2 = vpop.f32.mrf.mxu0 }
 0x12f   :  { %v1025_v29 = vpop.f32.mrf.mxu3  ;;  %v998_v51 = vadd.f32 %v2501_v33, %v997_v31  ;;  %v832_v3 = vpop.f32.mrf.mxu1  ;;  %v805_v40 = vadd.f32 %v804_v2, %v2704_v58 }
 0x131   :  { %v2827_v45 = vadd.f32 %v1025_v29, %v998_v51  ;;  %v833_v54 = vadd.f32 %v832_v3, %v805_v40  ;;  %1300 = vmatmul.bf16.gmra.mxu0 %v1864_v30  ;;  %v1836_v30 = vld [vmem:[%s2956_s0 + $0x22c] sm:$0x1]  ;;  %v1207_v51 = vunpack.c.h.b16 %v2750_v43 }
 0x132   :  { %1328 = vmatmul.bf16.gmra.mxu1 %v1868_v50 }
 0x133   :  { %1356 = vmatmul.bf16.gmra.mxu2 %v1872_v44  ;;  %v848_v55 = vmax.f32 %v833_v54, 0.0  ;;  %v1210_v44 = vunpack.c.l.b16 %v1836_v30 }
 0x134   :  { %1898 = vmatmul.msk.bf16.gmra.mxu3 %vm420_vm0, %v1876_v6  ;;  %v578_v6 = vmax.f32 %v2742_v49, 0.0  ;;  %v579_v49 = vmax.f32 %v2757_v52, 0.0 }
 0x135   :  { %v2831_v35 = vmax.f32 %v575_v32, %v848_v55 }
 0x136   :  { %v1000_v56 = vpop.f32.mrf.mxu2  ;;  %v806_v27 = vpop.f32.mrf.mxu0 }
 0x137   :  { %v1028_v60 = vpop.f32.mrf.mxu3  ;;  %v1001_v61 = vadd.f32 %v2501_v33, %v1000_v56  ;;  %v834_v62 = vpop.f32.mrf.mxu1  ;;  %v807_v58 = vadd.f32 %v806_v27, %v2734_v22  ;;  %v1993_v22 = vld [vmem:[%s2956_s0 + $0x200] sm:$0xf] }
 0x138   :  { %v1892_v28 = vor.u32 %v1993_v22, %v1889_v46 }
 0x139   :  { %v2835_v63 = vadd.f32 %v1028_v60, %v1001_v61  ;;  %v835_v10 = vadd.f32 %v834_v62, %v807_v58  ;;  %v1230_v58 = vpack.c.b16 %v1210_v44, %v1210_v44 }
 0x13b   :  { %v849_v14 = vmax.f32 %v835_v10, 0.0 }
 0x13d   :  { %v2862_v19 = vmax.f32 %v576_v34, %v849_v14 }
 0x13e   :  { %v1002_v59 = vpop.f32.mrf.mxu2  ;;  %v809_v39 = vpop.f32.mrf.mxu0 }
 0x13f   :  { %v1030_v0 = vpop.f32.mrf.mxu3  ;;  %v1003_v38 = vadd.f32 %v2501_v33, %v1002_v59  ;;  %v837_v41 = vpop.f32.mrf.mxu1  ;;  %v810_v12 = vadd.f32 %v809_v39, %v2752_v53  ;;  %v1835_v53 = vld [vmem:[%s2956_s0 + $0x224] sm:$0x11] }
 0x140   :  { %v1208_v2 = vunpack.c.l.b16 %v1835_v53  ;;  %v1209_v3 = vunpack.c.h.b16 %v1835_v53 }
 0x141   :  { %v2866_v4 = vadd.f32 %v1030_v0, %v1003_v38  ;;  %v838_v25 = vadd.f32 %v837_v41, %v810_v12  ;;  %1305 = vmatmul.bf16.gmra.mxu0 %v1884_v36 }
 0x142   :  { %1333 = vmatmul.bf16.gmra.mxu1 %v1888_v37  ;;  %v1228_v56 = vpack.c.b16 %v1208_v2, %v1208_v2  ;;  %v1229_v62 = vpack.c.b16 %v1209_v3, %v1209_v3 }
 0x143   :  { %1361 = vmatmul.bf16.gmra.mxu2 %v1892_v28  ;;  %v850_v5 = vmax.f32 %v838_v25, 0.0 }
 0x144   :  { %1899 = vmatmul.msk.bf16.gmra.mxu3 %vm420_vm0, %v1896_v42 }
 0x145   :  { %v2870_v9 = vmax.f32 %v577_v26, %v850_v5 }
 0x146   :  { %v1005_v16 = vpop.f32.mrf.mxu2  ;;  %v811_v20 = vpop.f32.mrf.mxu0 }
 0x147   :  { %v1033_v57 = vpop.f32.mrf.mxu3  ;;  %v1006_v47 = vadd.f32 %v2501_v33, %v1005_v16  ;;  %v839_v31 = vpop.f32.mrf.mxu1  ;;  %v812_v29 = vadd.f32 %v811_v20, %v2759_v1  ;;  %v1227_v1 = vpack.c.b16 %v1207_v51, %v1207_v51 }
 0x149   :  { %v2880_v21 = vadd.f32 %v1033_v57, %v1006_v47  ;;  %v840_v50 = vadd.f32 %v839_v31, %v812_v29 }
 0x14b   :  { %v851_v40 = vmax.f32 %v840_v50, 0.0 }
 0x14d   :  { %v2884_v54 = vmax.f32 %v578_v6, %v851_v40 }
 0x14e   :  { %v1007_v32 = vpop.f32.mrf.mxu2  ;;  %v814_v61 = vpop.f32.mrf.mxu0 }
 0x14f   :  { %v1035_v55 = vpop.f32.mrf.mxu3  ;;  %v1008_v60 = vadd.f32 %v2501_v33, %v1007_v32  ;;  %v842_v27 = vpop.f32.mrf.mxu1  ;;  %v815_v43 = vadd.f32 %v814_v61, %v2763_v24 }
 0x151   :  { %v1036_v10 = vadd.f32 %v1035_v55, %v1008_v60  ;;  %v843_v11 = vadd.f32 %v842_v27, %v815_v43  ;;  %1310 = vmatmul.bf16.gmra.mxu0 %v1227_v1 }
 0x152   :  { %1338 = vmatmul.bf16.gmra.mxu1 %v1228_v56 }
 0x153   :  { %1366 = vmatmul.bf16.gmra.mxu2 %v1229_v62  ;;  %v852_v7 = vmax.f32 %v843_v11, 0.0 }
 0x154   :  { %1900 = vmatmul.msk.bf16.gmra.mxu3 %vm420_vm0, %v1230_v58 }
 0x155   :  { %v2890_v13 = vmax.f32 %v579_v49, %v852_v7 }
 0x156   :  { %v1010_v15 = vpop.f32.mrf.mxu2  ;;  %v816_v34 = vpop.f32.mrf.mxu0 }
 0x157   :  { %v1038_v22 = vpop.f32.mrf.mxu3  ;;  %v1011_v46 = vadd.f32 %v2501_v33, %v1010_v15  ;;  %v844_v14 = vpop.f32.mrf.mxu1 }
 0x159   :  { %v1039_v17 = vadd.f32 %v1038_v22, %v1011_v46 }
 0x15e   :  { %v1012_v24 = vpop.f32.mrf.mxu2  ;;  %v1051_v59 = vpop.f32.mrf.mxu0 }
 0x15f   :  { %v1040_v18 = vpop.f32.mrf.mxu3  ;;  %v1079_v0 = vpop.f32.mrf.mxu1  ;;  %v1052_v36 = vadd.f32 %v1051_v59, %v2796_v8 }
 0x161   :  { %v1080_v37 = vadd.f32 %v1079_v0, %v1052_v36 }
 0x166   :  { %v1107_v38 = vpop.f32.mrf.mxu2  ;;  %v1053_v41 = vpop.f32.mrf.mxu0 }
 0x167   :  { %v1268_v39 = vpop.f32.mrf.mxu3  ;;  %v2894_v52 = vadd.f32 %v1107_v38, %v1080_v37  ;;  %v1081_v28 = vpop.f32.mrf.mxu1  ;;  %v1054_v42 = vadd.f32 %v1053_v41, %v2827_v45 }
 0x169   :  { %v1082_v12 = vadd.f32 %v1081_v28, %v1054_v42 }
 0x16e   :  { %v1109_v25 = vpop.f32.mrf.mxu2  ;;  %v1056_v16 = vpop.f32.mrf.mxu0 }
 0x16f   :  { %v1270_v26 = vpop.f32.mrf.mxu3  ;;  %v2897_v5 = vadd.f32 %v1109_v25, %v1082_v12  ;;  %v1084_v57 = vpop.f32.mrf.mxu1  ;;  %v1057_v47 = vadd.f32 %v1056_v16, %v2835_v63  ;;  %v1126_v16 = vmax.f32 %v2894_v52, 0.0 }
 0x171   :  { %v1085_v20 = vadd.f32 %v1084_v57, %v1057_v47 }
 0x176   :  { %v1112_v8 = vpop.f32.mrf.mxu2  ;;  %v1058_v29 = vpop.f32.mrf.mxu0 }
 0x177   :  { %v1273_v31 = vpop.f32.mrf.mxu3  ;;  %v2900_v53 = vadd.f32 %v1112_v8, %v1085_v20  ;;  %v1086_v30 = vpop.f32.mrf.mxu1  ;;  %v1059_v50 = vadd.f32 %v1058_v29, %v2866_v4 }
 0x178   :  { %v1274_v29 = vadd.f32 %v2501_v33, %v1273_v31 }
 0x179   :  { %v1087_v51 = vadd.f32 %v1086_v30, %v1059_v50 }
 0x17e   :  { %v1114_v45 = vpop.f32.mrf.mxu2  ;;  %v1061_v44 = vpop.f32.mrf.mxu0 }
 0x17f   :  { %v1275_v2 = vpop.f32.mrf.mxu3  ;;  %v2903_v3 = vadd.f32 %v1114_v45, %v1087_v51  ;;  %v1089_v6 = vpop.f32.mrf.mxu1  ;;  %v1062_v40 = vadd.f32 %v1061_v44, %v2880_v21 }
 0x181   :  { %v1090_v32 = vadd.f32 %v1089_v6, %v1062_v40  ;;  %v1127_v6 = vmax.f32 %v2897_v5, 0.0 }
 0x186   :  { %v1117_v63 = vpop.f32.mrf.mxu2  ;;  %v1063_v56 = vpop.f32.mrf.mxu0 }
 0x187   :  { %v2906_v55 = vpop.f32.mrf.mxu3  ;;  %v2908_v1 = vadd.f32 %v1117_v63, %v1090_v32  ;;  %v1091_v60 = vpop.f32.mrf.mxu1  ;;  %v1064_v61 = vadd.f32 %v1063_v56, %v1036_v10  ;;  %v1269_v10 = vadd.f32 %v2501_v33, %v1268_v39 }
 0x189   :  { %v1092_v27 = vadd.f32 %v1091_v60, %v1064_v61  ;;  %v1276_v60 = vadd.f32 %v2501_v33, %v1275_v2 }
 0x18e   :  { %v1119_v4 = vpop.f32.mrf.mxu2  ;;  %v1066_v43 = vpop.f32.mrf.mxu0 }
 0x18f   :  { %v2910_v62 = vpop.f32.mrf.mxu3  ;;  %v2912_v58 = vadd.f32 %v1119_v4, %v1092_v27  ;;  %v1094_v11 = vpop.f32.mrf.mxu1  ;;  %v1067_v49 = vadd.f32 %v1066_v43, %v1039_v17  ;;  %v1271_v17 = vadd.f32 %v2501_v33, %v1270_v26  ;;  %v2015_v33 = vld [vmem:[%s2955_s2] ss:$0 sm:$0xff] }
 0x191   :  { %v1095_v7 = vadd.f32 %v1094_v11, %v1067_v49  ;;  %v1128_v49 = vmax.f32 %v2900_v53, 0.0 }
 0x196   :  { %v1122_v21 = vpop.f32.mrf.mxu2  ;;  %v1068_v46 = vpop.f32.mrf.mxu0 }
 0x197   :  { %v2914_v15 = vpop.f32.mrf.mxu3  ;;  %v2916_v22 = vadd.f32 %v1122_v21, %v1095_v7  ;;  %v1096_v34 = vpop.f32.mrf.mxu1 }
 0x19e   :  { %v1124_v14 = vpop.f32.mrf.mxu2  ;;  %v1296_v18 = vpop.f32.mrf.mxu0 }
 0x19f   :  { %v1285_v24 = vpop.f32.mrf.mxu3  ;;  %v1324_v59 = vpop.f32.mrf.mxu1  ;;  %v1297_v0 = vadd.f32 %v1296_v18, %v1269_v10 }
 0x1a1   :  { %v1325_v36 = vadd.f32 %v1324_v59, %v1297_v0  ;;  %v1129_v59 = vmax.f32 %v2903_v3, 0.0 }
 0x1a6   :  { %v1352_v37 = vpop.f32.mrf.mxu2  ;;  %v1298_v28 = vpop.f32.mrf.mxu0 }
 0x1a7   :  { %v1380_v38 = vpop.f32.mrf.mxu3  ;;  %v1353_v41 = vadd.f32 %v1352_v37, %v1325_v36  ;;  %v1326_v42 = vpop.f32.mrf.mxu1  ;;  %v1299_v25 = vadd.f32 %v1298_v28, %v1271_v17 }
 0x1a9   :  { %v1381_v12 = vadd.f32 %v1380_v38, %v1353_v41  ;;  %v1327_v20 = vadd.f32 %v1326_v42, %v1299_v25  ;;  %v1281_v41 = vadd.f32 %v2015_v33, %v2910_v62  ;;  %v1284_v62 = vadd.f32 %v2015_v33, %v2914_v15 }
 0x1ab   :  { %v1399_v57 = vmax.f32 %v1381_v12, 0.0 }
 0x1ad   :  { %v1406_v47 = vmax.f32 %v1126_v16, %v1399_v57  ;;  %v1130_v57 = vmax.f32 %v2908_v1, 0.0  ;;  %v1131_v1 = vmax.f32 %v2912_v58, 0.0 }
 0x1ae   :  { %v1354_v8 = vpop.f32.mrf.mxu2  ;;  %v1301_v51 = vpop.f32.mrf.mxu0 }
 0x1af   :  { %v1382_v39 = vpop.f32.mrf.mxu3  ;;  %v1413_v30 = vmax.f32 %v2792_v23, %v1406_v47  ;;  %v1355_v50 = vadd.f32 %v1354_v8, %v1327_v20  ;;  %v1329_v45 = vpop.f32.mrf.mxu1  ;;  %v1302_v44 = vadd.f32 %v1301_v51, %v1274_v29 }
 0x1b1   :  { %v1383_v26 = vadd.f32 %v1382_v39, %v1355_v50  ;;  %v1330_v63 = vadd.f32 %v1329_v45, %v1302_v44 }
 0x1b3   :  { %v1400_v40 = vmax.f32 %v1383_v26, 0.0 }
 0x1b5   :  { %v1407_v32 = vmax.f32 %v1127_v6, %v1400_v40 }
 0x1b6   :  { %v1357_v52 = vpop.f32.mrf.mxu2  ;;  %v1303_v31 = vpop.f32.mrf.mxu0 }
 0x1b7   :  { %v1385_v56 = vpop.f32.mrf.mxu3  ;;  %v1414_v61 = vmax.f32 %v2823_v48, %v1407_v32  ;;  %v1358_v27 = vadd.f32 %v1357_v52, %v1330_v63  ;;  %v1331_v4 = vpop.f32.mrf.mxu1  ;;  %v1304_v11 = vadd.f32 %v1303_v31, %v1276_v60  ;;  %v1279_v48 = vadd.f32 %v2015_v33, %v2906_v55 }
 0x1b9   :  { %v2000_v23 = vpack.c.bf16 %v1414_v61, %v1413_v30  ;;  %v1386_v43 = vadd.f32 %v1385_v56, %v1358_v27  ;;  %v1332_v21 = vadd.f32 %v1331_v4, %v1304_v11 }
 0x1bb   :  { %2001 = vst [vmem:[%s2957_s3] sm:$0xff] %v2000_v23   ;;  %v1401_v5 = vmax.f32 %v1386_v43, 0.0 }
 0x1bd   :  { %v1408_v7 = vmax.f32 %v1128_v49, %v1401_v5 }
 0x1be   :  { %v1359_v46 = vpop.f32.mrf.mxu2  ;;  %v1306_v24 = vpop.f32.mrf.mxu0 }
 0x1bf   :  { %v1387_v34 = vpop.f32.mrf.mxu3  ;;  %v1415_v2 = vmax.f32 %v2831_v35, %v1408_v7  ;;  %v1360_v14 = vadd.f32 %v1359_v46, %v1332_v21  ;;  %v1334_v53 = vpop.f32.mrf.mxu1  ;;  %v1307_v18 = vadd.f32 %v1306_v24, %v1279_v48 }
 0x1c1   :  { %v1388_v10 = vadd.f32 %v1387_v34, %v1360_v14  ;;  %v1335_v37 = vadd.f32 %v1334_v53, %v1307_v18 }
 0x1c3   :  { %v1402_v0 = vmax.f32 %v1388_v10, 0.0 }
 0x1c5   :  { %v1409_v36 = vmax.f32 %v1129_v59, %v1402_v0 }
 0x1c6   :  { %v1362_v38 = vpop.f32.mrf.mxu2  ;;  %v1308_v55 = vpop.f32.mrf.mxu0 }
 0x1c7   :  { %v1390_v17 = vpop.f32.mrf.mxu3  ;;  %v1416_v28 = vmax.f32 %v2862_v19, %v1409_v36  ;;  %v1363_v42 = vadd.f32 %v1362_v38, %v1335_v37  ;;  %v1336_v12 = vpop.f32.mrf.mxu1  ;;  %v1309_v16 = vadd.f32 %v1308_v55, %v1281_v41 }
 0x1c9   :  { %v2005_v35 = vpack.c.bf16 %v1416_v28, %v1415_v2  ;;  %v1391_v25 = vadd.f32 %v1390_v17, %v1363_v42  ;;  %v1337_v20 = vadd.f32 %v1336_v12, %v1309_v16 }
 0x1cb   :  { %2012 = vst [vmem:[%s2957_s3 + $0x8] sm:$0xff] %v2005_v35   ;;  %v1403_v3 = vmax.f32 %v1391_v25, 0.0 }
 0x1cd   :  { %v1410_v47 = vmax.f32 %v1130_v57, %v1403_v3 }
 0x1ce   :  { %v1364_v8 = vpop.f32.mrf.mxu2  ;;  %v1311_v30 = vpop.f32.mrf.mxu0 }
 0x1cf   :  { %v1392_v39 = vpop.f32.mrf.mxu3  ;;  %v1417_v19 = vmax.f32 %v2870_v9, %v1410_v47  ;;  %v1365_v29 = vadd.f32 %v1364_v8, %v1337_v20  ;;  %v1339_v50 = vpop.f32.mrf.mxu1  ;;  %v1312_v45 = vadd.f32 %v1311_v30, %v1284_v62  ;;  %v1132_v9 = vmax.f32 %v2916_v22, 0.0 }
 0x1d1   :  { %v1393_v51 = vadd.f32 %v1392_v39, %v1365_v29  ;;  %v1340_v6 = vadd.f32 %v1339_v50, %v1312_v45 }
 0x1d3   :  { %v1404_v26 = vmax.f32 %v1393_v51, 0.0 }
 0x1d5   :  { %v1411_v44 = vmax.f32 %v1131_v1, %v1404_v26 }
 0x1d6   :  { %v1367_v40 = vpop.f32.mrf.mxu2  ;;  %v1313_v56 = vpop.f32.mrf.mxu0 }
 0x1d7   :  { %v1395_v32 = vpop.f32.mrf.mxu3  ;;  %v1418_v63 = vmax.f32 %v2884_v54, %v1411_v44  ;;  %v1368_v52 = vadd.f32 %v1367_v40, %v1340_v6  ;;  %v1341_v60 = vpop.f32.mrf.mxu1 }
 0x1d9   :  { %v2010_v15 = vpack.c.bf16 %v1418_v63, %v1417_v19  ;;  %v1396_v61 = vadd.f32 %v1395_v32, %v1368_v52 }
 0x1db   :  { %2013 = vst [vmem:[%s2957_s3 + $0x10] sm:$0xff] %v2010_v15   ;;  %v1405_v27 = vmax.f32 %v1396_v61, 0.0 }
 0x1dd   :  { %v1412_v58 = vmax.f32 %v1132_v9, %v1405_v27 }
 0x1de   :  { %v1369_v31 = vpop.f32.mrf.mxu2 }
 0x1df   :  { %v1397_v4 = vpop.f32.mrf.mxu3  ;;  %v1419_v23 = vmax.f32 %v2890_v13, %v1412_v58 }
 0x1e1   :  { %v1426_v43 = vpack.c.bf16 %v1419_v23, %v1419_v23 }
 0x1e3   :  { %1433 = vst [vmem:[%s2957_s3 + $0x18] sm:$0x1] %v1426_v43 }

// kernel: net_forward.6
= control target key start
LH: loop header
LB: loop body
LE: loop exit
PB: predicated region body
PF: predicated region fallthrough
CT: control target
= control target key end

     0   :  { %s1595_s1 = inlined_call_operand.vmem [shape: bf16[1152,128], index: 1, kind: input, shape index: {}]   ;;  %s1596_s2 = inlined_call_operand.vmem [shape: f32[1,128], index: 2, kind: input, shape index: {}]   ;;  %s1597_s0 = inlined_call_operand.vmem [shape: bf16[18,1152], index: 0, kind: input, shape index: {}]   ;;  %s1598_s3 = inlined_call_operand.vmem [shape: bf16[18,128], index: 3, kind: output, shape index: {}]  }
   0x1   :  { %v1202_v0 = vld [vmem:[%s1595_s1 + $0x38] sm:$0xff]  ;;  %v1201_v4 = vld [vmem:[%s1595_s1 + $0x30] sm:$0xff]  ;;  %v1200_v8 = vld [vmem:[%s1595_s1 + $0x28] sm:$0xff] }
   0x2   :  { %v1210_v1 = vld [vmem:[%s1595_s1 + $0x78] sm:$0xff]  ;;  %687 = vmatpush.bf16.msra.mxu0 %v1202_v0  ;;  %v1209_v5 = vld [vmem:[%s1595_s1 + $0x70] sm:$0xff]  ;;  %v1208_v9 = vld [vmem:[%s1595_s1 + $0x68] sm:$0xff] }
   0x3   :  { %v1218_v2 = vld [vmem:[%s1595_s1 + $0xb8] sm:$0xff]  ;;  %705 = vmatpush.bf16.msra.mxu1 %v1210_v1  ;;  %v1217_v6 = vld [vmem:[%s1595_s1 + $0xb0] sm:$0xff]  ;;  %v1216_v10 = vld [vmem:[%s1595_s1 + $0xa8] sm:$0xff] }
   0x4   :  { %v1226_v3 = vld [vmem:[%s1595_s1 + $0xf8] sm:$0xff]  ;;  %723 = vmatpush.bf16.msra.mxu2 %v1218_v2  ;;  %v1225_v7 = vld [vmem:[%s1595_s1 + $0xf0] sm:$0xff]  ;;  %v1224_v11 = vld [vmem:[%s1595_s1 + $0xe8] sm:$0xff] }
   0x5   :  { %741 = vmatpush.bf16.msra.mxu3 %v1226_v3  ;;  %v1199_v12 = vld [vmem:[%s1595_s1 + $0x20] sm:$0xff]  ;;  %v1198_v16 = vld [vmem:[%s1595_s1 + $0x18] sm:$0xff]  ;;  %v1197_v20 = vld [vmem:[%s1595_s1 + $0x10] sm:$0xff] }
   0x6   :  { %688 = vmatpush.bf16.msra.mxu0 %v1201_v4  ;;  %v1207_v13 = vld [vmem:[%s1595_s1 + $0x60] sm:$0xff]  ;;  %v1206_v17 = vld [vmem:[%s1595_s1 + $0x58] sm:$0xff]  ;;  %v1205_v21 = vld [vmem:[%s1595_s1 + $0x50] sm:$0xff] }
   0x7   :  { %706 = vmatpush.bf16.msra.mxu1 %v1209_v5  ;;  %v1215_v14 = vld [vmem:[%s1595_s1 + $0xa0] sm:$0xff]  ;;  %v1214_v18 = vld [vmem:[%s1595_s1 + $0x98] sm:$0xff]  ;;  %v1213_v22 = vld [vmem:[%s1595_s1 + $0x90] sm:$0xff] }
   0x8   :  { %724 = vmatpush.bf16.msra.mxu2 %v1217_v6  ;;  %v1223_v15 = vld [vmem:[%s1595_s1 + $0xe0] sm:$0xff]  ;;  %v1222_v19 = vld [vmem:[%s1595_s1 + $0xd8] sm:$0xff]  ;;  %v1221_v23 = vld [vmem:[%s1595_s1 + $0xd0] sm:$0xff] }
   0x9   :  { %742 = vmatpush.bf16.msra.mxu3 %v1225_v7  ;;  %v1196_v24 = vld [vmem:[%s1595_s1 + $0x8] sm:$0xff]  ;;  %v1195_v28 = vld [vmem:[%s1595_s1] sm:$0xff]  ;;  %v874_v39 = vld [vmem:[%s1597_s0 + $0x2c] sm:$0xf0] }
   0xa   :  { %689 = vmatpush.bf16.msra.mxu0 %v1200_v8  ;;  %v1204_v25 = vld [vmem:[%s1595_s1 + $0x48] sm:$0xff]  ;;  %v1203_v29 = vld [vmem:[%s1595_s1 + $0x40] sm:$0xff]  ;;  %v1234_v40 = vld [vmem:[%s1595_s1 + $0x138] sm:$0xff] }
   0xb   :  { %707 = vmatpush.bf16.msra.mxu1 %v1208_v9  ;;  %v1212_v26 = vld [vmem:[%s1595_s1 + $0x88] sm:$0xff]  ;;  %v1211_v30 = vld [vmem:[%s1595_s1 + $0x80] sm:$0xff]  ;;  %v1242_v41 = vld [vmem:[%s1595_s1 + $0x178] sm:$0xff] }
   0xc   :  { %725 = vmatpush.bf16.msra.mxu2 %v1216_v10  ;;  %v1220_v27 = vld [vmem:[%s1595_s1 + $0xc8] sm:$0xff]  ;;  %v1219_v31 = vld [vmem:[%s1595_s1 + $0xc0] sm:$0xff]  ;;  %v1250_v46 = vld [vmem:[%s1595_s1 + $0x1b8] sm:$0xff] }
   0xd   :  { %743 = vmatpush.bf16.msra.mxu3 %v1224_v11  ;;  %v864_v32 = vld [vmem:[%s1597_s0] sm:$0xf]  ;;  %v1190_v33 = vld [vmem:[%s1597_s0 + $0x20] sm:$0xf0]  ;;  %v866_v35 = vld [vmem:[%s1597_s0 + $0x24] sm:$0xf0] }
   0xe   :  { %690 = vmatpush.bf16.msra.mxu0 %v1199_v12  ;;  %v1186_v34 = vld [vmem:[%s1597_s0 + $0x4] sm:$0xf]  ;;  %v872_v36 = vld [vmem:[%s1597_s0 + $0x8] sm:$0xf]  ;;  %v1191_v37 = vld [vmem:[%s1597_s0 + $0x28] sm:$0xf0]  ;;  %v865_v42 = vor.u32 %v1190_v33, %v864_v32 }
   0xf   :  { %708 = vmatpush.bf16.msra.mxu1 %v1207_v13  ;;  %v1187_v38 = vld [vmem:[%s1597_s0 + $0xc] sm:$0xf]  ;;  %v869_v43 = vor.u32 %v1186_v34, %v866_v35  ;;  %v873_v44 = vor.u32 %v1191_v37, %v872_v36  ;;  %v1258_v47 = vld [vmem:[%s1595_s1 + $0x1f8] sm:$0xff]  ;;  %v1233_v48 = vld [vmem:[%s1595_s1 + $0x130] sm:$0xff] }
  0x10   :  { %726 = vmatpush.bf16.msra.mxu2 %v1215_v14  ;;  %v877_v45 = vor.u32 %v1187_v38, %v874_v39  ;;  %v1241_v49 = vld [vmem:[%s1595_s1 + $0x170] sm:$0xff]  ;;  %v1232_v52 = vld [vmem:[%s1595_s1 + $0x128] sm:$0xff]  ;;  %v1231_v58 = vld [vmem:[%s1595_s1 + $0x120] sm:$0xff] }
  0x11   :  { %744 = vmatpush.bf16.msra.mxu3 %v1223_v15  ;;  %v1249_v50 = vld [vmem:[%s1595_s1 + $0x1b0] sm:$0xff]  ;;  %v1240_v53 = vld [vmem:[%s1595_s1 + $0x168] sm:$0xff]  ;;  %v1239_v59 = vld [vmem:[%s1595_s1 + $0x160] sm:$0xff] }
  0x12   :  { %691 = vmatpush.bf16.msra.mxu0 %v1198_v16  ;;  %v1257_v51 = vld [vmem:[%s1595_s1 + $0x1f0] sm:$0xff]  ;;  %v24_v54 = vld [vmem:[%s1597_s0 + $0x48] sm:$0x11]  ;;  %v1247_v0 = vld [vmem:[%s1595_s1 + $0x1a0] sm:$0xff] }
  0x13   :  { %709 = vmatpush.bf16.msra.mxu1 %v1206_v17  ;;  %v1248_v55 = vld [vmem:[%s1595_s1 + $0x1a8] sm:$0xff]  ;;  %v25_v57 = vld [vmem:[%s1597_s0 + $0x50] sm:$0x11]  ;;  %v210_v60 = vunpack.c.l.b16 %v24_v54  ;;  %v211_v61 = vunpack.c.h.b16 %v24_v54  ;;  %v1255_v1 = vld [vmem:[%s1595_s1 + $0x1e0] sm:$0xff] }
  0x14   :  { %727 = vmatpush.bf16.msra.mxu2 %v1214_v18  ;;  %v1256_v56 = vld [vmem:[%s1595_s1 + $0x1e8] sm:$0xff]  ;;  %v212_v62 = vunpack.c.l.b16 %v25_v57  ;;  %v213_v63 = vunpack.c.h.b16 %v25_v57  ;;  %v1230_v2 = vld [vmem:[%s1595_s1 + $0x118] sm:$0xff]  ;;  %v1229_v10 = vld [vmem:[%s1595_s1 + $0x110] sm:$0xff] }
  0x15   :  { %745 = vmatpush.bf16.msra.mxu3 %v1222_v19  ;;  %v1238_v3 = vld [vmem:[%s1595_s1 + $0x158] sm:$0xff]  ;;  %v228_v4 = vpack.c.b16 %v210_v60, %v210_v60  ;;  %v229_v5 = vpack.c.b16 %v211_v61, %v211_v61  ;;  %v1237_v11 = vld [vmem:[%s1595_s1 + $0x150] sm:$0xff]  ;;  %v1228_v14 = vld [vmem:[%s1595_s1 + $0x108] sm:$0xff] }
  0x16   :  { %692 = vmatpush.bf16.msra.mxu0 %v1197_v20  ;;  %v230_v6 = vpack.c.b16 %v212_v62, %v212_v62  ;;  %v231_v7 = vpack.c.b16 %v213_v63, %v213_v63  ;;  %v1246_v8 = vld [vmem:[%s1595_s1 + $0x198] sm:$0xff]  ;;  %v1245_v12 = vld [vmem:[%s1595_s1 + $0x190] sm:$0xff]  ;;  %v1236_v15 = vld [vmem:[%s1595_s1 + $0x148] sm:$0xff] }
  0x17   :  { %710 = vmatpush.bf16.msra.mxu1 %v1205_v21  ;;  %v1254_v9 = vld [vmem:[%s1595_s1 + $0x1d8] sm:$0xff]  ;;  %v1253_v13 = vld [vmem:[%s1595_s1 + $0x1d0] sm:$0xff]  ;;  %v1244_v16 = vld [vmem:[%s1595_s1 + $0x188] sm:$0xff] }
  0x18   :  { %728 = vmatpush.bf16.msra.mxu2 %v1213_v22  ;;  %v1252_v17 = vld [vmem:[%s1595_s1 + $0x1c8] sm:$0xff]  ;;  %v1227_v18 = vld [vmem:[%s1595_s1 + $0x100] sm:$0xff]  ;;  %v880_v22 = vld [vmem:[%s1597_s0 + $0x10] sm:$0xf] }
  0x19   :  { %746 = vmatpush.bf16.msra.mxu3 %v1221_v23  ;;  %v1235_v19 = vld [vmem:[%s1595_s1 + $0x140] sm:$0xff]  ;;  %v1192_v23 = vld [vmem:[%s1597_s0 + $0x30] sm:$0xf0]  ;;  %v1264_v36 = vld [vmem:[%s1595_s1 + $0x228] sm:$0xff] }
  0x1a   :  { %693 = vmatpush.bf16.msra.mxu0 %v1196_v24  ;;  %v1243_v20 = vld [vmem:[%s1595_s1 + $0x180] sm:$0xff]  ;;  %v1266_v24 = vld [vmem:[%s1595_s1 + $0x238] sm:$0xff]  ;;  %v1265_v35 = vld [vmem:[%s1595_s1 + $0x230] sm:$0xff] }
  0x1b   :  { %711 = vmatpush.bf16.msra.mxu1 %v1204_v25  ;;  %v1251_v21 = vld [vmem:[%s1595_s1 + $0x1c0] sm:$0xff]  ;;  %v1188_v25 = vld [vmem:[%s1597_s0 + $0x14] sm:$0xf]  ;;  %v26_v37 = vld [vmem:[%s1597_s0 + $0x58] sm:$0x11] }
  0x1c   :  { %729 = vmatpush.bf16.msra.mxu2 %v1212_v26  ;;  %v882_v26 = vld [vmem:[%s1597_s0 + $0x34] sm:$0xf0]  ;;  %v1263_v38 = vld [vmem:[%s1595_s1 + $0x220] sm:$0xff] }
  0x1d   :  { %747 = vmatpush.bf16.msra.mxu3 %v1220_v27  ;;  %v888_v27 = vld [vmem:[%s1597_s0 + $0x18] sm:$0xf]  ;;  %v885_v32 = vor.u32 %v1188_v25, %v882_v26  ;;  %v27_v39 = vld [vmem:[%s1597_s0 + $0x60] sm:$0x11] }
  0x1e   :  { %694 = vmatpush.bf16.msra.mxu0 %v1195_v28  ;;  %v1193_v28 = vld [vmem:[%s1597_s0 + $0x38] sm:$0xf0]  ;;  %v896_v54 = vld [vmem:[%s1597_s0 + $0x20] sm:$0xf] }
  0x1f   :  { %712 = vmatpush.bf16.msra.mxu1 %v1203_v29  ;;  %v1189_v29 = vld [vmem:[%s1597_s0 + $0x1c] sm:$0xf]  ;;  %v889_v33 = vor.u32 %v1193_v28, %v888_v27 }
  0x20   :  { %730 = vmatpush.bf16.msra.mxu2 %v1211_v30  ;;  %v890_v30 = vld [vmem:[%s1597_s0 + $0x3c] sm:$0xf0] }
  0x21   :  { %748 = vmatpush.bf16.msra.mxu3 %v1219_v31  ;;  %695 = vmatmul.bf16.vlgmr.msra.gmra.mxu0 %v865_v42  ;;  %v881_v31 = vor.u32 %v1192_v23, %v880_v22  ;;  %v893_v34 = vor.u32 %v1189_v29, %v890_v30  ;;  %v216_v42 = vunpack.c.l.b16 %v27_v39 }
  0x22   :  { %759 = vmatpush.bf16.msrb.mxu0 %v1234_v40  ;;  %713 = vmatmul.bf16.vlgmr.msra.gmra.mxu1 %v869_v43  ;;  %v214_v40 = vunpack.c.l.b16 %v26_v37  ;;  %v217_v43 = vunpack.c.h.b16 %v27_v39 }
  0x23   :  { %777 = vmatpush.bf16.msrb.mxu1 %v1242_v41  ;;  %731 = vmatmul.bf16.vlgmr.msra.gmra.mxu2 %v873_v44  ;;  %v215_v41 = vunpack.c.h.b16 %v26_v37  ;;  %v1262_v44 = vld [vmem:[%s1595_s1 + $0x218] sm:$0xff] }
  0x24   :  { %749 = vmatmul.bf16.vlgmr.msra.gmra.mxu3 %v877_v45  ;;  %795 = vmatpush.bf16.msrb.mxu2 %v1250_v46  ;;  %v232_v45 = vpack.c.b16 %v214_v40, %v214_v40 }
  0x25   :  { %813 = vmatpush.bf16.msrb.mxu3 %v1258_v47  ;;  %v233_v46 = vpack.c.b16 %v215_v41, %v215_v41  ;;  %v234_v47 = vpack.c.b16 %v216_v42, %v216_v42 }
  0x26   :  { %760 = vmatpush.bf16.msrb.mxu0 %v1233_v48  ;;  %v235_v48 = vpack.c.b16 %v217_v43, %v217_v43 }
  0x27   :  { %778 = vmatpush.bf16.msrb.mxu1 %v1241_v49  ;;  %v1261_v49 = vld [vmem:[%s1595_s1 + $0x210] sm:$0xff] }
  0x28   :  { %796 = vmatpush.bf16.msrb.mxu2 %v1249_v50  ;;  %v1260_v50 = vld [vmem:[%s1595_s1 + $0x208] sm:$0xff] }
  0x29   :  { %814 = vmatpush.bf16.msrb.mxu3 %v1257_v51  ;;  %v28_v51 = vld [vmem:[%s1597_s0 + $0x68] sm:$0x1] }
  0x2a   :  { %761 = vmatpush.bf16.msrb.mxu0 %v1232_v52  ;;  %v1259_v52 = vld [vmem:[%s1595_s1 + $0x200] sm:$0xff] }
  0x2b   :  { %779 = vmatpush.bf16.msrb.mxu1 %v1240_v53  ;;  %v218_v53 = vunpack.c.l.b16 %v28_v51 }
  0x2c   :  { %797 = vmatpush.bf16.msrb.mxu2 %v1248_v55  ;;  %v1194_v55 = vld [vmem:[%s1597_s0 + $0x40] sm:$0xf0] }
  0x2d   :  { %815 = vmatpush.bf16.msrb.mxu3 %v1256_v56  ;;  %v897_v56 = vor.u32 %v1194_v55, %v896_v54  ;;  %v236_v57 = vpack.c.b16 %v218_v53, %v218_v53 }
  0x2e   :  { %762 = vmatpush.bf16.msrb.mxu0 %v1231_v58 }
  0x2f   :  { %780 = vmatpush.bf16.msrb.mxu1 %v1239_v59 }
  0x30   :  { %798 = vmatpush.bf16.msrb.mxu2 %v1247_v0 }
  0x31   :  { %816 = vmatpush.bf16.msrb.mxu3 %v1255_v1  ;;  %700 = vmatmul.bf16.gmra.mxu0 %v228_v4 }
  0x32   :  { %763 = vmatpush.bf16.msrb.mxu0 %v1230_v2  ;;  %718 = vmatmul.bf16.gmra.mxu1 %v229_v5 }
  0x33   :  { %781 = vmatpush.bf16.msrb.mxu1 %v1238_v3  ;;  %736 = vmatmul.bf16.gmra.mxu2 %v230_v6 }
  0x34   :  { %754 = vmatmul.bf16.gmra.mxu3 %v231_v7  ;;  %799 = vmatpush.bf16.msrb.mxu2 %v1246_v8 }
  0x35   :  { %817 = vmatpush.bf16.msrb.mxu3 %v1254_v9 }
  0x36   :  { %764 = vmatpush.bf16.msrb.mxu0 %v1229_v10 }
  0x37   :  { %782 = vmatpush.bf16.msrb.mxu1 %v1237_v11 }
  0x38   :  { %800 = vmatpush.bf16.msrb.mxu2 %v1245_v12  ;;  %v1280_v12 = vld [vmem:[%s1596_s2] ss:$0 sm:$0xff] }
  0x39   :  { %818 = vmatpush.bf16.msrb.mxu3 %v1253_v13 }
  0x3a   :  { %765 = vmatpush.bf16.msrb.mxu0 %v1228_v14 }
  0x3b   :  { %783 = vmatpush.bf16.msrb.mxu1 %v1236_v15 }
  0x3c   :  { %801 = vmatpush.bf16.msrb.mxu2 %v1244_v16 }
  0x3d   :  { %819 = vmatpush.bf16.msrb.mxu3 %v1252_v17 }
  0x3e   :  { %766 = vmatpush.bf16.msrb.mxu0 %v1227_v18 }
  0x3f   :  { %784 = vmatpush.bf16.msrb.mxu1 %v1235_v19 }
  0x40   :  { %802 = vmatpush.bf16.msrb.mxu2 %v1243_v20 }
  0x41   :  { %820 = vmatpush.bf16.msrb.mxu3 %v1251_v21  ;;  %767 = vmatmul.bf16.vlgmr.msrb.gmra.mxu0 %v881_v31 }
  0x42   :  { %831 = vmatpush.bf16.msra.mxu0 %v1266_v24  ;;  %785 = vmatmul.bf16.vlgmr.msrb.gmra.mxu1 %v885_v32 }
  0x43   :  { %1272 = vmatpush.bf16.msra.mxu1 %v1266_v24  ;;  %803 = vmatmul.bf16.vlgmr.msrb.gmra.mxu2 %v889_v33 }
  0x44   :  { %821 = vmatmul.bf16.vlgmr.msrb.gmra.mxu3 %v893_v34 }
  0x46   :  { %832 = vmatpush.bf16.msra.mxu0 %v1265_v35 }
  0x47   :  { %1273 = vmatpush.bf16.msra.mxu1 %v1265_v35 }
  0x4a   :  { %833 = vmatpush.bf16.msra.mxu0 %v1264_v36 }
  0x4b   :  { %1274 = vmatpush.bf16.msra.mxu1 %v1264_v36 }
  0x4e   :  { %834 = vmatpush.bf16.msra.mxu0 %v1263_v38 }
  0x4f   :  { %1275 = vmatpush.bf16.msra.mxu1 %v1263_v38 }
  0x51   :  { %772 = vmatmul.bf16.gmra.mxu0 %v232_v45 }
  0x52   :  { %835 = vmatpush.bf16.msra.mxu0 %v1262_v44  ;;  %790 = vmatmul.bf16.gmra.mxu1 %v233_v46 }
  0x53   :  { %1276 = vmatpush.bf16.msra.mxu1 %v1262_v44  ;;  %808 = vmatmul.bf16.gmra.mxu2 %v234_v47 }
  0x54   :  { %826 = vmatmul.bf16.gmra.mxu3 %v235_v48 }
  0x56   :  { %836 = vmatpush.bf16.msra.mxu0 %v1261_v49 }
  0x57   :  { %1277 = vmatpush.bf16.msra.mxu1 %v1261_v49 }
  0x5a   :  { %837 = vmatpush.bf16.msra.mxu0 %v1260_v50 }
  0x5b   :  { %1278 = vmatpush.bf16.msra.mxu1 %v1260_v50 }
  0x5e   :  { %838 = vmatpush.bf16.msra.mxu0 %v1259_v52 }
  0x5f   :  { %1279 = vmatpush.bf16.msra.mxu1 %v1259_v52 }
  0x61   :  { %839 = vmatmul.bf16.vlgmr.msra.gmra.mxu0 %v897_v56 }
  0x62   :  { %844 = vmatmul.bf16.vlgmr.msra.gmra.mxu1 %v236_v57 }
  0x9e   :  { %v696_v58 = vpop.f32.mrf.mxu0 }
  0x9f   :  { %v714_v59 = vpop.f32.mrf.mxu1  ;;  %v697_v19 = vadd.f32 %v1280_v12, %v696_v58 }
  0xa1   :  { %v715_v26 = vadd.f32 %v714_v59, %v697_v19 }
  0xa6   :  { %v732_v60 = vpop.f32.mrf.mxu2  ;;  %v698_v62 = vpop.f32.mrf.mxu0 }
  0xa7   :  { %v750_v61 = vpop.f32.mrf.mxu3  ;;  %v716_v63 = vpop.f32.mrf.mxu1  ;;  %v699_v25 = vadd.f32 %v1280_v12, %v698_v62  ;;  %v733_v28 = vadd.f32 %v732_v60, %v715_v26 }
  0xa9   :  { %v717_v29 = vadd.f32 %v716_v63, %v699_v25  ;;  %v751_v36 = vadd.f32 %v750_v61, %v733_v28 }
  0xae   :  { %v734_v0 = vpop.f32.mrf.mxu2  ;;  %v701_v2 = vpop.f32.mrf.mxu0 }
  0xaf   :  { %v752_v1 = vpop.f32.mrf.mxu3  ;;  %v719_v3 = vpop.f32.mrf.mxu1  ;;  %v702_v17 = vadd.f32 %v1280_v12, %v701_v2  ;;  %v735_v31 = vadd.f32 %v734_v0, %v717_v29 }
  0xb1   :  { %v720_v18 = vadd.f32 %v719_v3, %v702_v17  ;;  %v753_v38 = vadd.f32 %v752_v1, %v735_v31 }
  0xb6   :  { %v737_v4 = vpop.f32.mrf.mxu2  ;;  %v703_v6 = vpop.f32.mrf.mxu0 }
  0xb7   :  { %v755_v5 = vpop.f32.mrf.mxu3  ;;  %v721_v7 = vpop.f32.mrf.mxu1  ;;  %v738_v20 = vadd.f32 %v737_v4, %v720_v18 }
  0xb9   :  { %v756_v27 = vadd.f32 %v755_v5, %v738_v20 }
  0xbe   :  { %v739_v8 = vpop.f32.mrf.mxu2  ;;  %v768_v10 = vpop.f32.mrf.mxu0 }
  0xbf   :  { %v757_v9 = vpop.f32.mrf.mxu3  ;;  %v786_v11 = vpop.f32.mrf.mxu1  ;;  %v769_v39 = vadd.f32 %v768_v10, %v751_v36 }
  0xc1   :  { %v787_v42 = vadd.f32 %v786_v11, %v769_v39 }
  0xc6   :  { %v804_v13 = vpop.f32.mrf.mxu2  ;;  %v770_v15 = vpop.f32.mrf.mxu0 }
  0xc7   :  { %v822_v14 = vpop.f32.mrf.mxu3  ;;  %v788_v16 = vpop.f32.mrf.mxu1  ;;  %v771_v41 = vadd.f32 %v770_v15, %v753_v38  ;;  %v805_v48 = vadd.f32 %v804_v13, %v787_v42 }
  0xc9   :  { %v789_v49 = vadd.f32 %v788_v16, %v771_v41  ;;  %v823_v53 = vadd.f32 %v822_v14, %v805_v48 }
  0xce   :  { %v806_v21 = vpop.f32.mrf.mxu2  ;;  %v773_v23 = vpop.f32.mrf.mxu0 }
  0xcf   :  { %v824_v22 = vpop.f32.mrf.mxu3  ;;  %v791_v24 = vpop.f32.mrf.mxu1  ;;  %v774_v30 = vadd.f32 %v773_v23, %v756_v27  ;;  %v807_v51 = vadd.f32 %v806_v21, %v789_v49 }
  0xd1   :  { %v792_v37 = vadd.f32 %v791_v24, %v774_v30  ;;  %v825_v55 = vadd.f32 %v824_v22, %v807_v51 }
  0xd6   :  { %v809_v32 = vpop.f32.mrf.mxu2  ;;  %v775_v34 = vpop.f32.mrf.mxu0 }
  0xd7   :  { %v827_v33 = vpop.f32.mrf.mxu3  ;;  %v793_v35 = vpop.f32.mrf.mxu1  ;;  %v810_v40 = vadd.f32 %v809_v32, %v792_v37 }
  0xd9   :  { %v828_v43 = vadd.f32 %v827_v33, %v810_v40 }
  0xde   :  { %v811_v44 = vpop.f32.mrf.mxu2  ;;  %v840_v46 = vpop.f32.mrf.mxu0 }
  0xdf   :  { %v829_v45 = vpop.f32.mrf.mxu3  ;;  %v845_v47 = vpop.f32.mrf.mxu1  ;;  %v841_v56 = vadd.f32 %v840_v46, %v823_v53 }
  0xe0   :  { %v846_v50 = vadd.f32 %v845_v47, %v828_v43 }
  0xe1   :  { %v849_v60 = vmax.f32 %v841_v56, 0.0 }
  0xe2   :  { %v851_v52 = vmax.f32 %v846_v50, 0.0 }
  0xe4   :  { %v854_v54 = vpack.c.bf16 %v851_v52, %v851_v52 }
  0xe6   :  { %857 = vst [vmem:[%s1598_s3 + $0x8] sm:$0x1] %v854_v54  ;;  %v842_v57 = vpop.f32.mrf.mxu0 }
  0xe7   :  { %v847_v58 = vpop.f32.mrf.mxu1  ;;  %v843_v59 = vadd.f32 %v842_v57, %v825_v55 }
  0xe9   :  { %v850_v61 = vmax.f32 %v843_v59, 0.0 }
  0xeb   :  { %v1270_v62 = vpack.c.bf16 %v850_v61, %v849_v60 }
  0xed   :  { %1271 = vst [vmem:[%s1598_s3] sm:$0xff] %v1270_v62  }

// kernel: net_forward.7
= control target key start
LH: loop header
LB: loop body
LE: loop exit
PB: predicated region body
PF: predicated region fallthrough
CT: control target
= control target key end

     0   :  { %s3976_s0 = inlined_call_operand.vmem [shape: bf16[4,2,512], index: 0, kind: input, shape index: {}]   ;;  %s3977_s1 = inlined_call_operand.vmem [shape: bf16[512,256], index: 1, kind: input, shape index: {}]   ;;  %s3978_s2 = inlined_call_operand.vmem [shape: f32[1,256], index: 2, kind: input, shape index: {}]   ;;  %s3979_s3 = inlined_call_operand.vmem [shape: bf16[256,512], index: 3, kind: input, shape index: {}]   ;;  %s3980_s4 = inlined_call_operand.vmem [shape: f32[1,512], index: 4, kind: input, shape index: {}]   ;;  %s3981_s5 = inlined_call_operand.vmem [shape: bf16[512,10], index: 5, kind: input, shape index: {}]   ;;  %s3982_s6 = inlined_call_operand.vmem [shape: f32[1,10], index: 6, kind: input, shape index: {}]   ;;  %s3983_s7 = inlined_call_operand.hbm [shape: f32[2,10], index: 7, kind: output, shape index: {}]  }
   0x1   :  { %v1803_v0 = vld [vmem:[%s3977_s1 + $0x70] sm:$0xf]  ;;  %v2403_v1 = vld [vmem:[%s3977_s1 + $0x74] sm:$0xf0]  ;;  %v1795_v11 = vld [vmem:[%s3977_s1 + $0x60] sm:$0xf] }
   0x2   :  { %v1867_v2 = vld [vmem:[%s3977_s1 + $0xf0] sm:$0xf]  ;;  %v2630_v3 = vor.u32 %v2403_v1, %v1803_v0  ;;  %v2419_v4 = vld [vmem:[%s3977_s1 + $0xf4] sm:$0xf0]  ;;  %v2401_v13 = vld [vmem:[%s3977_s1 + $0x64] sm:$0xf0] }
   0x3   :  { %v1931_v5 = vld [vmem:[%s3977_s1 + $0x170] sm:$0xf]  ;;  %v2435_v6 = vld [vmem:[%s3977_s1 + $0x174] sm:$0xf0]  ;;  %v2641_v7 = vor.u32 %v2419_v4, %v1867_v2  ;;  %v1859_v14 = vld [vmem:[%s3977_s1 + $0xe0] sm:$0xf]  ;;  %v2668_v16 = vor.u32 %v2401_v13, %v1795_v11 }
   0x4   :  { %v2643_v8 = vor.u32 %v2435_v6, %v1931_v5  ;;  %v1995_v9 = vld [vmem:[%s3977_s1 + $0x1f0] sm:$0xf]  ;;  %v2451_v10 = vld [vmem:[%s3977_s1 + $0x1f4] sm:$0xf0]  ;;  %428 = vmatpush.bf16.msra.mxu0 %v2630_v3  ;;  %v2417_v15 = vld [vmem:[%s3977_s1 + $0xe4] sm:$0xf0] }
   0x5   :  { %v2655_v12 = vor.u32 %v2451_v10, %v1995_v9  ;;  %441 = vmatpush.bf16.msra.mxu1 %v2641_v7  ;;  %v2670_v17 = vor.u32 %v2417_v15, %v1859_v14  ;;  %v1923_v18 = vld [vmem:[%s3977_s1 + $0x160] sm:$0xf]  ;;  %v2433_v19 = vld [vmem:[%s3977_s1 + $0x164] sm:$0xf0]  ;;  %v1787_v23 = vld [vmem:[%s3977_s1 + $0x50] sm:$0xf] }
   0x6   :  { %454 = vmatpush.bf16.msra.mxu2 %v2643_v8  ;;  %v1987_v20 = vld [vmem:[%s3977_s1 + $0x1e0] sm:$0xf]  ;;  %v2682_v21 = vor.u32 %v2433_v19, %v1923_v18  ;;  %v2449_v22 = vld [vmem:[%s3977_s1 + $0x1e4] sm:$0xf0]  ;;  %v2399_v24 = vld [vmem:[%s3977_s1 + $0x54] sm:$0xf0] }
   0x7   :  { %467 = vmatpush.bf16.msra.mxu3 %v2655_v12  ;;  %v2693_v25 = vor.u32 %v2449_v22, %v1987_v20  ;;  %v1851_v26 = vld [vmem:[%s3977_s1 + $0xd0] sm:$0xf]  ;;  %v2415_v27 = vld [vmem:[%s3977_s1 + $0xd4] sm:$0xf0]  ;;  %v2705_v29 = vor.u32 %v2399_v24, %v1787_v23  ;;  %v1779_v35 = vld [vmem:[%s3977_s1 + $0x40] sm:$0xf] }
   0x8   :  { %v1915_v28 = vld [vmem:[%s3977_s1 + $0x150] sm:$0xf]  ;;  %429 = vmatpush.bf16.msra.mxu0 %v2668_v16  ;;  %v2431_v30 = vld [vmem:[%s3977_s1 + $0x154] sm:$0xf0]  ;;  %v2718_v33 = vor.u32 %v2415_v27, %v1851_v26  ;;  %v2397_v36 = vld [vmem:[%s3977_s1 + $0x44] sm:$0xf0] }
   0x9   :  { %v1979_v31 = vld [vmem:[%s3977_s1 + $0x1d0] sm:$0xf]  ;;  %v2447_v32 = vld [vmem:[%s3977_s1 + $0x1d4] sm:$0xf0]  ;;  %442 = vmatpush.bf16.msra.mxu1 %v2670_v17  ;;  %v2720_v34 = vor.u32 %v2431_v30, %v1915_v28  ;;  %v1843_v37 = vld [vmem:[%s3977_s1 + $0xc0] sm:$0xf]  ;;  %v2750_v44 = vor.u32 %v2397_v36, %v1779_v35 }
   0xa   :  { %455 = vmatpush.bf16.msra.mxu2 %v2682_v21  ;;  %v2732_v38 = vor.u32 %v2447_v32, %v1979_v31  ;;  %v2413_v39 = vld [vmem:[%s3977_s1 + $0xc4] sm:$0xf0]  ;;  %v1907_v40 = vld [vmem:[%s3977_s1 + $0x140] sm:$0xf]  ;;  %v1771_v47 = vld [vmem:[%s3977_s1 + $0x30] sm:$0xf] }
   0xb   :  { %468 = vmatpush.bf16.msra.mxu3 %v2693_v25  ;;  %v2429_v41 = vld [vmem:[%s3977_s1 + $0x144] sm:$0xf0]  ;;  %v1971_v42 = vld [vmem:[%s3977_s1 + $0x1c0] sm:$0xf]  ;;  %v2754_v45 = vor.u32 %v2413_v39, %v1843_v37  ;;  %v2395_v48 = vld [vmem:[%s3977_s1 + $0x34] sm:$0xf0] }
   0xc   :  { %v2445_v43 = vld [vmem:[%s3977_s1 + $0x1c4] sm:$0xf0]  ;;  %430 = vmatpush.bf16.msra.mxu0 %v2705_v29  ;;  %v2756_v46 = vor.u32 %v2429_v41, %v1907_v40  ;;  %v1835_v49 = vld [vmem:[%s3977_s1 + $0xb0] sm:$0xf]  ;;  %v2411_v51 = vld [vmem:[%s3977_s1 + $0xb4] sm:$0xf0]  ;;  %v2786_v56 = vor.u32 %v2395_v48, %v1771_v47 }
   0xd   :  { %443 = vmatpush.bf16.msra.mxu1 %v2718_v33  ;;  %v2768_v50 = vor.u32 %v2445_v43, %v1971_v42  ;;  %v1899_v52 = vld [vmem:[%s3977_s1 + $0x130] sm:$0xf]  ;;  %v2427_v53 = vld [vmem:[%s3977_s1 + $0x134] sm:$0xf0]  ;;  %v2790_v57 = vor.u32 %v2411_v51, %v1835_v49  ;;  %v1763_v59 = vld [vmem:[%s3977_s1 + $0x20] sm:$0xf] }
   0xe   :  { %456 = vmatpush.bf16.msra.mxu2 %v2720_v34  ;;  %v1963_v54 = vld [vmem:[%s3977_s1 + $0x1b0] sm:$0xf]  ;;  %v2443_v55 = vld [vmem:[%s3977_s1 + $0x1b4] sm:$0xf0]  ;;  %v2792_v58 = vor.u32 %v2427_v53, %v1899_v52  ;;  %v2393_v60 = vld [vmem:[%s3977_s1 + $0x24] sm:$0xf0] }
   0xf   :  { %469 = vmatpush.bf16.msra.mxu3 %v2732_v38  ;;  %v1827_v61 = vld [vmem:[%s3977_s1 + $0xa0] sm:$0xf]  ;;  %v2804_v62 = vor.u32 %v2443_v55, %v1963_v54  ;;  %v2409_v63 = vld [vmem:[%s3977_s1 + $0xa4] sm:$0xf0]  ;;  %v2822_v5 = vor.u32 %v2393_v60, %v1763_v59  ;;  %v1755_v10 = vld [vmem:[%s3977_s1 + $0x10] sm:$0xf] }
  0x10   :  { %431 = vmatpush.bf16.msra.mxu0 %v2750_v44  ;;  %v1891_v0 = vld [vmem:[%s3977_s1 + $0x120] sm:$0xf]  ;;  %v2425_v1 = vld [vmem:[%s3977_s1 + $0x124] sm:$0xf0]  ;;  %v2826_v6 = vor.u32 %v2409_v63, %v1827_v61  ;;  %v2391_v11 = vld [vmem:[%s3977_s1 + $0x14] sm:$0xf0] }
  0x11   :  { %444 = vmatpush.bf16.msra.mxu1 %v2754_v45  ;;  %v1955_v2 = vld [vmem:[%s3977_s1 + $0x1a0] sm:$0xf]  ;;  %v2441_v4 = vld [vmem:[%s3977_s1 + $0x1a4] sm:$0xf0]  ;;  %v2828_v9 = vor.u32 %v2425_v1, %v1891_v0  ;;  %v1819_v13 = vld [vmem:[%s3977_s1 + $0x90] sm:$0xf]  ;;  %v2858_v23 = vor.u32 %v2391_v11, %v1755_v10 }
  0x12   :  { %457 = vmatpush.bf16.msra.mxu2 %v2756_v46  ;;  %v2840_v14 = vor.u32 %v2441_v4, %v1955_v2  ;;  %v2407_v15 = vld [vmem:[%s3977_s1 + $0x94] sm:$0xf0]  ;;  %v1883_v18 = vld [vmem:[%s3977_s1 + $0x110] sm:$0xf]  ;;  %v1747_v24 = vld [vmem:[%s3977_s1] sm:$0xf] }
  0x13   :  { %470 = vmatpush.bf16.msra.mxu3 %v2768_v50  ;;  %v2423_v19 = vld [vmem:[%s3977_s1 + $0x114] sm:$0xf0]  ;;  %v1947_v20 = vld [vmem:[%s3977_s1 + $0x190] sm:$0xf]  ;;  %v2389_v26 = vld [vmem:[%s3977_s1 + $0x4] sm:$0xf0]  ;;  %v2868_v27 = vor.u32 %v2407_v15, %v1819_v13 }
  0x14   :  { %432 = vmatpush.bf16.msra.mxu0 %v2786_v56  ;;  %v2439_v22 = vld [vmem:[%s3977_s1 + $0x194] sm:$0xf0]  ;;  %v2870_v28 = vor.u32 %v2423_v19, %v1883_v18  ;;  %v1811_v30 = vld [vmem:[%s3977_s1 + $0x80] sm:$0xf]  ;;  %v2405_v31 = vld [vmem:[%s3977_s1 + $0x84] sm:$0xf0]  ;;  %v2903_v43 = vor.u32 %v2389_v26, %v1747_v24 }
  0x15   :  { %445 = vmatpush.bf16.msra.mxu1 %v2790_v57  ;;  %v1875_v32 = vld [vmem:[%s3977_s1 + $0x100] sm:$0xf]  ;;  %v2882_v35 = vor.u32 %v2439_v22, %v1947_v20  ;;  %v2421_v36 = vld [vmem:[%s3977_s1 + $0x104] sm:$0xf0]  ;;  %v2402_v40 = vld [vmem:[%s3977_s1 + $0x74] sm:$0xf]  ;;  %v2916_v51 = vor.u32 %v2405_v31, %v1811_v30 }
  0x16   :  { %458 = vmatpush.bf16.msra.mxu2 %v2792_v58  ;;  %v1939_v37 = vld [vmem:[%s3977_s1 + $0x180] sm:$0xf]  ;;  %v2437_v39 = vld [vmem:[%s3977_s1 + $0x184] sm:$0xf0]  ;;  %v1805_v41 = vld [vmem:[%s3977_s1 + $0x78] sm:$0xf0]  ;;  %v2918_v52 = vor.u32 %v2421_v36, %v1875_v32 }
  0x17   :  { %471 = vmatpush.bf16.msra.mxu3 %v2804_v62  ;;  %v2418_v42 = vld [vmem:[%s3977_s1 + $0xf4] sm:$0xf]  ;;  %v1869_v47 = vld [vmem:[%s3977_s1 + $0xf8] sm:$0xf0]  ;;  %v2927_v55 = vor.u32 %v2437_v39, %v1939_v37  ;;  %v2929_v59 = vor.u32 %v2402_v40, %v1805_v41  ;;  %v2400_v63 = vld [vmem:[%s3977_s1 + $0x64] sm:$0xf] }
  0x18   :  { %433 = vmatpush.bf16.msra.mxu0 %v2822_v5  ;;  %v2434_v48 = vld [vmem:[%s3977_s1 + $0x174] sm:$0xf]  ;;  %v1933_v49 = vld [vmem:[%s3977_s1 + $0x178] sm:$0xf0]  ;;  %v2931_v60 = vor.u32 %v2418_v42, %v1869_v47  ;;  %v1797_v0 = vld [vmem:[%s3977_s1 + $0x68] sm:$0xf0] }
  0x19   :  { %446 = vmatpush.bf16.msra.mxu1 %v2826_v6  ;;  %v2450_v53 = vld [vmem:[%s3977_s1 + $0x1f4] sm:$0xf]  ;;  %v1997_v54 = vld [vmem:[%s3977_s1 + $0x1f8] sm:$0xf0]  ;;  %4023 = vst [vmem:[#allocation5_spill] sm:$0xff] %v2929_v59  ;;  %v2933_v61 = vor.u32 %v2434_v48, %v1933_v49  ;;  %v2966_v18 = vor.u32 %v2400_v63, %v1797_v0 }
  0x1a   :  { %459 = vmatpush.bf16.msra.mxu2 %v2828_v9  ;;  %4024 = vst [vmem:[#allocation6_spill] sm:$0xff] %v2931_v60  ;;  %v2416_v1 = vld [vmem:[%s3977_s1 + $0xe4] sm:$0xf]  ;;  %v2945_v2 = vor.u32 %v2450_v53, %v1997_v54  ;;  %v1861_v4 = vld [vmem:[%s3977_s1 + $0xe8] sm:$0xf0] }
  0x1b   :  { %472 = vmatpush.bf16.msra.mxu3 %v2840_v14  ;;  %4025 = vst [vmem:[#allocation7_spill] sm:$0xff] %v2933_v61  ;;  %v2432_v10 = vld [vmem:[%s3977_s1 + $0x164] sm:$0xf]  ;;  %v1925_v11 = vld [vmem:[%s3977_s1 + $0x168] sm:$0xf0]  ;;  %v2970_v19 = vor.u32 %v2416_v1, %v1861_v4 }
  0x1c   :  { %434 = vmatpush.bf16.msra.mxu0 %v2858_v23  ;;  %4026 = vst [vmem:[#allocation8_spill] sm:$0xff] %v2945_v2  ;;  %v2448_v13 = vld [vmem:[%s3977_s1 + $0x1e4] sm:$0xf]  ;;  %v1989_v15 = vld [vmem:[%s3977_s1 + $0x1e8] sm:$0xf0]  ;;  %v2972_v20 = vor.u32 %v2432_v10, %v1925_v11 }
  0x1d   :  { %447 = vmatpush.bf16.msra.mxu1 %v2868_v27  ;;  %v2398_v22 = vld [vmem:[%s3977_s1 + $0x54] sm:$0xf]  ;;  %v1789_v24 = vld [vmem:[%s3977_s1 + $0x58] sm:$0xf0]  ;;  %v2984_v30 = vor.u32 %v2448_v13, %v1989_v15  ;;  %v2396_v41 = vld [vmem:[%s3977_s1 + $0x44] sm:$0xf] }
  0x1e   :  { %460 = vmatpush.bf16.msra.mxu2 %v2870_v28  ;;  %v2414_v26 = vld [vmem:[%s3977_s1 + $0xd4] sm:$0xf]  ;;  %v1853_v31 = vld [vmem:[%s3977_s1 + $0xd8] sm:$0xf0]  ;;  %v3002_v40 = vor.u32 %v2398_v22, %v1789_v24  ;;  %v92_v42 = vld [vmem:[%s3976_s0] sm:$0xf] }
  0x1f   :  { %473 = vmatpush.bf16.msra.mxu3 %v2882_v35  ;;  %4027 = vst [vmem:[#allocation9_spill] sm:$0xff] %v2984_v30  ;;  %v2430_v32 = vld [vmem:[%s3977_s1 + $0x154] sm:$0xf]  ;;  %v1917_v36 = vld [vmem:[%s3977_s1 + $0x158] sm:$0xf0]  ;;  %v3012_v47 = vor.u32 %v2414_v26, %v1853_v31 }
  0x20   :  { %435 = vmatpush.bf16.msra.mxu0 %v2903_v43  ;;  %v2446_v37 = vld [vmem:[%s3977_s1 + $0x1d4] sm:$0xf]  ;;  %v1981_v39 = vld [vmem:[%s3977_s1 + $0x1d8] sm:$0xf0]  ;;  %4028 = vst [vmem:[#allocation10_spill] sm:$0xff] %v3002_v40  ;;  %v3014_v48 = vor.u32 %v2430_v32, %v1917_v36 }
  0x21   :  { %448 = vmatpush.bf16.msra.mxu1 %v2916_v51  ;;  %v1781_v49 = vld [vmem:[%s3977_s1 + $0x48] sm:$0xf0]  ;;  %v2412_v53 = vld [vmem:[%s3977_s1 + $0xc4] sm:$0xf]  ;;  %99 = vst [vmem:[#allocation1] ss:$9 sm:$0xff] %v92_v42  ;;  %v3023_v54 = vor.u32 %v2446_v37, %v1981_v39 }
  0x22   :  { %461 = vmatpush.bf16.msra.mxu2 %v2918_v52  ;;  %4029 = vst [vmem:[#allocation11_spill] sm:$0xff] %v3014_v48  ;;  %v1845_v63 = vld [vmem:[%s3977_s1 + $0xc8] sm:$0xf0]  ;;  %v2428_v0 = vld [vmem:[%s3977_s1 + $0x144] sm:$0xf]  ;;  %v3041_v11 = vor.u32 %v2396_v41, %v1781_v49 }
  0x23   :  { %474 = vmatpush.bf16.msra.mxu3 %v2927_v55  ;;  %4030 = vst [vmem:[#allocation12_spill] sm:$0xff] %v3023_v54  ;;  %v1909_v1 = vld [vmem:[%s3977_s1 + $0x148] sm:$0xf0]  ;;  %v2444_v4 = vld [vmem:[%s3977_s1 + $0x1c4] sm:$0xf]  ;;  %v3054_v24 = vor.u32 %v2412_v53, %v1845_v63 }
  0x24   :  { %480 = vmatpush.bf16.msrb.mxu0 %v2929_v59  ;;  %v1973_v10 = vld [vmem:[%s3977_s1 + $0x1c8] sm:$0xf0]  ;;  %4031 = vst [vmem:[#allocation13_spill] sm:$0xff] %v3041_v11  ;;  %v2394_v13 = vld [vmem:[%s3977_s1 + $0x34] sm:$0xf]  ;;  %v3056_v26 = vor.u32 %v2428_v0, %v1909_v1 }
  0x25   :  { %493 = vmatpush.bf16.msrb.mxu1 %v2931_v60  ;;  %v1773_v15 = vld [vmem:[%s3977_s1 + $0x38] sm:$0xf0]  ;;  %v2410_v22 = vld [vmem:[%s3977_s1 + $0xb4] sm:$0xf]  ;;  %4032 = vst [vmem:[#allocation14_spill] sm:$0xff] %v3054_v24  ;;  %v3068_v37 = vor.u32 %v2444_v4, %v1973_v10 }
  0x26   :  { %506 = vmatpush.bf16.msrb.mxu2 %v2933_v61  ;;  %4033 = vst [vmem:[#allocation15_spill] sm:$0xff] %v3056_v26  ;;  %v1837_v31 = vld [vmem:[%s3977_s1 + $0xb8] sm:$0xf0]  ;;  %v2426_v32 = vld [vmem:[%s3977_s1 + $0x134] sm:$0xf] }
  0x27   :  { %519 = vmatpush.bf16.msrb.mxu3 %v2945_v2  ;;  %v1901_v36 = vld [vmem:[%s3977_s1 + $0x138] sm:$0xf0]  ;;  %4034 = vst [vmem:[#allocation16_spill] sm:$0xff] %v3068_v37  ;;  %v2442_v39 = vld [vmem:[%s3977_s1 + $0x1b4] sm:$0xf] }
  0x28   :  { %481 = vmatpush.bf16.msrb.mxu0 %v2966_v18  ;;  %v1965_v41 = vld [vmem:[%s3977_s1 + $0x1b8] sm:$0xf0]  ;;  %v2392_v42 = vld [vmem:[%s3977_s1 + $0x24] sm:$0xf]  ;;  %v1765_v49 = vld [vmem:[%s3977_s1 + $0x28] sm:$0xf0] }
  0x29   :  { %494 = vmatpush.bf16.msrb.mxu1 %v2970_v19  ;;  %v2001_v53 = vld [vmem:[%s3976_s0 + $0x4] sm:$0xf] }
  0x2a   :  { %507 = vmatpush.bf16.msrb.mxu2 %v2972_v20 }
  0x2b   :  { %520 = vmatpush.bf16.msrb.mxu3 %v2984_v30 }
  0x2c   :  { %482 = vmatpush.bf16.msrb.mxu0 %v3002_v40 }
  0x2d   :  { %495 = vmatpush.bf16.msrb.mxu1 %v3012_v47 }
  0x2e   :  { %508 = vmatpush.bf16.msrb.mxu2 %v3014_v48 }
  0x2f   :  { %521 = vmatpush.bf16.msrb.mxu3 %v3023_v54 }
  0x30   :  { %12 = vsyncpa [#allocation3], 0  ;;  %483 = vmatpush.bf16.msrb.mxu0 %v3041_v11  ;;  %v3086_v63 = vor.u32 %v2394_v13, %v1773_v15  ;;  %v3088_v0 = vld [vmem:[#allocation1 + $0x12] sm:$0xff]  ;;  %v3090_v1 = vld [vmem:[#allocation1] sm:$0xff]  ;;  %v3096_v10 = vor.u32 %v2410_v22, %v1837_v31  ;;  %v3098_v54 = vor.u32 %v2426_v32, %v1901_v36  ;;  %v3109_v48 = vor.u32 %v2442_v39, %v1965_v41  ;;  %s1736_s21 = sshll.u32 %s3983_s7, 4  ;;  %s1737_s21 = int_to_ptr.hbm [resolvable:$true] %s1736_s21 }
  0x31   :  { %v3092_v4 = vld [vmem:[#allocation1 + $0x1b] sm:$0xff]  ;;  %496 = vmatpush.bf16.msrb.mxu1 %v3054_v24  ;;  %v2408_v11 = vld [vmem:[%s3977_s1 + $0xa4] sm:$0xf]  ;;  %v1829_v13 = vld [vmem:[%s3977_s1 + $0xa8] sm:$0xf0]  ;;  %462 = vmatmul.bf16.vlgmr.msra.gmra.mxu2 %v3088_v0  ;;  %v3127_v39 = vor.u32 %v2392_v42, %v1765_v49  ;;  %vm1715_vm0 = vcmask 74752  }
  0x32   :  { %4035 = vst [vmem:[#allocation17_spill] sm:$0xff] %v3086_v63  ;;  %509 = vmatpush.bf16.msrb.mxu2 %v3056_v26  ;;  %v3106_v15 = vld [vmem:[#allocation1 + $0x9] sm:$0xff]  ;;  %v2424_v22 = vld [vmem:[%s3977_s1 + $0x124] sm:$0xf]  ;;  %436 = vmatmul.bf16.vlgmr.msra.gmra.mxu0 %v3090_v1  ;;  %v3132_v41 = vor.u32 %v2408_v11, %v1829_v13  ;;  %v2406_v42 = vld [vmem:[%s3977_s1 + $0x94] sm:$0xf] }
  0x33   :  { %4036 = vst [vmem:[#allocation18_spill] sm:$0xff] %v3096_v10  ;;  %522 = vmatpush.bf16.msrb.mxu3 %v3068_v37  ;;  %v1893_v31 = vld [vmem:[%s3977_s1 + $0x128] sm:$0xf0]  ;;  %v2440_v32 = vld [vmem:[%s3977_s1 + $0x1a4] sm:$0xf]  ;;  %449 = vmatmul.bf16.vlgmr.msra.gmra.mxu1 %v3106_v15 }
  0x34   :  { %4037 = vst [vmem:[#allocation19_spill] sm:$0xff] %v3098_v54  ;;  %v1957_v36 = vld [vmem:[%s3977_s1 + $0x1a8] sm:$0xf0]  ;;  %475 = vmatmul.bf16.vlgmr.msra.gmra.mxu3 %v3092_v4  ;;  %484 = vmatpush.bf16.msrb.mxu0 %v3086_v63  ;;  %v2390_v37 = vld [vmem:[%s3977_s1 + $0x14] sm:$0xf] }
  0x35   :  { %4038 = vst [vmem:[#allocation20_spill] sm:$0xff] %v3109_v48  ;;  %497 = vmatpush.bf16.msrb.mxu1 %v3096_v10  ;;  %v1757_v63 = vld [vmem:[%s3977_s1 + $0x18] sm:$0xf0]  ;;  %v3146_v49 = vor.u32 %v2440_v32, %v1957_v36  ;;  %v2422_v13 = vld [vmem:[%s3977_s1 + $0x114] sm:$0xf] }
  0x36   :  { %537 = vst [vmem:[#allocation1] ss:$9 sm:$0xff] %v2001_v53  ;;  %510 = vmatpush.bf16.msrb.mxu2 %v3098_v54  ;;  %v3134_v53 = vor.u32 %v2424_v22, %v1893_v31  ;;  %v1821_v11 = vld [vmem:[%s3977_s1 + $0x98] sm:$0xf0]  ;;  %v2438_v31 = vld [vmem:[%s3977_s1 + $0x194] sm:$0xf]  ;;  %v3164_v36 = vor.u32 %v2390_v37, %v1757_v63 }
  0x37   :  { %4039 = vst [vmem:[#allocation21_spill] sm:$0xff] %v3132_v41  ;;  %523 = vmatpush.bf16.msrb.mxu3 %v3109_v48  ;;  %v1885_v22 = vld [vmem:[%s3977_s1 + $0x118] sm:$0xf0]  ;;  %v3168_v48 = vor.u32 %v2406_v42, %v1821_v11  ;;  %v2388_v10 = vld [vmem:[%s3977_s1 + $0x4] sm:$0xf] }
  0x38   :  { %4040 = vst [vmem:[#allocation22_spill] sm:$0xff] %v3134_v53  ;;  %v1949_v32 = vld [vmem:[%s3977_s1 + $0x198] sm:$0xf0]  ;;  %485 = vmatpush.bf16.msrb.mxu0 %v3127_v39  ;;  %v3170_v54 = vor.u32 %v2422_v13, %v1885_v22  ;;  %v1749_v26 = vld [vmem:[%s3977_s1 + $0x8] sm:$0xf0] }
  0x39   :  { %4041 = vst [vmem:[#allocation23_spill] sm:$0xff] %v3146_v49  ;;  %498 = vmatpush.bf16.msrb.mxu1 %v3132_v41  ;;  %v2404_v37 = vld [vmem:[%s3977_s1 + $0x84] sm:$0xf]  ;;  %v3182_v63 = vor.u32 %v2438_v31, %v1949_v32  ;;  %v1813_v42 = vld [vmem:[%s3977_s1 + $0x88] sm:$0xf0]  ;;  %v3200_v32 = vor.u32 %v2388_v10, %v1749_v26 }
  0x3a   :  { %511 = vmatpush.bf16.msrb.mxu2 %v3134_v53  ;;  %v2420_v11 = vld [vmem:[%s3977_s1 + $0x104] sm:$0xf]  ;;  %v1877_v13 = vld [vmem:[%s3977_s1 + $0x108] sm:$0xf0] }
  0x3b   :  { %524 = vmatpush.bf16.msrb.mxu3 %v3146_v49  ;;  %v2436_v22 = vld [vmem:[%s3977_s1 + $0x184] sm:$0xf]  ;;  %v1941_v31 = vld [vmem:[%s3977_s1 + $0x188] sm:$0xf0]  ;;  %v3204_v49 = vor.u32 %v2404_v37, %v1813_v42  ;;  %v3206_v53 = vor.u32 %v2420_v11, %v1877_v13  ;;  %v4045_v11 = vld [vmem:[#allocation15_spill] sm:$0xff] }
  0x3c   :  { %486 = vmatpush.bf16.msrb.mxu0 %v3164_v36  ;;  %v3209_v41 = vor.u32 %v2436_v22, %v1941_v31  ;;  %v4046_v13 = vld [vmem:[#allocation16_spill] sm:$0xff]  ;;  %v4047_v22 = vld [vmem:[#allocation17_spill] sm:$0xff]  ;;  %v4048_v31 = vld [vmem:[#allocation18_spill] sm:$0xff] }
  0x3d   :  { %499 = vmatpush.bf16.msrb.mxu1 %v3168_v48  ;;  %v3222_v26 = vld [vmem:[#allocation1 + $0x12] sm:$0xff]  ;;  %v3224_v10 = vld [vmem:[#allocation1] sm:$0xff]  ;;  %v3230_v42 = vld [vmem:[#allocation1 + $0x9] sm:$0xff] }
  0x3e   :  { %512 = vmatpush.bf16.msrb.mxu2 %v3170_v54  ;;  %v3228_v37 = vld [vmem:[#allocation1 + $0x1b] sm:$0xff] }
  0x3f   :  { %525 = vmatpush.bf16.msrb.mxu3 %v3182_v63 }
  0x40   :  { %487 = vmatpush.bf16.msrb.mxu0 %v3200_v32 }
  0x41   :  { %500 = vmatpush.bf16.msrb.mxu1 %v3204_v49 }
  0x42   :  { %513 = vmatpush.bf16.msrb.mxu2 %v3206_v53 }
  0x43   :  { %526 = vmatpush.bf16.msrb.mxu3 %v3209_v41  ;;  %488 = vmatmul.bf16.vlgmr.msrb.gmra.mxu0 %v3090_v1  ;;  %v4042_v1 = vld [vmem:[#allocation11_spill] sm:$0xff] }
  0x44   :  { %546 = vmatpush.bf16.msra.mxu0 %v2630_v3  ;;  %501 = vmatmul.bf16.vlgmr.msrb.gmra.mxu1 %v3106_v15  ;;  %v4044_v15 = vld [vmem:[#allocation13_spill] sm:$0xff] }
  0x45   :  { %559 = vmatpush.bf16.msra.mxu1 %v2641_v7  ;;  %514 = vmatmul.bf16.vlgmr.msrb.gmra.mxu2 %v3088_v0  ;;  %v2002_v0 = vld [vmem:[%s3976_s0 + $0x8] sm:$0xf] }
  0x46   :  { %572 = vmatpush.bf16.msra.mxu2 %v2643_v8  ;;  %527 = vmatmul.bf16.vlgmr.msrb.gmra.mxu3 %v3092_v4  ;;  %657 = vst [vmem:[#allocation1] ss:$9 sm:$0xff] %v2002_v0  ;;  %v4043_v4 = vld [vmem:[#allocation12_spill] sm:$0xff]  ;;  %v4049_v0 = vld [vmem:[#allocation19_spill] sm:$0xff] }
  0x47   :  { %585 = vmatpush.bf16.msra.mxu3 %v2655_v12 }
  0x48   :  { %547 = vmatpush.bf16.msra.mxu0 %v2668_v16 }
  0x49   :  { %560 = vmatpush.bf16.msra.mxu1 %v2670_v17 }
  0x4a   :  { %573 = vmatpush.bf16.msra.mxu2 %v2682_v21 }
  0x4b   :  { %586 = vmatpush.bf16.msra.mxu3 %v2693_v25 }
  0x4c   :  { %548 = vmatpush.bf16.msra.mxu0 %v2705_v29 }
  0x4d   :  { %561 = vmatpush.bf16.msra.mxu1 %v2718_v33 }
  0x4e   :  { %574 = vmatpush.bf16.msra.mxu2 %v2720_v34 }
  0x4f   :  { %587 = vmatpush.bf16.msra.mxu3 %v2732_v38 }
  0x50   :  { %549 = vmatpush.bf16.msra.mxu0 %v2750_v44 }
  0x51   :  { %562 = vmatpush.bf16.msra.mxu1 %v2754_v45 }
  0x52   :  { %575 = vmatpush.bf16.msra.mxu2 %v2756_v46 }
  0x53   :  { %588 = vmatpush.bf16.msra.mxu3 %v2768_v50 }
  0x54   :  { %550 = vmatpush.bf16.msra.mxu0 %v2786_v56 }
  0x55   :  { %563 = vmatpush.bf16.msra.mxu1 %v2790_v57 }
  0x56   :  { %576 = vmatpush.bf16.msra.mxu2 %v2792_v58 }
  0x57   :  { %589 = vmatpush.bf16.msra.mxu3 %v2804_v62 }
  0x58   :  { %551 = vmatpush.bf16.msra.mxu0 %v2822_v5 }
  0x59   :  { %564 = vmatpush.bf16.msra.mxu1 %v2826_v6 }
  0x5a   :  { %577 = vmatpush.bf16.msra.mxu2 %v2828_v9 }
  0x5b   :  { %590 = vmatpush.bf16.msra.mxu3 %v2840_v14 }
  0x5c   :  { %552 = vmatpush.bf16.msra.mxu0 %v2858_v23 }
  0x5d   :  { %565 = vmatpush.bf16.msra.mxu1 %v2868_v27 }
  0x5e   :  { %578 = vmatpush.bf16.msra.mxu2 %v2870_v28 }
  0x5f   :  { %591 = vmatpush.bf16.msra.mxu3 %v2882_v35 }
  0x60   :  { %553 = vmatpush.bf16.msra.mxu0 %v2903_v43 }
  0x61   :  { %566 = vmatpush.bf16.msra.mxu1 %v2916_v51 }
  0x62   :  { %579 = vmatpush.bf16.msra.mxu2 %v2918_v52 }
  0x63   :  { %592 = vmatpush.bf16.msra.mxu3 %v2927_v55  ;;  %554 = vmatmul.bf16.vlgmr.msra.gmra.mxu0 %v3224_v10 }
  0x64   :  { %598 = vmatpush.bf16.msrb.mxu0 %v2929_v59  ;;  %567 = vmatmul.bf16.vlgmr.msra.gmra.mxu1 %v3230_v42 }
  0x65   :  { %611 = vmatpush.bf16.msrb.mxu1 %v2931_v60  ;;  %580 = vmatmul.bf16.vlgmr.msra.gmra.mxu2 %v3222_v26 }
  0x66   :  { %624 = vmatpush.bf16.msrb.mxu2 %v2933_v61  ;;  %593 = vmatmul.bf16.vlgmr.msra.gmra.mxu3 %v3228_v37 }
  0x67   :  { %637 = vmatpush.bf16.msrb.mxu3 %v2945_v2 }
  0x68   :  { %599 = vmatpush.bf16.msrb.mxu0 %v2966_v18 }
  0x69   :  { %612 = vmatpush.bf16.msrb.mxu1 %v2970_v19 }
  0x6a   :  { %625 = vmatpush.bf16.msrb.mxu2 %v2972_v20 }
  0x6b   :  { %638 = vmatpush.bf16.msrb.mxu3 %v2984_v30 }
  0x6c   :  { %600 = vmatpush.bf16.msrb.mxu0 %v3002_v40  ;;  %v4050_v40 = vld [vmem:[#allocation20_spill] sm:$0xff] }
  0x6d   :  { %613 = vmatpush.bf16.msrb.mxu1 %v3012_v47 }
  0x6e   :  { %626 = vmatpush.bf16.msrb.mxu2 %v4042_v1  ;;  %v4051_v1 = vld [vmem:[#allocation21_spill] sm:$0xff] }
  0x6f   :  { %639 = vmatpush.bf16.msrb.mxu3 %v4043_v4  ;;  %v4052_v4 = vld [vmem:[#allocation22_spill] sm:$0xff] }
  0x70   :  { %601 = vmatpush.bf16.msrb.mxu0 %v4044_v15  ;;  %v4053_v15 = vld [vmem:[#allocation23_spill] sm:$0xff] }
  0x71   :  { %614 = vmatpush.bf16.msrb.mxu1 %v3054_v24 }
  0x72   :  { %627 = vmatpush.bf16.msrb.mxu2 %v4045_v11 }
  0x73   :  { %640 = vmatpush.bf16.msrb.mxu3 %v4046_v13 }
  0x74   :  { %602 = vmatpush.bf16.msrb.mxu0 %v4047_v22 }
  0x75   :  { %615 = vmatpush.bf16.msrb.mxu1 %v4048_v31 }
  0x76   :  { %628 = vmatpush.bf16.msrb.mxu2 %v4049_v0 }
  0x77   :  { %641 = vmatpush.bf16.msrb.mxu3 %v4050_v40 }
  0x78   :  { %603 = vmatpush.bf16.msrb.mxu0 %v3127_v39 }
  0x79   :  { %616 = vmatpush.bf16.msrb.mxu1 %v4051_v1 }
  0x7a   :  { %629 = vmatpush.bf16.msrb.mxu2 %v4052_v4 }
  0x7b   :  { %642 = vmatpush.bf16.msrb.mxu3 %v4053_v15 }
  0x7c   :  { %604 = vmatpush.bf16.msrb.mxu0 %v3164_v36 }
  0x7d   :  { %617 = vmatpush.bf16.msrb.mxu1 %v3168_v48 }
  0x7e   :  { %630 = vmatpush.bf16.msrb.mxu2 %v3170_v54 }
  0x7f   :  { %643 = vmatpush.bf16.msrb.mxu3 %v3182_v63 }
  0x80   :  { %605 = vmatpush.bf16.msrb.mxu0 %v3200_v32 }
  0x81   :  { %618 = vmatpush.bf16.msrb.mxu1 %v3204_v49 }
  0x82   :  { %631 = vmatpush.bf16.msrb.mxu2 %v3206_v53 }
  0x83   :  { %644 = vmatpush.bf16.msrb.mxu3 %v3209_v41  ;;  %606 = vmatmul.bf16.vlgmr.msrb.gmra.mxu0 %v3224_v10  ;;  %v658_v10 = vld [vmem:[#allocation1] sm:$0xff] }
  0x84   :  { %666 = vmatpush.bf16.msra.mxu0 %v2630_v3  ;;  %619 = vmatmul.bf16.vlgmr.msrb.gmra.mxu1 %v3230_v42  ;;  %v659_v42 = vld [vmem:[#allocation1 + $0x9] sm:$0xff] }
  0x85   :  { %679 = vmatpush.bf16.msra.mxu1 %v2641_v7  ;;  %632 = vmatmul.bf16.vlgmr.msrb.gmra.mxu2 %v3222_v26  ;;  %v660_v26 = vld [vmem:[#allocation1 + $0x12] sm:$0xff] }
  0x86   :  { %692 = vmatpush.bf16.msra.mxu2 %v2643_v8  ;;  %645 = vmatmul.bf16.vlgmr.msrb.gmra.mxu3 %v3228_v37  ;;  %v661_v37 = vld [vmem:[#allocation1 + $0x1b] sm:$0xff] }
  0x87   :  { %705 = vmatpush.bf16.msra.mxu3 %v2655_v12 }
  0x88   :  { %667 = vmatpush.bf16.msra.mxu0 %v2668_v16 }
  0x89   :  { %680 = vmatpush.bf16.msra.mxu1 %v2670_v17 }
  0x8a   :  { %693 = vmatpush.bf16.msra.mxu2 %v2682_v21 }
  0x8b   :  { %706 = vmatpush.bf16.msra.mxu3 %v2693_v25 }
  0x8c   :  { %668 = vmatpush.bf16.msra.mxu0 %v2705_v29 }
  0x8d   :  { %681 = vmatpush.bf16.msra.mxu1 %v2718_v33 }
  0x8e   :  { %694 = vmatpush.bf16.msra.mxu2 %v2720_v34 }
  0x8f   :  { %707 = vmatpush.bf16.msra.mxu3 %v2732_v38 }
  0x90   :  { %669 = vmatpush.bf16.msra.mxu0 %v2750_v44 }
  0x91   :  { %682 = vmatpush.bf16.msra.mxu1 %v2754_v45 }
  0x92   :  { %695 = vmatpush.bf16.msra.mxu2 %v2756_v46 }
  0x93   :  { %708 = vmatpush.bf16.msra.mxu3 %v2768_v50 }
  0x94   :  { %670 = vmatpush.bf16.msra.mxu0 %v2786_v56 }
  0x95   :  { %683 = vmatpush.bf16.msra.mxu1 %v2790_v57 }
  0x96   :  { %696 = vmatpush.bf16.msra.mxu2 %v2792_v58 }
  0x97   :  { %709 = vmatpush.bf16.msra.mxu3 %v2804_v62 }
  0x98   :  { %671 = vmatpush.bf16.msra.mxu0 %v2822_v5 }
  0x99   :  { %684 = vmatpush.bf16.msra.mxu1 %v2826_v6 }
  0x9a   :  { %697 = vmatpush.bf16.msra.mxu2 %v2828_v9 }
  0x9b   :  { %710 = vmatpush.bf16.msra.mxu3 %v2840_v14 }
  0x9c   :  { %672 = vmatpush.bf16.msra.mxu0 %v2858_v23 }
  0x9d   :  { %685 = vmatpush.bf16.msra.mxu1 %v2868_v27 }
  0x9e   :  { %698 = vmatpush.bf16.msra.mxu2 %v2870_v28 }
  0x9f   :  { %711 = vmatpush.bf16.msra.mxu3 %v2882_v35 }
  0xa0   :  { %673 = vmatpush.bf16.msra.mxu0 %v2903_v43 }
  0xa1   :  { %686 = vmatpush.bf16.msra.mxu1 %v2916_v51 }
  0xa2   :  { %699 = vmatpush.bf16.msra.mxu2 %v2918_v52 }
  0xa3   :  { %712 = vmatpush.bf16.msra.mxu3 %v2927_v55  ;;  %674 = vmatmul.bf16.vlgmr.msra.gmra.mxu0 %v658_v10 }
  0xa4   :  { %718 = vmatpush.bf16.msrb.mxu0 %v2929_v59  ;;  %687 = vmatmul.bf16.vlgmr.msra.gmra.mxu1 %v659_v42  ;;  %v4054_v59 = vld [vmem:[#allocation10_spill] sm:$0xff] }
  0xa5   :  { %731 = vmatpush.bf16.msrb.mxu1 %v2931_v60  ;;  %700 = vmatmul.bf16.vlgmr.msra.gmra.mxu2 %v660_v26  ;;  %v4056_v60 = vld [vmem:[#allocation12_spill] sm:$0xff] }
  0xa6   :  { %744 = vmatpush.bf16.msrb.mxu2 %v2933_v61  ;;  %713 = vmatmul.bf16.vlgmr.msra.gmra.mxu3 %v661_v37  ;;  %v4055_v61 = vld [vmem:[#allocation11_spill] sm:$0xff] }
  0xa7   :  { %757 = vmatpush.bf16.msrb.mxu3 %v2945_v2  ;;  %v4057_v2 = vld [vmem:[#allocation13_spill] sm:$0xff] }
  0xa8   :  { %719 = vmatpush.bf16.msrb.mxu0 %v2966_v18 }
  0xa9   :  { %732 = vmatpush.bf16.msrb.mxu1 %v2970_v19 }
  0xaa   :  { %745 = vmatpush.bf16.msrb.mxu2 %v2972_v20 }
  0xab   :  { %758 = vmatpush.bf16.msrb.mxu3 %v2984_v30  ;;  %v91_v30 = vld [vmem:[%s3978_s2] sm:$0x3] }
  0xac   :  { %720 = vmatpush.bf16.msrb.mxu0 %v4054_v59 }
  0xad   :  { %733 = vmatpush.bf16.msrb.mxu1 %v3012_v47 }
  0xae   :  { %746 = vmatpush.bf16.msrb.mxu2 %v4055_v61  ;;  %v3356_v61 = vperm.slane %v91_v30, 0 }
  0xaf   :  { %759 = vmatpush.bf16.msrb.mxu3 %v4056_v60 }
  0xb0   :  { %721 = vmatpush.bf16.msrb.mxu0 %v4057_v2 }
  0xb1   :  { %734 = vmatpush.bf16.msrb.mxu1 %v3054_v24  ;;  %v437_v24 = vpop.f32.mrf.mxu0 }
  0xb2   :  { %747 = vmatpush.bf16.msrb.mxu2 %v4045_v11  ;;  %v450_v11 = vpop.f32.mrf.mxu1 }
  0xb3   :  { %760 = vmatpush.bf16.msrb.mxu3 %v4046_v13  ;;  %v438_v13 = vadd.f32 %v437_v24, %v3356_v61 }
  0xb4   :  { %722 = vmatpush.bf16.msrb.mxu0 %v4047_v22 }
  0xb5   :  { %735 = vmatpush.bf16.msrb.mxu1 %v4048_v31  ;;  %v451_v22 = vadd.f32 %v450_v11, %v438_v13 }
  0xb6   :  { %748 = vmatpush.bf16.msrb.mxu2 %v4049_v0  ;;  %v2003_v0 = vld [vmem:[%s3976_s0 + $0xc] sm:$0xf] }
  0xb7   :  { %761 = vmatpush.bf16.msrb.mxu3 %v4050_v40  ;;  %775 = vst [vmem:[#allocation1] ss:$9 sm:$0xff] %v2003_v0  ;;  %v476_v24 = vpop.f32.mrf.mxu3  ;;  %v4069_v0 = vld [vmem:[#allocation21_spill] sm:$0xff] }
  0xb8   :  { %723 = vmatpush.bf16.msrb.mxu0 %v3127_v39 }
  0xb9   :  { %736 = vmatpush.bf16.msrb.mxu1 %v4051_v1  ;;  %v463_v1 = vpop.f32.mrf.mxu2  ;;  %v439_v11 = vpop.f32.mrf.mxu0 }
  0xba   :  { %749 = vmatpush.bf16.msrb.mxu2 %v4052_v4  ;;  %v464_v4 = vadd.f32 %v463_v1, %v451_v22  ;;  %v452_v13 = vpop.f32.mrf.mxu1  ;;  %v3384_v22 = vperm.slane %v91_v30, 1  ;;  %v2482_v11 = vld [vmem:[%s3979_s3 + $0xec] sm:$0xf0] }
  0xbb   :  { %762 = vmatpush.bf16.msrb.mxu3 %v4053_v15  ;;  %v2480_v13 = vld [vmem:[%s3979_s3 + $0xe4] sm:$0xf] }
  0xbc   :  { %724 = vmatpush.bf16.msrb.mxu0 %v3164_v36  ;;  %v3372_v15 = vadd.f32 %v476_v24, %v464_v4 }
  0xbd   :  { %737 = vmatpush.bf16.msrb.mxu1 %v3168_v48 }
  0xbe   :  { %750 = vmatpush.bf16.msrb.mxu2 %v3170_v54 }
  0xbf   :  { %763 = vmatpush.bf16.msrb.mxu3 %v3182_v63  ;;  %v478_v4 = vpop.f32.mrf.mxu3 }
  0xc0   :  { %725 = vmatpush.bf16.msrb.mxu0 %v3200_v32 }
  0xc1   :  { %738 = vmatpush.bf16.msrb.mxu1 %v3204_v49  ;;  %v465_v1 = vpop.f32.mrf.mxu2 }
  0xc2   :  { %751 = vmatpush.bf16.msrb.mxu2 %v3206_v53 }
  0xc3   :  { %764 = vmatpush.bf16.msrb.mxu3 %v3209_v41  ;;  %726 = vmatmul.bf16.vlgmr.msrb.gmra.mxu0 %v658_v10 }
  0xc4   :  { %784 = vmatpush.bf16.msra.mxu0 %v2630_v3  ;;  %739 = vmatmul.bf16.vlgmr.msrb.gmra.mxu1 %v659_v42  ;;  %v489_v3 = vpop.f32.mrf.mxu0 }
  0xc5   :  { %797 = vmatpush.bf16.msra.mxu1 %v2641_v7  ;;  %752 = vmatmul.bf16.vlgmr.msrb.gmra.mxu2 %v660_v26  ;;  %v490_v7 = vadd.f32 %v489_v3, %v3384_v22  ;;  %v4070_v26 = vld [vmem:[#allocation22_spill] sm:$0xff] }
  0xc6   :  { %810 = vmatpush.bf16.msra.mxu2 %v2643_v8  ;;  %765 = vmatmul.bf16.vlgmr.msrb.gmra.mxu3 %v661_v37  ;;  %v502_v8 = vpop.f32.mrf.mxu1  ;;  %v4071_v37 = vld [vmem:[#allocation23_spill] sm:$0xff]  ;;  %v2120_v3 = vld [vmem:[%s3979_s3 + $0xf0] sm:$0xf0] }
  0xc7   :  { %823 = vmatpush.bf16.msra.mxu3 %v2655_v12  ;;  %v503_v12 = vadd.f32 %v502_v8, %v490_v7  ;;  %v2102_v7 = vld [vmem:[%s3979_s3 + $0xc0] sm:$0xf]  ;;  %v2478_v8 = vld [vmem:[%s3979_s3 + $0xcc] sm:$0xf0] }
  0xc8   :  { %785 = vmatpush.bf16.msra.mxu0 %v2668_v16 }
  0xc9   :  { %798 = vmatpush.bf16.msra.mxu1 %v2670_v17  ;;  %v515_v16 = vpop.f32.mrf.mxu2 }
  0xca   :  { %811 = vmatpush.bf16.msra.mxu2 %v2682_v21  ;;  %v516_v17 = vadd.f32 %v515_v16, %v503_v12  ;;  %v528_v21 = vpop.f32.mrf.mxu3  ;;  %v2123_v16 = vor.u32 %v2480_v13, %v2120_v3  ;;  %v2248_v3 = vld [vmem:[%s3979_s3 + $0x1f0] sm:$0xf0] }
  0xcb   :  { %824 = vmatpush.bf16.msra.mxu3 %v2693_v25 }
  0xcc   :  { %786 = vmatpush.bf16.msra.mxu0 %v2705_v29  ;;  %v3397_v25 = vadd.f32 %v528_v21, %v516_v17  ;;  %v491_v29 = vpop.f32.mrf.mxu0  ;;  %v2476_v17 = vld [vmem:[%s3979_s3 + $0xc4] sm:$0xf]  ;;  %v2104_v21 = vld [vmem:[%s3979_s3 + $0xd0] sm:$0xf0] }
  0xcd   :  { %799 = vmatpush.bf16.msra.mxu1 %v2718_v33  ;;  %v2103_v29 = vor.u32 %v2478_v8, %v2102_v7  ;;  %v2126_v7 = vld [vmem:[%s3979_s3 + $0xe8] sm:$0xf] }
  0xce   :  { %812 = vmatpush.bf16.msra.mxu2 %v2720_v34  ;;  %v504_v33 = vpop.f32.mrf.mxu1 }
  0xcf   :  { %825 = vmatpush.bf16.msra.mxu3 %v2732_v38  ;;  %v2107_v33 = vor.u32 %v2476_v17, %v2104_v21  ;;  %v2128_v17 = vld [vmem:[%s3979_s3 + $0xf8] sm:$0xf0] }
  0xd0   :  { %787 = vmatpush.bf16.msra.mxu0 %v2750_v44  ;;  %v778_v44 = vld [vmem:[#allocation1 + $0x12] sm:$0xff] }
  0xd1   :  { %800 = vmatpush.bf16.msra.mxu1 %v2754_v45  ;;  %v517_v34 = vpop.f32.mrf.mxu2  ;;  %v4058_v45 = vld [vmem:[#allocation5_spill] sm:$0xff] }
  0xd2   :  { %813 = vmatpush.bf16.msra.mxu2 %v2756_v46  ;;  %v530_v38 = vpop.f32.mrf.mxu3  ;;  %v776_v46 = vld [vmem:[#allocation1] sm:$0xff] }
  0xd3   :  { %826 = vmatpush.bf16.msra.mxu3 %v2768_v50  ;;  %v779_v50 = vld [vmem:[#allocation1 + $0x1b] sm:$0xff]  ;;  %v2474_v38 = vld [vmem:[%s3979_s3 + $0xac] sm:$0xf0] }
  0xd4   :  { %788 = vmatpush.bf16.msra.mxu0 %v2786_v56  ;;  %v4059_v56 = vld [vmem:[#allocation6_spill] sm:$0xff]  ;;  %v2086_v34 = vld [vmem:[%s3979_s3 + $0xa0] sm:$0xf] }
  0xd5   :  { %801 = vmatpush.bf16.msra.mxu1 %v2790_v57  ;;  %v4060_v57 = vld [vmem:[#allocation7_spill] sm:$0xff] }
  0xd6   :  { %814 = vmatpush.bf16.msra.mxu2 %v2792_v58  ;;  %v777_v58 = vld [vmem:[#allocation1 + $0x9] sm:$0xff] }
  0xd7   :  { %827 = vmatpush.bf16.msra.mxu3 %v2804_v62  ;;  %v4061_v62 = vld [vmem:[#allocation8_spill] sm:$0xff] }
  0xd8   :  { %789 = vmatpush.bf16.msra.mxu0 %v2822_v5  ;;  %v4062_v5 = vld [vmem:[#allocation9_spill] sm:$0xff] }
  0xd9   :  { %802 = vmatpush.bf16.msra.mxu1 %v2826_v6 }
  0xda   :  { %815 = vmatpush.bf16.msra.mxu2 %v2828_v9  ;;  %v4063_v9 = vld [vmem:[#allocation11_spill] sm:$0xff] }
  0xdb   :  { %828 = vmatpush.bf16.msra.mxu3 %v2840_v14 }
  0xdc   :  { %790 = vmatpush.bf16.msra.mxu0 %v2858_v23 }
  0xdd   :  { %803 = vmatpush.bf16.msra.mxu1 %v2868_v27 }
  0xde   :  { %816 = vmatpush.bf16.msra.mxu2 %v2870_v28  ;;  %v4064_v28 = vld [vmem:[#allocation14_spill] sm:$0xff] }
  0xdf   :  { %829 = vmatpush.bf16.msra.mxu3 %v2882_v35  ;;  %v4065_v35 = vld [vmem:[#allocation15_spill] sm:$0xff] }
  0xe0   :  { %791 = vmatpush.bf16.msra.mxu0 %v2903_v43  ;;  %v555_v6 = vpop.f32.mrf.mxu0 }
  0xe1   :  { %804 = vmatpush.bf16.msra.mxu1 %v2916_v51  ;;  %v556_v14 = vadd.f32 %v555_v6, %v3356_v61  ;;  %v568_v23 = vpop.f32.mrf.mxu1  ;;  %v4066_v51 = vld [vmem:[#allocation16_spill] sm:$0xff]  ;;  %v2072_v6 = vld [vmem:[%s3979_s3 + $0x90] sm:$0xf0] }
  0xe2   :  { %817 = vmatpush.bf16.msra.mxu2 %v2918_v52 }
  0xe3   :  { %830 = vmatpush.bf16.msra.mxu3 %v2927_v55  ;;  %792 = vmatmul.bf16.vlgmr.msra.gmra.mxu0 %v776_v46  ;;  %v569_v27 = vadd.f32 %v568_v23, %v556_v14  ;;  %v2054_v23 = vld [vmem:[%s3979_s3 + $0x60] sm:$0xf] }
  0xe4   :  { %836 = vmatpush.bf16.msrb.mxu0 %v4058_v45  ;;  %805 = vmatmul.bf16.vlgmr.msra.gmra.mxu1 %v777_v58  ;;  %v2088_v45 = vld [vmem:[%s3979_s3 + $0xb0] sm:$0xf0] }
  0xe5   :  { %849 = vmatpush.bf16.msrb.mxu1 %v4059_v56  ;;  %818 = vmatmul.bf16.vlgmr.msra.gmra.mxu2 %v778_v44  ;;  %v2070_v56 = vld [vmem:[%s3979_s3 + $0x80] sm:$0xf] }
  0xe6   :  { %862 = vmatpush.bf16.msrb.mxu2 %v4060_v57  ;;  %831 = vmatmul.bf16.vlgmr.msra.gmra.mxu3 %v779_v50  ;;  %v2470_v57 = vld [vmem:[%s3979_s3 + $0x8c] sm:$0xf0] }
  0xe7   :  { %875 = vmatpush.bf16.msrb.mxu3 %v4061_v62 }
  0xe8   :  { %837 = vmatpush.bf16.msrb.mxu0 %v2966_v18  ;;  %v581_v43 = vpop.f32.mrf.mxu2 }
  0xe9   :  { %850 = vmatpush.bf16.msrb.mxu1 %v2970_v19  ;;  %v582_v52 = vadd.f32 %v581_v43, %v569_v27  ;;  %v594_v55 = vpop.f32.mrf.mxu3  ;;  %v557_v19 = vpop.f32.mrf.mxu0  ;;  %v2466_v27 = vld [vmem:[%s3979_s3 + $0x6c] sm:$0xf0] }
  0xea   :  { %863 = vmatpush.bf16.msrb.mxu2 %v2972_v20  ;;  %v4068_v20 = vld [vmem:[#allocation19_spill] sm:$0xff]  ;;  %v2055_v43 = vor.u32 %v2466_v27, %v2054_v23  ;;  %v2462_v19 = vld [vmem:[%s3979_s3 + $0x4c] sm:$0xf0] }
  0xeb   :  { %876 = vmatpush.bf16.msrb.mxu3 %v4062_v5  ;;  %v595_v18 = vadd.f32 %v594_v55, %v582_v52  ;;  %v2071_v5 = vor.u32 %v2470_v57, %v2070_v56  ;;  %v2214_v27 = vld [vmem:[%s3979_s3 + $0x1a0] sm:$0xf] }
  0xec   :  { %838 = vmatpush.bf16.msrb.mxu0 %v4054_v59  ;;  %v4067_v59 = vld [vmem:[#allocation17_spill] sm:$0xff] }
  0xed   :  { %851 = vmatpush.bf16.msrb.mxu1 %v3012_v47  ;;  %v650_v30 = vmax.f32 %v595_v18, 0.0  ;;  %v2038_v18 = vld [vmem:[%s3979_s3 + $0x40] sm:$0xf] }
  0xee   :  { %864 = vmatpush.bf16.msrb.mxu2 %v4063_v9 }
  0xef   :  { %877 = vmatpush.bf16.msrb.mxu3 %v4056_v60  ;;  %v570_v60 = vpop.f32.mrf.mxu1 }
  0xf0   :  { %839 = vmatpush.bf16.msrb.mxu0 %v4057_v2  ;;  %v532_v2 = vmax.f32 %v3372_v15, 0.0  ;;  %v583_v10 = vpop.f32.mrf.mxu2 }
  0xf1   :  { %852 = vmatpush.bf16.msrb.mxu1 %v4064_v28  ;;  %v2464_v28 = vld [vmem:[%s3979_s3 + $0x64] sm:$0xf]  ;;  %v2458_v10 = vld [vmem:[%s3979_s3 + $0x2c] sm:$0xf0] }
  0xf2   :  { %865 = vmatpush.bf16.msrb.mxu2 %v4065_v35  ;;  %v3436_v47 = vmax.f32 %v532_v2, %v650_v30  ;;  %v2039_v2 = vor.u32 %v2462_v19, %v2038_v18  ;;  %v2040_v30 = vld [vmem:[%s3979_s3 + $0x50] sm:$0xf0]  ;;  %v2094_v18 = vld [vmem:[%s3979_s3 + $0xa8] sm:$0xf]  ;;  %v2475_v19 = vld [vmem:[%s3979_s3 + $0xb4] sm:$0xf0] }
  0xf3   :  { %878 = vmatpush.bf16.msrb.mxu3 %v4066_v51  ;;  %v2056_v51 = vld [vmem:[%s3979_s3 + $0x70] sm:$0xf0] }
  0xf4   :  { %840 = vmatpush.bf16.msrb.mxu0 %v4067_v59  ;;  %v2059_v55 = vor.u32 %v2464_v28, %v2056_v51  ;;  %v2506_v28 = vld [vmem:[%s3979_s3 + $0x1ac] sm:$0xf0] }
  0xf5   :  { %853 = vmatpush.bf16.msrb.mxu1 %v4048_v31  ;;  %v596_v31 = vpop.f32.mrf.mxu3 }
  0xf6   :  { %866 = vmatpush.bf16.msrb.mxu2 %v4068_v20  ;;  %v2460_v20 = vld [vmem:[%s3979_s3 + $0x44] sm:$0xf] }
  0xf7   :  { %879 = vmatpush.bf16.msrb.mxu3 %v4050_v40 }
  0xf8   :  { %841 = vmatpush.bf16.msrb.mxu0 %v3127_v39 }
  0xf9   :  { %854 = vmatpush.bf16.msrb.mxu1 %v4069_v0  ;;  %v2043_v0 = vor.u32 %v2460_v20, %v2040_v30  ;;  %v2096_v30 = vld [vmem:[%s3979_s3 + $0xb8] sm:$0xf0] }
  0xfa   :  { %867 = vmatpush.bf16.msrb.mxu2 %v4070_v26  ;;  %v2022_v26 = vld [vmem:[%s3979_s3 + $0x20] sm:$0xf] }
  0xfb   :  { %880 = vmatpush.bf16.msrb.mxu3 %v4071_v37  ;;  %v2456_v37 = vld [vmem:[%s3979_s3 + $0x24] sm:$0xf]  ;;  %v2023_v31 = vor.u32 %v2458_v10, %v2022_v26  ;;  %v2198_v26 = vld [vmem:[%s3979_s3 + $0x180] sm:$0xf]  ;;  %v2502_v10 = vld [vmem:[%s3979_s3 + $0x18c] sm:$0xf0] }
  0xfc   :  { %842 = vmatpush.bf16.msrb.mxu0 %v3164_v36 }
  0xfd   :  { %855 = vmatpush.bf16.msrb.mxu1 %v3168_v48 }
  0xfe   :  { %868 = vmatpush.bf16.msrb.mxu2 %v3170_v54 }
  0xff   :  { %881 = vmatpush.bf16.msrb.mxu3 %v3182_v63 }
 0x100   :  { %843 = vmatpush.bf16.msrb.mxu0 %v3200_v32  ;;  %v607_v40 = vpop.f32.mrf.mxu0 }
 0x101   :  { %856 = vmatpush.bf16.msrb.mxu1 %v3204_v49  ;;  %v608_v39 = vadd.f32 %v607_v40, %v3384_v22  ;;  %v620_v48 = vpop.f32.mrf.mxu1  ;;  %v533_v49 = vmax.f32 %v3397_v25, 0.0  ;;  %v2024_v40 = vld [vmem:[%s3979_s3 + $0x30] sm:$0xf0] }
 0x102   :  { %869 = vmatpush.bf16.msrb.mxu2 %v3206_v53 }
 0x103   :  { %882 = vmatpush.bf16.msrb.mxu3 %v3209_v41  ;;  %844 = vmatmul.bf16.vlgmr.msrb.gmra.mxu0 %v776_v46  ;;  %v621_v36 = vadd.f32 %v620_v48, %v608_v39  ;;  %v2118_v41 = vld [vmem:[%s3979_s3 + $0xe0] sm:$0xf]  ;;  %v2087_v46 = vor.u32 %v2474_v38, %v2086_v34  ;;  %v2027_v48 = vor.u32 %v2456_v37, %v2024_v40  ;;  %v2508_v34 = vld [vmem:[%s3979_s3 + $0x1c4] sm:$0xf] }
 0x104   :  { %857 = vmatmul.bf16.vlgmr.msrb.gmra.mxu1 %v777_v58  ;;  %v2119_v4 = vor.u32 %v2482_v11, %v2118_v41  ;;  %v2468_v58 = vld [vmem:[%s3979_s3 + $0x84] sm:$0xf]  ;;  %v2199_v40 = vor.u32 %v2502_v10, %v2198_v26  ;;  %v2134_v26 = vld [vmem:[%s3979_s3 + $0x100] sm:$0xf]  ;;  %v2486_v10 = vld [vmem:[%s3979_s3 + $0x10c] sm:$0xf0] }
 0x105   :  { %870 = vmatmul.bf16.vlgmr.msrb.gmra.mxu2 %v778_v44  ;;  %v2472_v44 = vld [vmem:[%s3979_s3 + $0xa4] sm:$0xf]  ;;  %v2075_v14 = vor.u32 %v2468_v58, %v2072_v6  ;;  %v2112_v6 = vld [vmem:[%s3979_s3 + $0xd8] sm:$0xf0] }
 0x106   :  { %883 = vmatmul.bf16.vlgmr.msrb.gmra.mxu3 %v779_v50  ;;  %1290 = vmatpush.bf16.msra.mxu0 %v2119_v4  ;;  %v2091_v50 = vor.u32 %v2472_v44, %v2088_v45  ;;  %v2512_v4 = vld [vmem:[%s3979_s3 + $0x1e4] sm:$0xf]  ;;  %v2232_v45 = vld [vmem:[%s3979_s3 + $0x1d0] sm:$0xf0] }
 0x107   :  { %1316 = vmatpush.bf16.msra.mxu2 %v2123_v16  ;;  %v2251_v8 = vor.u32 %v2512_v4, %v2248_v3  ;;  %v2481_v16 = vld [vmem:[%s3979_s3 + $0xec] sm:$0xf]  ;;  %v2235_v57 = vor.u32 %v2508_v34, %v2232_v45  ;;  %v2500_v37 = vld [vmem:[%s3979_s3 + $0x184] sm:$0xf]  ;;  %v2184_v3 = vld [vmem:[%s3979_s3 + $0x170] sm:$0xf0] }
 0x108   :  { %v633_v54 = vpop.f32.mrf.mxu2  ;;  %v609_v32 = vpop.f32.mrf.mxu0  ;;  %v2492_v34 = vld [vmem:[%s3979_s3 + $0x144] sm:$0xf] }
 0x109   :  { %v634_v15 = vadd.f32 %v633_v54, %v621_v36  ;;  %v646_v63 = vpop.f32.mrf.mxu3  ;;  %v622_v24 = vpop.f32.mrf.mxu1  ;;  %v2006_v54 = vld [vmem:[%s3979_s3] sm:$0xf]  ;;  %1329 = vmatpush.bf16.msra.mxu3 %v2251_v8  ;;  %v2467_v8 = vld [vmem:[%s3979_s3 + $0x74] sm:$0xf0] }
 0x10a   :  { %1291 = vmatpush.bf16.msra.mxu0 %v2103_v29  ;;  %v2008_v24 = vld [vmem:[%s3979_s3 + $0x10] sm:$0xf0]  ;;  %v2230_v29 = vld [vmem:[%s3979_s3 + $0x1c0] sm:$0xf] }
 0x10b   :  { %v647_v42 = vadd.f32 %v646_v63, %v634_v15  ;;  %1317 = vmatpush.bf16.msra.mxu2 %v2107_v33  ;;  %v2454_v15 = vld [vmem:[%s3979_s3 + $0xc] sm:$0xf0]  ;;  %v2452_v63 = vld [vmem:[%s3979_s3 + $0x4] sm:$0xf] }
 0x10c   :  { %v2007_v32 = vor.u32 %v2454_v15, %v2006_v54  ;;  %v2011_v11 = vor.u32 %v2452_v63, %v2008_v24  ;;  %v2510_v33 = vld [vmem:[%s3979_s3 + $0x1cc] sm:$0xf0]  ;;  %v2080_v24 = vld [vmem:[%s3979_s3 + $0x98] sm:$0xf0] }
 0x10d   :  { %v651_v53 = vmax.f32 %v647_v42, 0.0  ;;  %v2231_v44 = vor.u32 %v2510_v33, %v2230_v29  ;;  %1330 = vmatpush.bf16.msra.mxu3 %v2235_v57  ;;  %v2494_v33 = vld [vmem:[%s3979_s3 + $0x14c] sm:$0xf0]  ;;  %v2463_v57 = vld [vmem:[%s3979_s3 + $0x54] sm:$0xf0] }
 0x10e   :  { %1292 = vmatpush.bf16.msra.mxu0 %v2087_v46  ;;  %v2110_v46 = vld [vmem:[%s3979_s3 + $0xc8] sm:$0xf] }
 0x10f   :  { %v3461_v1 = vmax.f32 %v533_v49, %v651_v53  ;;  %1318 = vmatpush.bf16.msra.mxu2 %v2091_v50  ;;  %v2246_v49 = vld [vmem:[%s3979_s3 + $0x1e0] sm:$0xf]  ;;  %v2514_v53 = vld [vmem:[%s3979_s3 + $0x1ec] sm:$0xf0]  ;;  %v2479_v50 = vld [vmem:[%s3979_s3 + $0xd4] sm:$0xf0] }
 0x110   :  { %v635_v12 = vpop.f32.mrf.mxu2  ;;  %v2247_v13 = vor.u32 %v2514_v53, %v2246_v49  ;;  %v2111_v58 = vor.u32 %v2479_v50, %v2110_v46  ;;  %v2182_v53 = vld [vmem:[%s3979_s3 + $0x160] sm:$0xf]  ;;  %v2046_v50 = vld [vmem:[%s3979_s3 + $0x48] sm:$0xf] }
 0x111   :  { %v648_v25 = vpop.f32.mrf.mxu3  ;;  %v2483_v12 = vld [vmem:[%s3979_s3 + $0xf4] sm:$0xf0] }
 0x112   :  { %1293 = vmatpush.bf16.msra.mxu0 %v2071_v5  ;;  %1303 = vmatpush.bf16.msra.mxu1 %v2247_v13  ;;  %v2127_v21 = vor.u32 %v2483_v12, %v2126_v7  ;;  %v2131_v25 = vor.u32 %v2481_v16, %v2128_v17  ;;  %v2477_v5 = vld [vmem:[%s3979_s3 + $0xcc] sm:$0xf]  ;;  %v2496_v13 = vld [vmem:[%s3979_s3 + $0x164] sm:$0xf]  ;;  %v2062_v7 = vld [vmem:[%s3979_s3 + $0x68] sm:$0xf] }
 0x113   :  { %1319 = vmatpush.bf16.msra.mxu2 %v2075_v14  ;;  %v2115_v14 = vor.u32 %v2477_v5, %v2112_v6  ;;  %v2187_v12 = vor.u32 %v2496_v13, %v2184_v3  ;;  %v2063_v16 = vor.u32 %v2467_v8, %v2062_v7  ;;  %v2465_v17 = vld [vmem:[%s3979_s3 + $0x6c] sm:$0xf]  ;;  %v2047_v5 = vor.u32 %v2463_v57, %v2046_v50  ;;  %v2048_v6 = vld [vmem:[%s3979_s3 + $0x58] sm:$0xf0]  ;;  %v2238_v8 = vld [vmem:[%s3979_s3 + $0x1c8] sm:$0xf] }
 0x114   :  { %v2256_v13 = vld [vmem:[%s3979_s3 + $0x1f8] sm:$0xf0] }
 0x116   :  { %1294 = vmatpush.bf16.msra.mxu0 %v2055_v43  ;;  %1304 = vmatpush.bf16.msra.mxu1 %v2231_v44  ;;  %v2504_v43 = vld [vmem:[%s3979_s3 + $0x1a4] sm:$0xf]  ;;  %v2168_v44 = vld [vmem:[%s3979_s3 + $0x150] sm:$0xf0] }
 0x117   :  { %1320 = vmatpush.bf16.msra.mxu2 %v2059_v55  ;;  %v2215_v55 = vor.u32 %v2506_v28, %v2214_v27  ;;  %v2171_v46 = vor.u32 %v2492_v34, %v2168_v44  ;;  %v2488_v28 = vld [vmem:[%s3979_s3 + $0x124] sm:$0xf]  ;;  %v2222_v44 = vld [vmem:[%s3979_s3 + $0x1a8] sm:$0xf] }
 0x11a   :  { %1295 = vmatpush.bf16.msra.mxu0 %v2039_v2  ;;  %v2473_v2 = vld [vmem:[%s3979_s3 + $0xac] sm:$0xf]  ;;  %1305 = vmatpush.bf16.msra.mxu1 %v2215_v55 }
 0x11b   :  { %1321 = vmatpush.bf16.msra.mxu2 %v2043_v0  ;;  %v2099_v0 = vor.u32 %v2473_v2, %v2096_v30 }
 0x11e   :  { %1296 = vmatpush.bf16.msra.mxu0 %v2023_v31  ;;  %1306 = vmatpush.bf16.msra.mxu1 %v2199_v40  ;;  %v2455_v40 = vld [vmem:[%s3979_s3 + $0x14] sm:$0xf0] }
 0x11f   :  { %1322 = vmatpush.bf16.msra.mxu2 %v2027_v48  ;;  %v2078_v48 = vld [vmem:[%s3979_s3 + $0x88] sm:$0xf] }
 0x120   :  { %v3499_v62 = vpop.f32.mrf.mxu0 }
 0x121   :  { %v3504_v9 = vpop.f32.mrf.mxu1 }
 0x122   :  { %1297 = vmatpush.bf16.msra.mxu0 %v2007_v32  ;;  %v2469_v32 = vld [vmem:[%s3979_s3 + $0x8c] sm:$0xf] }
 0x123   :  { %1323 = vmatpush.bf16.msra.mxu2 %v2011_v11  ;;  %v2083_v49 = vor.u32 %v2469_v32, %v2080_v24  ;;  %v2498_v11 = vld [vmem:[%s3979_s3 + $0x16c] sm:$0xf0] }
 0x124   :  { %v2183_v4 = vor.u32 %v2498_v11, %v2182_v53  ;;  %v2515_v53 = vld [vmem:[%s3979_s3 + $0x1f4] sm:$0xf0]  ;;  %v2513_v11 = vld [vmem:[%s3979_s3 + $0x1ec] sm:$0xf] }
 0x126   :  { %1342 = vmatpush.bf16.msrb.mxu0 %v2127_v21  ;;  %v2064_v21 = vld [vmem:[%s3979_s3 + $0x78] sm:$0xf0]  ;;  %1307 = vmatpush.bf16.msra.mxu1 %v2183_v4 }
 0x127   :  { %1368 = vmatpush.bf16.msrb.mxu2 %v2131_v25  ;;  %v2166_v25 = vld [vmem:[%s3979_s3 + $0x140] sm:$0xf]  ;;  %v2067_v29 = vor.u32 %v2465_v17, %v2064_v21  ;;  %v2240_v17 = vld [vmem:[%s3979_s3 + $0x1d8] sm:$0xf0] }
 0x128   :  { %v3515_v35 = vpop.f32.mrf.mxu2  ;;  %v677_v59 = vpop.f32.mrf.mxu0  ;;  %v2167_v45 = vor.u32 %v2494_v33, %v2166_v25 }
 0x129   :  { %v3520_v52 = vpop.f32.mrf.mxu3  ;;  %v690_v60 = vpop.f32.mrf.mxu1  ;;  %v2216_v59 = vld [vmem:[%s3979_s3 + $0x1b0] sm:$0xf0] }
 0x12a   :  { %1343 = vmatpush.bf16.msrb.mxu0 %v2111_v58  ;;  %v2219_v20 = vor.u32 %v2504_v43, %v2216_v59  ;;  %v2095_v60 = vor.u32 %v2475_v19, %v2094_v18  ;;  %v2461_v58 = vld [vmem:[%s3979_s3 + $0x4c] sm:$0xf]  ;;  %v2152_v43 = vld [vmem:[%s3979_s3 + $0x130] sm:$0xf0]  ;;  %1308 = vmatpush.bf16.msra.mxu1 %v2167_v45  ;;  %v2459_v59 = vld [vmem:[%s3979_s3 + $0x34] sm:$0xf0] }
 0x12b   :  { %1369 = vmatpush.bf16.msrb.mxu2 %v2115_v14  ;;  %v2150_v14 = vld [vmem:[%s3979_s3 + $0x120] sm:$0xf]  ;;  %v2051_v27 = vor.u32 %v2461_v58, %v2048_v6  ;;  %v2457_v18 = vld [vmem:[%s3979_s3 + $0x2c] sm:$0xf]  ;;  %v2032_v19 = vld [vmem:[%s3979_s3 + $0x38] sm:$0xf0] }
 0x12c   :  { %1331 = vmatpush.bf16.msra.mxu3 %v2219_v20  ;;  %v676_v20 = vadd.f32 %v3499_v62, %v3356_v61  ;;  %v2035_v30 = vor.u32 %v2457_v18, %v2032_v19  ;;  %v2484_v62 = vld [vmem:[%s3979_s3 + $0x104] sm:$0xf]  ;;  %v2507_v45 = vld [vmem:[%s3979_s3 + $0x1b4] sm:$0xf0] }
 0x12d   :  { %v2223_v58 = vor.u32 %v2507_v45, %v2222_v44 }
 0x12e   :  { %1344 = vmatpush.bf16.msrb.mxu0 %v2095_v60  ;;  %v2155_v60 = vor.u32 %v2488_v28, %v2152_v43  ;;  %v2503_v28 = vld [vmem:[%s3979_s3 + $0x194] sm:$0xf0]  ;;  %v2501_v43 = vld [vmem:[%s3979_s3 + $0x18c] sm:$0xf] }
 0x12f   :  { %1370 = vmatpush.bf16.msrb.mxu2 %v2099_v0  ;;  %v689_v0 = vadd.f32 %v3504_v9, %v676_v20  ;;  %v2136_v9 = vld [vmem:[%s3979_s3 + $0x110] sm:$0xf0] }
 0x130   :  { %v703_v39 = vpop.f32.mrf.mxu2 }
 0x131   :  { %v716_v36 = vpop.f32.mrf.mxu3  ;;  %v2200_v39 = vld [vmem:[%s3979_s3 + $0x190] sm:$0xf0]  ;;  %v702_v4 = vadd.f32 %v3515_v35, %v689_v0  ;;  %v2497_v0 = vld [vmem:[%s3979_s3 + $0x16c] sm:$0xf] }
 0x132   :  { %v2471_v36 = vld [vmem:[%s3979_s3 + $0x94] sm:$0xf0]  ;;  %v2203_v15 = vor.u32 %v2500_v37, %v2200_v39  ;;  %v2135_v37 = vor.u32 %v2486_v10, %v2134_v26 }
 0x133   :  { %v2079_v63 = vor.u32 %v2471_v36, %v2078_v48  ;;  %1371 = vmatpush.bf16.msrb.mxu2 %v2083_v49  ;;  %v2139_v48 = vor.u32 %v2484_v62, %v2136_v9  ;;  %v2174_v62 = vld [vmem:[%s3979_s3 + $0x148] sm:$0xf]  ;;  %v2495_v9 = vld [vmem:[%s3979_s3 + $0x154] sm:$0xf0] }
 0x134   :  { %1332 = vmatpush.bf16.msra.mxu3 %v2203_v15  ;;  %v2016_v15 = vld [vmem:[%s3979_s3 + $0x18] sm:$0xf0] }
 0x135   :  { %1345 = vmatpush.bf16.msrb.mxu0 %v2079_v63  ;;  %v2254_v63 = vld [vmem:[%s3979_s3 + $0x1e8] sm:$0xf] }
 0x136   :  { %v2255_v3 = vor.u32 %v2515_v53, %v2254_v63  ;;  %v2160_v63 = vld [vmem:[%s3979_s3 + $0x138] sm:$0xf0]  ;;  %v2142_v53 = vld [vmem:[%s3979_s3 + $0x108] sm:$0xf] }
 0x137   :  { %1372 = vmatpush.bf16.msrb.mxu2 %v2067_v29  ;;  %v715_v29 = vadd.f32 %v3520_v52, %v702_v4  ;;  %v2224_v52 = vld [vmem:[%s3979_s3 + $0x1b8] sm:$0xf0] }
 0x138   :  { %1333 = vmatpush.bf16.msra.mxu3 %v2187_v12  ;;  %v2511_v12 = vld [vmem:[%s3979_s3 + $0x1d4] sm:$0xf0] }
 0x139   :  { %1346 = vmatpush.bf16.msrb.mxu0 %v2063_v16  ;;  %v2509_v16 = vld [vmem:[%s3979_s3 + $0x1cc] sm:$0xf]  ;;  %v2239_v35 = vor.u32 %v2511_v12, %v2238_v8 }
 0x13a   :  { %v2243_v25 = vor.u32 %v2509_v16, %v2240_v17 }
 0x13b   :  { %1373 = vmatpush.bf16.msrb.mxu2 %v2051_v27  ;;  %v2206_v27 = vld [vmem:[%s3979_s3 + $0x188] sm:$0xf] }
 0x13c   :  { %1334 = vmatpush.bf16.msra.mxu3 %v2171_v46  ;;  %v2505_v46 = vld [vmem:[%s3979_s3 + $0x1ac] sm:$0xf] }
 0x13d   :  { %1347 = vmatpush.bf16.msrb.mxu0 %v2047_v5  ;;  %v2227_v6 = vor.u32 %v2505_v46, %v2224_v52  ;;  %v2531_v52 = vld [vmem:[%s3981_s5 + $0x78] sm:$0xff] }
 0x13f   :  { %1374 = vmatpush.bf16.msrb.mxu2 %v2035_v30  ;;  %v2499_v30 = vld [vmem:[%s3979_s3 + $0x174] sm:$0xf0] }
 0x140   :  { %v3555_v42 = vpop.f32.mrf.mxu0  ;;  %1335 = vmatpush.bf16.msra.mxu3 %v2155_v60 }
 0x141   :  { %v3566_v41 = vpop.f32.mrf.mxu1 }
 0x144   :  { %1336 = vmatpush.bf16.msra.mxu3 %v2139_v48 }
 0x148   :  { %v3595_v38 = vpop.f32.mrf.mxu2  ;;  %v729_v23 = vpop.f32.mrf.mxu0 }
 0x149   :  { %v3606_v56 = vpop.f32.mrf.mxu3  ;;  %v742_v51 = vpop.f32.mrf.mxu1  ;;  %v2490_v23 = vld [vmem:[%s3979_s3 + $0x12c] sm:$0xf0] }
 0x14a   :  { %v2030_v51 = vld [vmem:[%s3979_s3 + $0x28] sm:$0xf]  ;;  %v2151_v55 = vor.u32 %v2490_v23, %v2150_v14  ;;  %v770_v14 = vmax.f32 %v715_v29, 0.0 }
 0x14b   :  { %v2031_v2 = vor.u32 %v2459_v59, %v2030_v51  ;;  %v2208_v59 = vld [vmem:[%s3979_s3 + $0x198] sm:$0xf0] }
 0x14c   :  { %1309 = vmatpush.bf16.msra.mxu1 %v2151_v55  ;;  %v2207_v55 = vor.u32 %v2503_v28, %v2206_v27  ;;  %v2211_v19 = vor.u32 %v2501_v43, %v2208_v59  ;;  %v2519_v27 = vld [vmem:[%s3981_s5 + $0x18] sm:$0xff]  ;;  %v2528_v28 = vld [vmem:[%s3981_s5 + $0x60] sm:$0xff]  ;;  %v2518_v43 = vld [vmem:[%s3981_s5 + $0x10] sm:$0xff] }
 0x14d   :  { %1348 = vmatpush.bf16.msrb.mxu0 %v2031_v2  ;;  %v2190_v2 = vld [vmem:[%s3979_s3 + $0x168] sm:$0xf]  ;;  %v2547_v59 = vld [vmem:[%s3981_s5 + $0xf8] sm:$0xff] }
 0x14e   :  { %v2191_v10 = vor.u32 %v2499_v30, %v2190_v2  ;;  %v2516_v30 = vld [vmem:[%s3981_s5] sm:$0xff] }
 0x150   :  { %v755_v31 = vpop.f32.mrf.mxu2  ;;  %1310 = vmatpush.bf16.msra.mxu1 %v2135_v37 }
 0x151   :  { %v768_v54 = vpop.f32.mrf.mxu3  ;;  %v2014_v31 = vld [vmem:[%s3979_s3 + $0x8] sm:$0xf] }
 0x152   :  { %v2015_v36 = vor.u32 %v2455_v40, %v2014_v31  ;;  %v2453_v54 = vld [vmem:[%s3979_s3 + $0xc] sm:$0xf]  ;;  %v2176_v40 = vld [vmem:[%s3979_s3 + $0x158] sm:$0xf0] }
 0x153   :  { %v2019_v49 = vor.u32 %v2453_v54, %v2016_v15  ;;  %v2493_v31 = vld [vmem:[%s3979_s3 + $0x14c] sm:$0xf]  ;;  %v2491_v54 = vld [vmem:[%s3979_s3 + $0x134] sm:$0xf0] }
 0x154   :  { %1349 = vmatpush.bf16.msrb.mxu0 %v2015_v36  ;;  %1355 = vmatpush.bf16.msrb.mxu1 %v2255_v3  ;;  %v2179_v48 = vor.u32 %v2493_v31, %v2176_v40  ;;  %v2158_v36 = vld [vmem:[%s3979_s3 + $0x128] sm:$0xf]  ;;  %v2489_v15 = vld [vmem:[%s3979_s3 + $0x12c] sm:$0xf]  ;;  %v2534_v40 = vld [vmem:[%s3981_s5 + $0x90] sm:$0xff] }
 0x155   :  { %1375 = vmatpush.bf16.msrb.mxu2 %v2019_v49  ;;  %v2163_v49 = vor.u32 %v2489_v15, %v2160_v63  ;;  %v2532_v63 = vld [vmem:[%s3981_s5 + $0x80] sm:$0xff] }
 0x158   :  { %1356 = vmatpush.bf16.msrb.mxu1 %v2239_v35 }
 0x15c   :  { %1357 = vmatpush.bf16.msrb.mxu1 %v2223_v58  ;;  %v2522_v58 = vld [vmem:[%s3981_s5 + $0x30] sm:$0xff] }
 0x160   :  { %v793_v39 = vpop.f32.mrf.mxu0  ;;  %1358 = vmatpush.bf16.msrb.mxu1 %v2207_v55  ;;  %v2527_v55 = vld [vmem:[%s3981_s5 + $0x58] sm:$0xff] }
 0x161   :  { %v794_v32 = vadd.f32 %v793_v39, %v3356_v61  ;;  %v806_v24 = vpop.f32.mrf.mxu1  ;;  %v2259_v61 = vor.u32 %v2513_v11, %v2256_v13  ;;  %v2175_v39 = vor.u32 %v2495_v9, %v2174_v62  ;;  %v2487_v11 = vld [vmem:[%s3979_s3 + $0x114] sm:$0xf0]  ;;  %v2485_v13 = vld [vmem:[%s3979_s3 + $0x10c] sm:$0xf]  ;;  %v2544_v9 = vld [vmem:[%s3981_s5 + $0xe0] sm:$0xff] }
 0x163   :  { %v807_v7 = vadd.f32 %v806_v24, %v794_v32  ;;  %1381 = vmatpush.bf16.msrb.mxu3 %v2259_v61  ;;  %v728_v32 = vadd.f32 %v3555_v42, %v3384_v22  ;;  %v2159_v24 = vor.u32 %v2491_v54, %v2158_v36  ;;  %v2144_v42 = vld [vmem:[%s3979_s3 + $0x118] sm:$0xf0]  ;;  %v2143_v61 = vor.u32 %v2487_v11, %v2142_v53  ;;  %v2542_v54 = vld [vmem:[%s3981_s5 + $0xd0] sm:$0xff]  ;;  %v2540_v53 = vld [vmem:[%s3981_s5 + $0xc0] sm:$0xff] }
 0x164   :  { %1359 = vmatpush.bf16.msrb.mxu1 %v2191_v10  ;;  %v2545_v10 = vld [vmem:[%s3981_s5 + $0xe8] sm:$0xff] }
 0x165   :  { %v741_v4 = vadd.f32 %v3566_v41, %v728_v32  ;;  %v2541_v32 = vld [vmem:[%s3981_s5 + $0xc8] sm:$0xff] }
 0x167   :  { %1382 = vmatpush.bf16.msrb.mxu3 %v2243_v25  ;;  %v754_v16 = vadd.f32 %v3595_v38, %v741_v4 }
 0x168   :  { %v819_v21 = vpop.f32.mrf.mxu2  ;;  %v795_v57 = vpop.f32.mrf.mxu0  ;;  %1360 = vmatpush.bf16.msrb.mxu1 %v2175_v39  ;;  %v2543_v39 = vld [vmem:[%s3981_s5 + $0xd8] sm:$0xff] }
 0x169   :  { %v820_v33 = vadd.f32 %v819_v21, %v807_v7  ;;  %v832_v34 = vpop.f32.mrf.mxu3  ;;  %v808_v5 = vpop.f32.mrf.mxu1  ;;  %v2147_v7 = vor.u32 %v2485_v13, %v2144_v42  ;;  %v767_v21 = vadd.f32 %v3606_v56, %v754_v16  ;;  %v2523_v56 = vld [vmem:[%s3981_s5 + $0x38] sm:$0xff] }
 0x16a   :  { %v2530_v5 = vld [vmem:[%s3981_s5 + $0x70] sm:$0xff] }
 0x16b   :  { %v833_v50 = vadd.f32 %v832_v34, %v820_v33  ;;  %1383 = vmatpush.bf16.msrb.mxu3 %v2227_v6  ;;  %v771_v44 = vmax.f32 %v767_v21, 0.0  ;;  %v2520_v6 = vld [vmem:[%s3981_s5 + $0x20] sm:$0xff] }
 0x16c   :  { %1361 = vmatpush.bf16.msrb.mxu1 %v2159_v24  ;;  %v960_v24 = vld [vmem:[%s3980_s4] sm:$0xf] }
 0x16d   :  { %v888_v23 = vmax.f32 %v833_v50, 0.0  ;;  %v962_v13 = vperm.slane %v960_v24, 0 }
 0x16f   :  { %v890_v51 = vmax.f32 %v770_v14, %v888_v23  ;;  %1384 = vmatpush.bf16.msrb.mxu3 %v2211_v19  ;;  %v2529_v14 = vld [vmem:[%s3981_s5 + $0x68] sm:$0xff]  ;;  %v2539_v23 = vld [vmem:[%s3981_s5 + $0xb8] sm:$0xff] }
 0x170   :  { %v821_v18 = vpop.f32.mrf.mxu2  ;;  %1362 = vmatpush.bf16.msrb.mxu1 %v2143_v61  ;;  %v2537_v19 = vld [vmem:[%s3981_s5 + $0xa8] sm:$0xff]  ;;  %v963_v61 = vperm.slane %v960_v24, 1 }
 0x171   :  { %v892_v20 = vmax.f32 %v3436_v47, %v890_v51  ;;  %v834_v60 = vpop.f32.mrf.mxu3  ;;  %v2192_v47 = vld [vmem:[%s3979_s3 + $0x178] sm:$0xf0]  ;;  %v2538_v51 = vld [vmem:[%s3981_s5 + $0xb0] sm:$0xff]  ;;  %v2517_v18 = vld [vmem:[%s3981_s5 + $0x8] sm:$0xff] }
 0x172   :  { %v2195_v37 = vor.u32 %v2497_v0, %v2192_v47  ;;  %v2546_v60 = vld [vmem:[%s3981_s5 + $0xf0] sm:$0xff]  ;;  %v2536_v0 = vld [vmem:[%s3981_s5 + $0xa0] sm:$0xff]  ;;  %v2535_v47 = vld [vmem:[%s3981_s5 + $0x98] sm:$0xff] }
 0x173   :  { %v894_v26 = vpack.c.bf16 %v892_v20, %v892_v20  ;;  %v2526_v20 = vld [vmem:[%s3981_s5 + $0x50] sm:$0xff] }
 0x174   :  { %1385 = vmatpush.bf16.msrb.mxu3 %v2195_v37  ;;  %v2524_v37 = vld [vmem:[%s3981_s5 + $0x40] sm:$0xff] }
 0x175   :  { %1298 = vmatmul.bf16.vlgmr.msra.gmra.mxu0 %v894_v26  ;;  %1324 = vmatmul.bf16.vlgmr.msra.gmra.mxu2 %v894_v26 }
 0x176   :  { %1662 = vmatpush.bf16.msra.mxu0 %v2523_v56  ;;  %1688 = vmatpush.bf16.msra.mxu2 %v2539_v23 }
 0x178   :  { %1386 = vmatpush.bf16.msrb.mxu3 %v2179_v48  ;;  %v2533_v48 = vld [vmem:[%s3981_s5 + $0x88] sm:$0xff] }
 0x17a   :  { %1663 = vmatpush.bf16.msra.mxu0 %v2522_v58  ;;  %1689 = vmatpush.bf16.msra.mxu2 %v2538_v51 }
 0x17c   :  { %1387 = vmatpush.bf16.msrb.mxu3 %v2163_v49 }
 0x17e   :  { %1690 = vmatpush.bf16.msra.mxu2 %v2537_v19 }
 0x180   :  { %v845_v3 = vpop.f32.mrf.mxu0  ;;  %1388 = vmatpush.bf16.msrb.mxu3 %v2147_v7 }
 0x181   :  { %v846_v8 = vadd.f32 %v845_v3, %v3384_v22  ;;  %v858_v12 = vpop.f32.mrf.mxu1 }
 0x182   :  { %1691 = vmatpush.bf16.msra.mxu2 %v2536_v0 }
 0x183   :  { %v859_v35 = vadd.f32 %v858_v12, %v846_v8 }
 0x185   :  { %1350 = vmatmul.bf16.vlgmr.msrb.gmra.mxu0 %v894_v26  ;;  %1376 = vmatmul.bf16.vlgmr.msrb.gmra.mxu2 %v894_v26  ;;  %v2525_v26 = vld [vmem:[%s3981_s5 + $0x48] sm:$0xff] }
 0x186   :  { %1692 = vmatpush.bf16.msra.mxu2 %v2535_v47 }
 0x188   :  { %v871_v17 = vpop.f32.mrf.mxu2  ;;  %v847_v29 = vpop.f32.mrf.mxu0 }
 0x189   :  { %v872_v25 = vadd.f32 %v871_v17, %v859_v35  ;;  %v884_v41 = vpop.f32.mrf.mxu3  ;;  %v860_v33 = vpop.f32.mrf.mxu1 }
 0x18a   :  { %1693 = vmatpush.bf16.msra.mxu2 %v2534_v40 }
 0x18b   :  { %v885_v34 = vadd.f32 %v884_v41, %v872_v25  ;;  %v964_v41 = vperm.slane %v960_v24, 2 }
 0x18d   :  { %v889_v45 = vmax.f32 %v885_v34, 0.0 }
 0x18e   :  { %1694 = vmatpush.bf16.msra.mxu2 %v2533_v48 }
 0x18f   :  { %v891_v46 = vmax.f32 %v771_v44, %v889_v45  ;;  %v965_v45 = vperm.slane %v960_v24, 3 }
 0x190   :  { %v873_v22 = vpop.f32.mrf.mxu2 }
 0x191   :  { %v893_v50 = vmax.f32 %v3461_v1, %v891_v46  ;;  %v886_v38 = vpop.f32.mrf.mxu3  ;;  %v2521_v1 = vld [vmem:[%s3981_s5 + $0x28] sm:$0xff] }
 0x192   :  { %1664 = vmatpush.bf16.msra.mxu0 %v2521_v1  ;;  %1695 = vmatpush.bf16.msra.mxu2 %v2532_v63 }
 0x193   :  { %v895_v57 = vpack.c.bf16 %v893_v50, %v893_v50 }
 0x195   :  { %1311 = vmatmul.bf16.vlgmr.msra.gmra.mxu1 %v895_v57  ;;  %1337 = vmatmul.bf16.vlgmr.msra.gmra.mxu3 %v895_v57 }
 0x196   :  { %1675 = vmatpush.bf16.msra.mxu1 %v2531_v52  ;;  %1665 = vmatpush.bf16.msra.mxu0 %v2520_v6 }
 0x197   :  { %1701 = vmatpush.bf16.msra.mxu3 %v2547_v59 }
 0x19a   :  { %1676 = vmatpush.bf16.msra.mxu1 %v2530_v5  ;;  %1666 = vmatpush.bf16.msra.mxu0 %v2519_v27 }
 0x19b   :  { %1702 = vmatpush.bf16.msra.mxu3 %v2546_v60 }
 0x19e   :  { %1677 = vmatpush.bf16.msra.mxu1 %v2529_v14  ;;  %1667 = vmatpush.bf16.msra.mxu0 %v2518_v43 }
 0x19f   :  { %1703 = vmatpush.bf16.msra.mxu3 %v2545_v10 }
 0x1a2   :  { %1678 = vmatpush.bf16.msra.mxu1 %v2528_v28  ;;  %1668 = vmatpush.bf16.msra.mxu0 %v2517_v18  ;;  %v2549_v28 = vld [vmem:[%s3982_s6] ss:$0 sm:$0xff]  ;;  %s2580_s6 = smov [#allocation2]  }
 0x1a3   :  { %1704 = vmatpush.bf16.msra.mxu3 %v2544_v9  ;;  %s1734_s18 = sshll.u32 %s2580_s6, 4  ;;  %s1735_s18 = int_to_ptr.vmem [resolvable:$true] %s1734_s18 }
 0x1a5   :  { %1363 = vmatmul.bf16.vlgmr.msrb.gmra.mxu1 %v895_v57  ;;  %1389 = vmatmul.bf16.vlgmr.msrb.gmra.mxu3 %v895_v57 }
 0x1a6   :  { %1679 = vmatpush.bf16.msra.mxu1 %v2527_v55  ;;  %1669 = vmatpush.bf16.msra.mxu0 %v2516_v30 }
 0x1a7   :  { %1705 = vmatpush.bf16.msra.mxu3 %v2543_v39 }
 0x1aa   :  { %1680 = vmatpush.bf16.msra.mxu1 %v2526_v20 }
 0x1ab   :  { %1706 = vmatpush.bf16.msra.mxu3 %v2542_v54 }
 0x1ae   :  { %1681 = vmatpush.bf16.msra.mxu1 %v2525_v26 }
 0x1af   :  { %1707 = vmatpush.bf16.msra.mxu3 %v2541_v32 }
 0x1b2   :  { %1682 = vmatpush.bf16.msra.mxu1 %v2524_v37 }
 0x1b3   :  { %1708 = vmatpush.bf16.msra.mxu3 %v2540_v53 }
 0x1f2   :  { %v1299_v2 = vpop.f32.mrf.mxu0 }
 0x1f3   :  { %v1300_v42 = vadd.f32 %v1299_v2, %v962_v13 }
 0x1f8   :  { %v1325_v62 = vpop.f32.mrf.mxu2 }
 0x1f9   :  { %v1326_v12 = vadd.f32 %v1325_v62, %v963_v61 }
 0x1fa   :  { %v1301_v31 = vpop.f32.mrf.mxu0 }
 0x200   :  { %v1327_v36 = vpop.f32.mrf.mxu2 }
 0x202   :  { %v1351_v15 = vpop.f32.mrf.mxu0 }
 0x203   :  { %v1352_v34 = vadd.f32 %v1351_v15, %v964_v41 }
 0x208   :  { %v1377_v49 = vpop.f32.mrf.mxu2 }
 0x209   :  { %v1378_v50 = vadd.f32 %v1377_v49, %v965_v45 }
 0x20a   :  { %v1353_v11 = vpop.f32.mrf.mxu0 }
 0x210   :  { %v1379_v3 = vpop.f32.mrf.mxu2 }
 0x212   :  { %v1312_v4 = vpop.f32.mrf.mxu1 }
 0x213   :  { %v1313_v7 = vadd.f32 %v1312_v4, %v1300_v42 }
 0x215   :  { %v1394_v8 = vmax.f32 %v1313_v7, 0.0 }
 0x217   :  { %v1398_v16 = vpack.c.bf16 %v1394_v8, %v1394_v8 }
 0x218   :  { %v1338_v35 = vpop.f32.mrf.mxu3 }
 0x219   :  { %v1339_v17 = vadd.f32 %v1338_v35, %v1326_v12  ;;  %1670 = vmatmul.bf16.vlgmr.msra.gmra.mxu0 %v1398_v16 }
 0x21a   :  { %v1314_v21 = vpop.f32.mrf.mxu1 }
 0x21b   :  { %v1395_v25 = vmax.f32 %v1339_v17, 0.0 }
 0x21d   :  { %v1399_v29 = vpack.c.bf16 %v1395_v25, %v1395_v25 }
 0x21f   :  { %1683 = vmatmul.bf16.vlgmr.msra.gmra.mxu1 %v1399_v29 }
 0x220   :  { %v1340_v33 = vpop.f32.mrf.mxu3 }
 0x222   :  { %v1364_v44 = vpop.f32.mrf.mxu1 }
 0x223   :  { %v1365_v46 = vadd.f32 %v1364_v44, %v1352_v34 }
 0x225   :  { %v1396_v22 = vmax.f32 %v1365_v46, 0.0 }
 0x227   :  { %v1400_v38 = vpack.c.bf16 %v1396_v22, %v1396_v22 }
 0x228   :  { %v1390_v57 = vpop.f32.mrf.mxu3 }
 0x229   :  { %v1391_v56 = vadd.f32 %v1390_v57, %v1378_v50  ;;  %1696 = vmatmul.bf16.vlgmr.msra.gmra.mxu2 %v1400_v38 }
 0x22a   :  { %v1366_v58 = vpop.f32.mrf.mxu1 }
 0x22b   :  { %v1397_v52 = vmax.f32 %v1391_v56, 0.0 }
 0x22d   :  { %v1401_v1 = vpack.c.bf16 %v1397_v52, %v1397_v52 }
 0x22f   :  { %1709 = vmatmul.bf16.vlgmr.msra.gmra.mxu3 %v1401_v1 }
 0x230   :  { %v1392_v5 = vpop.f32.mrf.mxu3 }
 0x296   :  { %v1671_v6 = vpop.f32.mrf.mxu0 }
 0x297   :  { %v1672_v51 = vadd.f32 %v2549_v28, %v1671_v6 }
 0x29c   :  { %v1684_v14 = vpop.f32.mrf.mxu1 }
 0x29d   :  { %v1685_v55 = vadd.f32 %v1684_v14, %v1672_v51 }
 0x29e   :  { %v1673_v23 = vpop.f32.mrf.mxu0 }
 0x2a4   :  { %v1686_v27 = vpop.f32.mrf.mxu1 }
 0x2ac   :  { %v1697_v43 = vpop.f32.mrf.mxu2 }
 0x2ad   :  { %v1698_v59 = vadd.f32 %v1697_v43, %v1685_v55 }
 0x2b2   :  { %v1710_v18 = vpop.f32.mrf.mxu3 }
 0x2b3   :  { %v1711_v19 = vadd.f32 %v1710_v18, %v1698_v59 }
 0x2b4   :  { %v1699_v20 = vpop.f32.mrf.mxu2 }
 0x2b5   :  { %v1714_v60 = vmax.f32 %v1711_v19, 0.0 }
 0x2b7   :  { %v1716_v2 = vsel %vm1715_vm0, %v1714_v60, -inf }
 0x2b8   :  { %1717 = vmax.xlane.f32.xlu0 %v1716_v2 }
 0x2ba   :  { %v1712_v30 = vpop.f32.mrf.mxu3 }
 0x32b   :  { %v1718_v0 = vpop.xlane.xlu0 %1717 }
 0x32c   :  { %v1719_v26 = vsub.f32 %v1714_v60, %v1718_v0 }
 0x32e   :  { %v1720_v10 = vmul.f32 1.442695, %v1719_v26 }
 0x330   :  { %2550 = vpow2.f32 %v1720_v10 }
 0x336   :  { %v2551_v47 = vpop.eup %2550 }
 0x337   :  { %v1722_v62 = vsel %vm1715_vm0, %v2551_v47, 0.0 }
 0x338   :  { %1723 = vadd.xlane.f32.xlu0 %v1722_v62 }
 0x3ab   :  { %v1724_v37 = vpop.xlane.xlu0 %1723 }
 0x3ac   :  { %2552 = vlog2.f32 %v1724_v37 }
 0x3b2   :  { %v2553_v9 = vpop.eup %2552 }
 0x3b3   :  { %v1726_v31 = vmul.f32 0.6931472, %v2553_v9 }
 0x3b5   :  { %v1727_v40 = vsub.f32 %v1719_v26, %v1726_v31 }
 0x3b7   :  { %1728 = vst.msk [vmem:[#allocation2] sm:$0x3] %vm1715_vm0, %v1727_v40 }
 0x3b8   :  { %1739 = dma.vmem_to_hbm [thread:$0]  %s1735_s18, 32, %s1737_s21, [#allocation3]  }
 0x3b9   :  { %2578 = dma.done.wait [#allocation3], 32  }
 0x3ba   :  { %2579 = vsyncadd [#allocation3], 4294967264 }
 0x3bb   :  { %1744 = vsyncpa [#allocation3], 1 }

</bundles_post_ra>
